<compile_context>
chip_gen: v5e
topology: v5e:2x2
jax: 0.10.0
libtpu: 0.0.40
codegen_flags: <defaults>
</compile_context>

<pallas_src>
import jax
import jax.numpy as jnp
from jax.experimental import pallas as pl
from jax.experimental.pallas import tpu as pltpu

_SPATIO_IDX = (0, 1, 2, 5, 6, 7, 8, 9)
_VELOCITY_IDX = (3, 10)
_SNR_IDX = (4, 11)
_C_IN = 12


def _round_up(x, m):
    return ((x + m - 1) // m) * m


def pfn_kernel(x_ref, w_ref, shift_ref, out_ref):
    # x_ref:     (TN*M, C_in)   point rows, voxel-major / point-minor
    # w_ref:     (C_in, U)      combined branch weight, BN scale folded in
    # shift_ref: (1, U)         folded BN shift
    # out_ref:   (TN, M, 2*U)
    tn, m, two_u = out_ref.shape
    u = two_u // 2

    # One MXU matmul == linear1/2/3 + channel concat (block-structured weight).
    y = jnp.dot(x_ref[...], w_ref[...],
                preferred_element_type=jnp.float32)            # (TN*M, U)
    # Folded BN shift + ReLU (VPU).
    y = jnp.maximum(y + shift_ref[...], 0.0)

    # Per-voxel max over the M points, broadcast back, concat along channels.
    y3 = y.reshape(tn, m, u)
    agg = jnp.max(y3, axis=1, keepdims=True)                   # (TN, 1, U)
    rep = jnp.broadcast_to(agg, (tn, m, u))
    # Single full-width (2U-lane) store: lane-dense when 2U is a multiple of 128.
    out_ref[...] = jnp.concatenate([y3, rep], axis=-1).astype(out_ref.dtype)


def pfn_layer_radar(inputs, w1, w2, w3, bn1, bn2, bn3, *,
                    eps=1e-3, tile_n=128):
    """PFNLayer_Radar forward (mode='max', last_layer=False, inference BN).

    Args:
      inputs: (N, M, 12) float32 radar point features per pillar.
      w1: (8, u1), w2: (2, u2), w3: (2, u3) branch linear weights
          (torch nn.Linear weight transposed: stored (in, out), no bias).
      bn1/bn2/bn3: tuples (gamma, beta, running_mean, running_var), each (u_i,).
      eps: BN epsilon.
      tile_n: voxels per grid step (rounded to a multiple of 8).
    Returns:
      (N, M, 2*(u1+u2+u3)) float32 concatenated pillar features.
    """
    n, m, c_in = inputs.shape
    assert c_in == _C_IN, c_in
    u1, u2, u3 = w1.shape[1], w2.shape[1], w3.shape[1]
    u = u1 + u2 + u3

    # ---- One-time parameter folding (plain JAX) -----------------------------
    # Combined weight: rows scattered to the original input-channel positions
    # so the kernel needs no index_select; columns = [branch1 | branch2 | branch3].
    w = jnp.zeros((_C_IN, u), dtype=jnp.float32)
    w = w.at[jnp.array(_SPATIO_IDX), 0:u1].set(w1.astype(jnp.float32))
    w = w.at[jnp.array(_VELOCITY_IDX), u1:u1 + u2].set(w2.astype(jnp.float32))
    w = w.at[jnp.array(_SNR_IDX), u1 + u2:u].set(w3.astype(jnp.float32))

    def _fold(bn):
        gamma, beta, mean, var = (p.astype(jnp.float32) for p in bn)
        scale = gamma * jax.lax.rsqrt(var + eps)
        return scale, beta - mean * scale

    scales, shifts = zip(*(_fold(b) for b in (bn1, bn2, bn3)))
    scale = jnp.concatenate(scales)                        # (U,)
    shift = jnp.concatenate(shifts).reshape(1, u)          # (1, U)
    w = w * scale[None, :]                                 # fold BN scale into W

    # ---- Tiling --------------------------------------------------------------
    tile_n = int(max(8, min(_round_up(tile_n, 8), _round_up(n, 8))))
    n_pad = _round_up(n, tile_n)
    grid = (n_pad // tile_n,)
    # (For v7x megacore, prefer an even number of grid steps so both
    #  TensorCores stay busy; here N=256 / tile_n=128 -> grid=(2,).)

    x = inputs.astype(jnp.float32)
    if n_pad != n:
        x = jnp.pad(x, ((0, n_pad - n), (0, 0), (0, 0)))
    x2 = x.reshape(n_pad * m, c_in)                        # 2-D matmul operand

    out = pl.pallas_call(
        pfn_kernel,
        out_shape=jax.ShapeDtypeStruct((n_pad, m, 2 * u), jnp.float32),
        grid_spec=pltpu.PrefetchScalarGridSpec(
            num_scalar_prefetch=0,
            grid=grid,
            in_specs=[
                pl.BlockSpec((tile_n * m, c_in), lambda i: (i, 0)),
                pl.BlockSpec((_C_IN, u), lambda i: (0, 0)),
                pl.BlockSpec((1, u), lambda i: (0, 0)),
            ],
            out_specs=pl.BlockSpec((tile_n, m, 2 * u), lambda i: (i, 0, 0)),
        ),
        compiler_params=pltpu.CompilerParams(
            dimension_semantics=("parallel",),
            vmem_limit_bytes=32 * 1024 * 1024),
    )(x2, w, shift)

    return out[:n] if n_pad != n else out


def pfn_layer_radar_ref(inputs, w1, w2, w3, bn1, bn2, bn3, eps=1e-3):
    """Pure-JAX reference mirroring the PyTorch forward (inference-mode BN)."""
    def branch(idx, wgt, bn):
        gamma, beta, mean, var = bn
        y = jnp.einsum("nmc,cu->nmu", inputs[..., jnp.array(idx)], wgt)
        return (y - mean) * jax.lax.rsqrt(var + eps) * gamma + beta

    x = jnp.concatenate([branch(_SPATIO_IDX, w1, bn1),
                         branch(_VELOCITY_IDX, w2, bn2),
                         branch(_SNR_IDX, w3, bn3)], axis=-1)
    x = jnp.maximum(x, 0.0)
    x_max = jnp.max(x, axis=1, keepdims=True)
    x_rep = jnp.broadcast_to(x_max, x.shape)
    return jnp.concatenate([x, x_rep], axis=-1)


if __name__ == "__main__":
    # Small shapes consistent with the module: 256 pillars, 16 points/pillar,
    # 12 radar channels.  Module out_channels=128, last_layer=False
    # -> internal units (u1,u2,u3)=(32,16,16), output = 2*64 = 128 channels
    # (exactly one vreg lane width -> lane-dense stores).
    N, M = 256, 16
    U1, U2, U3 = 32, 16, 16

    key = jax.random.PRNGKey(0)
    ks = jax.random.split(key, 7)

    inputs = jax.random.normal(ks[0], (N, M, 12), dtype=jnp.float32)
    w1 = 0.1 * jax.random.normal(ks[1], (8, U1), dtype=jnp.float32)
    w2 = 0.1 * jax.random.normal(ks[2], (2, U2), dtype=jnp.float32)
    w3 = 0.1 * jax.random.normal(ks[3], (2, U3), dtype=jnp.float32)

    def bn_params(units, k):
        kg, kb, km, kv = jax.random.split(k, 4)
        gamma = 1.0 + 0.1 * jax.random.normal(kg, (units,), dtype=jnp.float32)
        beta = 0.1 * jax.random.normal(kb, (units,), dtype=jnp.float32)
        mean = 0.1 * jax.random.normal(km, (units,), dtype=jnp.float32)
        var = 1.0 + 0.1 * jax.random.uniform(kv, (units,), dtype=jnp.float32)
        return gamma, beta, mean, var

    bn1 = bn_params(U1, ks[4])
    bn2 = bn_params(U2, ks[5])
    bn3 = bn_params(U3, ks[6])

    out = pfn_layer_radar(inputs, w1, w2, w3, bn1, bn2, bn3, tile_n=128)
    out = jax.block_until_ready(out)

    ref = pfn_layer_radar_ref(inputs, w1, w2, w3, bn1, bn2, bn3)
    assert out.shape == (N, M, 2 * (U1 + U2 + U3)), out.shape
    assert jnp.allclose(out, ref, atol=1e-4, rtol=1e-4), (
        "mismatch vs reference, max abs err = "
        + str(float(jnp.max(jnp.abs(out - ref)))))

    print("KERNEL_OK")
</pallas_src>

<mosaic_0001>
module attributes {stable_mosaic.version = 11 : i64} {
  func.func @pfn_kernel(%arg0: i32, %arg1: memref<2048x12xf32, #tpu.memory_space<vmem>>, %arg2: memref<12x64xf32, #tpu.memory_space<vmem>>, %arg3: memref<1x64xf32, #tpu.memory_space<vmem>>, %arg4: memref<128x16x128xf32, #tpu.memory_space<vmem>>) attributes {dimension_semantics = [#tpu.dimension_semantics<parallel>], iteration_bounds = array<i64: 2>, scalar_prefetch = 0 : i64, scratch_operands = 0 : i64, tpu.core_type = #tpu.core_type<tc>, window_params = [{transform_indices = @transform_0, window_bounds = array<i64: 2048, 12>}, {pipeline_mode = #tpu.pipeline_mode<synchronous>, transform_indices = @transform_1, window_bounds = array<i64: 12, 64>}, {pipeline_mode = #tpu.pipeline_mode<synchronous>, transform_indices = @transform_2, window_bounds = array<i64: 1, 64>}, {transform_indices = @transform_3, window_bounds = array<i64: 128, 16, 128>}]} {
    %c0 = arith.constant 0 : index
    %c0_0 = arith.constant 0 : index
    %0 = vector.load %arg1[%c0, %c0_0] : memref<2048x12xf32, #tpu.memory_space<vmem>>, vector<2048x12xf32>
    %c0_1 = arith.constant 0 : index
    %c0_2 = arith.constant 0 : index
    %1 = vector.load %arg2[%c0_1, %c0_2] : memref<12x64xf32, #tpu.memory_space<vmem>>, vector<12x64xf32>
    %cst = arith.constant dense<0.000000e+00> : vector<2048x64xf32>
    %2 = tpu.matmul %0, %1, %cst {dimension_numbers = #tpu.dot_dimension_numbers<[1], [0], [0], [1], [0, 0, 1, 1], [], []>} : vector<2048x12xf32>, vector<12x64xf32>, vector<2048x64xf32> -> vector<2048x64xf32>
    %c0_3 = arith.constant 0 : index
    %c0_4 = arith.constant 0 : index
    %3 = vector.load %arg3[%c0_3, %c0_4] : memref<1x64xf32, #tpu.memory_space<vmem>>, vector<1x64xf32>
    %4 = vector.broadcast %3 : vector<1x64xf32> to vector<2048x64xf32>
    %5 = arith.addf %2, %4 : vector<2048x64xf32>
    %cst_5 = arith.constant 0.000000e+00 : f32
    %6 = vector.broadcast %cst_5 : f32 to vector<2048x64xf32>
    %7 = arith.maximumf %5, %6 : vector<2048x64xf32>
    %8 = vector.shape_cast %7 : vector<2048x64xf32> to vector<128x16x64xf32>
    %cst_6 = arith.constant dense<0xFF800000> : vector<128x64xf32>
    %9 = vector.multi_reduction <maximumf>, %8, %cst_6 [1] : vector<128x16x64xf32> to vector<128x64xf32>
    %10 = vector.shape_cast %9 : vector<128x64xf32> to vector<128x1x64xf32>
    %11 = vector.shape_cast %10 : vector<128x1x64xf32> to vector<128x1x64xf32>
    %12 = vector.broadcast %11 : vector<128x1x64xf32> to vector<128x16x64xf32>
    %13 = tpu.concatenate %8, %12 in 2 : vector<128x16x64xf32>, vector<128x16x64xf32> -> vector<128x16x128xf32>
    %c0_7 = arith.constant 0 : index
    %c0_8 = arith.constant 0 : index
    %c0_9 = arith.constant 0 : index
    %14 = vector.load %arg4[%c0_7, %c0_8, %c0_9] : memref<128x16x128xf32, #tpu.memory_space<vmem>>, vector<128x16x128xf32>
    tpu.vector_store %arg4[%c0_7, %c0_8, %c0_9], %13 {strides = array<i32>} : memref<128x16x128xf32, #tpu.memory_space<vmem>>, vector<128x16x128xf32>,
    return
  }
  func.func @transform_0(%arg0: i32) -> (i32, i32) {
    %c0_i32 = arith.constant 0 : i32
    %c0_i32_0 = arith.constant 0 : i32
    return %arg0, %c0_i32 : i32, i32
  }
  func.func @transform_1(%arg0: i32) -> (i32, i32) {
    %c0_i32 = arith.constant 0 : i32
    %c0_i32_0 = arith.constant 0 : i32
    %c0_i32_1 = arith.constant 0 : i32
    return %c0_i32, %c0_i32_0 : i32, i32
  }
  func.func @transform_2(%arg0: i32) -> (i32, i32) {
    %c0_i32 = arith.constant 0 : i32
    %c0_i32_0 = arith.constant 0 : i32
    %c0_i32_1 = arith.constant 0 : i32
    return %c0_i32, %c0_i32_0 : i32, i32
  }
  func.func @transform_3(%arg0: i32) -> (i32, i32, i32) {
    %c0_i32 = arith.constant 0 : i32
    %c0_i32_0 = arith.constant 0 : i32
    %c0_i32_1 = arith.constant 0 : i32
    return %arg0, %c0_i32, %c0_i32_0 : i32, i32, i32
  }
}

</mosaic_0001>

<bundles_post_ra>
// kernel: tpu_custom_call.1
= control target key start
LH: loop header
LB: loop body
LE: loop exit
PB: predicated region body
PF: predicated region fallthrough
CT: control target
= control target key end

     0   :  { %8 = vsyncpa [#allocation3], 0  ;;  %s8508_s0 = inlined_call_operand.vmem [shape: f32[4096,12], index: 0, kind: input, shape index: {}]   ;;  %s8509_s1 = inlined_call_operand.vmem [shape: f32[12,64], index: 1, kind: input, shape index: {}]   ;;  %s8510_s2 = inlined_call_operand.vmem [shape: f32[1,64], index: 2, kind: input, shape index: {}]   ;;  %s8511_s3 = inlined_call_operand.hbm [shape: f32[256,16,128], index: 3, kind: output, shape index: {}]  }
   0x1   :  { %10 = vsyncpa [#allocation3 + $0x1], 0  ;;  %s4917_s12 = smov 0   ;;  %s4919_s13 = smov 0  }
   0x2   :  { %s4921_s14 = smov 0   ;;  %s4923_s15 = smov 0  }
   0x3 LB: > { %s4938_s16 = sadd.s32 4294967295, %s4892_s15   ;;  %s4504_s17 = sadd.s32 4294967294, %s4892_s15   ;;  %s4892_s15 = sphi %s4923_s15, %s9341_s15   ;;  %s4888_s14 = sphi %s4921_s14, %s9340_s14   ;;  %s4884_s13 = sphi %s4919_s13, %s9339_s13   ;;  %s4880_s12 = sphi %s4917_s12, %s9338_s12  }
   0x4   : > { %s4942_s18 = sadd.s32 1, %s4892_s15   ;;  %s91_s19 = sadd.s32 1, %s4888_s14 }
   0x5   : > { %s88_s20 = ssub.s32 %s4892_s15, %s4942_s18  ;;  %p101_p0 = scmp.ne.s32.totalorder %s4888_s14, %s4884_s13 }
   0x6   : > { %p89_p1 = scmp.eq.s32.totalorder %s88_s20, 0  ;;  %p102_p2 = scmp.eq.s32.totalorder %s4938_s16, 1 }
   0x7   : > { %p107_p3 = scmp.ne.s32.totalorder %s4884_s13, %s4880_s12  ;;  %p108_p4 = scmp.eq.s32.totalorder %s4504_s17, 1 }
   0x8   : > { %s4953_s21 = scalar_select %p89_p1, %s4888_s14, %s91_s19  }
   0x9   : > { %p4955_p5 = por %p102_p2, %p101_p0  ;;  %p4959_p6 = por %p108_p4, %p107_p3 }
   0xa   : > { %p4507_p7 = scmp.ge.s32.totalorder %s4892_s15, 1  ;;  %p141_p8 = scmp.lt.s32.totalorder %s4892_s15, 3 }
   0xc   : > { %p142_p9 = pnand %p4507_p7, %p141_p8 }
   0xe   : > { %145 = sbr.rel (%p142_p9) target bundleno = 837 (0x345), region = 32 }
  0x13   : > { %v429_v0 = vld [vmem:[%s8509_s1 + $0x8] sm:$0xf]  ;;  %vm1203_vm0 = vcmask 1043456   ;;  %v428_v1 = vld [vmem:[%s8509_s1] sm:$0xff]  ;;  %s4509_s28 = sshll.u32 %s4938_s16, 8  ;;  %vm434_vm1 = vcmask 97280  }
  0x14   : > { %4511 = vmatpush.msk.msra.mxu0 %vm1203_vm0, %v429_v0  ;;  %4776 = vmatpush.msk.msra.mxu1 %vm1203_vm0, %v429_v0  ;;  %p166_p10 = scmp.lt.s32.totalorder %s4509_s28, 511  ;;  %vm2248_vm2 = vcmask 523264   ;;  %s4894_s8 = smov 64  }
  0x15   : > { %4777 = vmatpush.msk.msra.mxu2 %vm1203_vm0, %v429_v0  ;;  %4778 = vmatpush.msk.msra.mxu3 %vm1203_vm0, %v429_v0  ;;  %s162_s11 = sand.u32 1, %s4884_s13   ;;  %s4775_s4 = sshll.u32 %s4938_s16, 11 }
  0x16   : > { %1222 = vmatpush.msra.mxu0 %v428_v1  ;;  %4779 = vmatpush.msra.mxu1 %v428_v1  ;;  %s9343_s28 = smov (!%p166_p10, %s4509_s28), 511  ;;  %s4508_s17 = sshll.u32 %s162_s11, 11 }
  0x17   : > { %4780 = vmatpush.msra.mxu2 %v428_v1  ;;  %4781 = vmatpush.msra.mxu3 %v428_v1  ;;  %s4510_s29 = sshll.u32 %s9343_s28, 3  ;;  %s5676_s19 = scalar_lea.vmem [#allocation2], %s4508_s17 }
  0x18   : > { %s4975_s5 = scalar_lea.vmem %s8508_s0, %s4510_s29  ;;  %s4438_s7 = scalar_lea.hbm %s8511_s3, %s4775_s4 }
  0x19   : > { %v172_v2 = vld [vmem:[%s4975_s5] sm:$0xff]  ;;  %v173_v6 = vld [vmem:[%s4975_s5 + $0x8] sm:$0xff]  ;;  %v174_v10 = vld [vmem:[%s4975_s5 + $0x10] sm:$0xff]  ;;  %s4439_s16 = sshll.u32 %s5676_s19, 4  ;;  %s4426_s9 = scalar_lea.sflag [#allocation3], %s162_s11  ;;  %s4440_s16 = int_to_ptr.vmem [resolvable:$true] %s4439_s16 }
  0x1a   : > { %v236_v3 = vld [vmem:[%s4975_s5 + $0x200] sm:$0xff]  ;;  %4512 = vmatmul.msk.f32.vlgmr.msra.gmra.mxu0 %vm434_vm1, %v172_v2  ;;  %v237_v7 = vld [vmem:[%s4975_s5 + $0x208] sm:$0xff]  ;;  %v238_v11 = vld [vmem:[%s4975_s5 + $0x210] sm:$0xff]  ;;  %s4850_s25 = scalar_lea.hbm %s8511_s3, 4096 }
  0x1b   : > { %v300_v4 = vld [vmem:[%s4975_s5 + $0x400] sm:$0xff]  ;;  %4576 = vmatmul.msk.f32.vlgmr.msra.gmra.mxu1 %vm434_vm1, %v236_v3  ;;  %v301_v8 = vld [vmem:[%s4975_s5 + $0x408] sm:$0xff]  ;;  %v302_v12 = vld [vmem:[%s4975_s5 + $0x410] sm:$0xff] }
  0x1c   : > { %v364_v5 = vld [vmem:[%s4975_s5 + $0x600] sm:$0xff]  ;;  %4640 = vmatmul.msk.f32.vlgmr.msra.gmra.mxu2 %vm434_vm1, %v300_v4  ;;  %v365_v9 = vld [vmem:[%s4975_s5 + $0x608] sm:$0xff]  ;;  %v366_v13 = vld [vmem:[%s4975_s5 + $0x610] sm:$0xff] }
  0x1d   : > { %4704 = vmatmul.msk.f32.vlgmr.msra.gmra.mxu3 %vm434_vm1, %v364_v5  ;;  %v175_v14 = vld [vmem:[%s4975_s5 + $0x18] sm:$0xff]  ;;  %v176_v18 = vld [vmem:[%s4975_s5 + $0x20] sm:$0xff]  ;;  %v177_v22 = vld [vmem:[%s4975_s5 + $0x28] sm:$0xff] }
  0x1e   : > { %v239_v15 = vld [vmem:[%s4975_s5 + $0x218] sm:$0xff]  ;;  %v240_v19 = vld [vmem:[%s4975_s5 + $0x220] sm:$0xff]  ;;  %v241_v23 = vld [vmem:[%s4975_s5 + $0x228] sm:$0xff] }
  0x1f   : > { %v303_v16 = vld [vmem:[%s4975_s5 + $0x418] sm:$0xff]  ;;  %v304_v20 = vld [vmem:[%s4975_s5 + $0x420] sm:$0xff]  ;;  %v305_v24 = vld [vmem:[%s4975_s5 + $0x428] sm:$0xff] }
  0x20   : > { %v367_v17 = vld [vmem:[%s4975_s5 + $0x618] sm:$0xff]  ;;  %v368_v21 = vld [vmem:[%s4975_s5 + $0x620] sm:$0xff]  ;;  %v369_v25 = vld [vmem:[%s4975_s5 + $0x628] sm:$0xff] }
  0x21   : > { %v178_v26 = vld [vmem:[%s4975_s5 + $0x30] sm:$0xff]  ;;  %v179_v30 = vld [vmem:[%s4975_s5 + $0x38] sm:$0xff]  ;;  %v180_v34 = vld [vmem:[%s4975_s5 + $0x40] sm:$0xff] }
  0x22   : > { %4513 = vmatmul.msk.f32.gmra.mxu0 %vm434_vm1, %v173_v6  ;;  %v242_v27 = vld [vmem:[%s4975_s5 + $0x230] sm:$0xff]  ;;  %v243_v31 = vld [vmem:[%s4975_s5 + $0x238] sm:$0xff]  ;;  %v244_v35 = vld [vmem:[%s4975_s5 + $0x240] sm:$0xff] }
  0x23   : > { %4577 = vmatmul.msk.f32.gmra.mxu1 %vm434_vm1, %v237_v7  ;;  %v306_v28 = vld [vmem:[%s4975_s5 + $0x430] sm:$0xff]  ;;  %v307_v32 = vld [vmem:[%s4975_s5 + $0x438] sm:$0xff]  ;;  %v308_v36 = vld [vmem:[%s4975_s5 + $0x440] sm:$0xff] }
  0x24   : > { %4641 = vmatmul.msk.f32.gmra.mxu2 %vm434_vm1, %v301_v8  ;;  %v370_v29 = vld [vmem:[%s4975_s5 + $0x630] sm:$0xff]  ;;  %v371_v33 = vld [vmem:[%s4975_s5 + $0x638] sm:$0xff]  ;;  %v372_v37 = vld [vmem:[%s4975_s5 + $0x640] sm:$0xff] }
  0x25   : > { %4705 = vmatmul.msk.f32.gmra.mxu3 %vm434_vm1, %v365_v9  ;;  %v181_v38 = vld [vmem:[%s4975_s5 + $0x48] sm:$0xff]  ;;  %v182_v42 = vld [vmem:[%s4975_s5 + $0x50] sm:$0xff]  ;;  %v183_v46 = vld [vmem:[%s4975_s5 + $0x58] sm:$0xff] }
  0x26   : > { %v245_v39 = vld [vmem:[%s4975_s5 + $0x248] sm:$0xff]  ;;  %v246_v43 = vld [vmem:[%s4975_s5 + $0x250] sm:$0xff]  ;;  %v247_v47 = vld [vmem:[%s4975_s5 + $0x258] sm:$0xff] }
  0x27   : > { %v309_v40 = vld [vmem:[%s4975_s5 + $0x448] sm:$0xff]  ;;  %v310_v44 = vld [vmem:[%s4975_s5 + $0x450] sm:$0xff]  ;;  %v311_v48 = vld [vmem:[%s4975_s5 + $0x458] sm:$0xff] }
  0x28   : > { %v373_v41 = vld [vmem:[%s4975_s5 + $0x648] sm:$0xff]  ;;  %v374_v45 = vld [vmem:[%s4975_s5 + $0x650] sm:$0xff]  ;;  %v375_v49 = vld [vmem:[%s4975_s5 + $0x658] sm:$0xff] }
  0x29   : > { %v184_v50 = vld [vmem:[%s4975_s5 + $0x60] sm:$0xff]  ;;  %v185_v54 = vld [vmem:[%s4975_s5 + $0x68] sm:$0xff]  ;;  %v186_v58 = vld [vmem:[%s4975_s5 + $0x70] sm:$0xff] }
  0x2a   : > { %4514 = vmatmul.msk.f32.gmra.mxu0 %vm434_vm1, %v174_v10  ;;  %v248_v51 = vld [vmem:[%s4975_s5 + $0x260] sm:$0xff]  ;;  %v249_v55 = vld [vmem:[%s4975_s5 + $0x268] sm:$0xff]  ;;  %v250_v59 = vld [vmem:[%s4975_s5 + $0x270] sm:$0xff] }
  0x2b   : > { %4578 = vmatmul.msk.f32.gmra.mxu1 %vm434_vm1, %v238_v11  ;;  %v312_v52 = vld [vmem:[%s4975_s5 + $0x460] sm:$0xff]  ;;  %v313_v56 = vld [vmem:[%s4975_s5 + $0x468] sm:$0xff]  ;;  %v314_v60 = vld [vmem:[%s4975_s5 + $0x470] sm:$0xff] }
  0x2c   : > { %4642 = vmatmul.msk.f32.gmra.mxu2 %vm434_vm1, %v302_v12  ;;  %v376_v53 = vld [vmem:[%s4975_s5 + $0x660] sm:$0xff]  ;;  %v377_v57 = vld [vmem:[%s4975_s5 + $0x668] sm:$0xff]  ;;  %v378_v61 = vld [vmem:[%s4975_s5 + $0x670] sm:$0xff] }
  0x2d   : > { %4706 = vmatmul.msk.f32.gmra.mxu3 %vm434_vm1, %v366_v13  ;;  %v187_v62 = vld [vmem:[%s4975_s5 + $0x78] sm:$0xff]  ;;  %v188_v4 = vld [vmem:[%s4975_s5 + $0x80] sm:$0xff] }
  0x2e   : > { %v251_v63 = vld [vmem:[%s4975_s5 + $0x278] sm:$0xff]  ;;  %v252_v5 = vld [vmem:[%s4975_s5 + $0x280] sm:$0xff] }
  0x2f   : > { %v315_v0 = vld [vmem:[%s4975_s5 + $0x478] sm:$0xff]  ;;  %v5110_v6 = vld [vmem:[%s8510_s2] ss:$0 sm:$0xff] }
  0x30   : > { %v379_v1 = vld [vmem:[%s4975_s5 + $0x678] sm:$0xff]  ;;  %v316_v7 = vld [vmem:[%s4975_s5 + $0x480] sm:$0xff] }
  0x31   : > { %v380_v8 = vld [vmem:[%s4975_s5 + $0x680] sm:$0xff] }
  0x32   : > { %4515 = vmatmul.msk.f32.gmra.mxu0 %vm434_vm1, %v175_v14 }
  0x33   : > { %4579 = vmatmul.msk.f32.gmra.mxu1 %vm434_vm1, %v239_v15  ;;  %v189_v15 = vld [vmem:[%s4975_s5 + $0x88] sm:$0xff] }
  0x34   : > { %4643 = vmatmul.msk.f32.gmra.mxu2 %vm434_vm1, %v303_v16  ;;  %v253_v16 = vld [vmem:[%s4975_s5 + $0x288] sm:$0xff] }
  0x35   : > { %4707 = vmatmul.msk.f32.gmra.mxu3 %vm434_vm1, %v367_v17 }
  0x3a   : > { %4516 = vmatmul.msk.f32.gmra.mxu0 %vm434_vm1, %v176_v18 }
  0x3b   : > { %4580 = vmatmul.msk.f32.gmra.mxu1 %vm434_vm1, %v240_v19 }
  0x3c   : > { %4644 = vmatmul.msk.f32.gmra.mxu2 %vm434_vm1, %v304_v20 }
  0x3d   : > { %4708 = vmatmul.msk.f32.gmra.mxu3 %vm434_vm1, %v368_v21  ;;  %v317_v21 = vld [vmem:[%s4975_s5 + $0x488] sm:$0xff] }
  0x42   : > { %4517 = vmatmul.msk.f32.gmra.mxu0 %vm434_vm1, %v177_v22  ;;  %v381_v22 = vld [vmem:[%s4975_s5 + $0x688] sm:$0xff] }
  0x43   : > { %4581 = vmatmul.msk.f32.gmra.mxu1 %vm434_vm1, %v241_v23 }
  0x44   : > { %4645 = vmatmul.msk.f32.gmra.mxu2 %vm434_vm1, %v305_v24 }
  0x45   : > { %4709 = vmatmul.msk.f32.gmra.mxu3 %vm434_vm1, %v369_v25 }
  0x4a   : > { %4518 = vmatmul.msk.f32.gmra.mxu0 %vm434_vm1, %v178_v26 }
  0x4b   : > { %4582 = vmatmul.msk.f32.gmra.mxu1 %vm434_vm1, %v242_v27 }
  0x4c   : > { %4646 = vmatmul.msk.f32.gmra.mxu2 %vm434_vm1, %v306_v28 }
  0x4d   : > { %4710 = vmatmul.msk.f32.gmra.mxu3 %vm434_vm1, %v370_v29 }
  0x52   : > { %4519 = vmatmul.msk.f32.gmra.mxu0 %vm434_vm1, %v179_v30 }
  0x53   : > { %4583 = vmatmul.msk.f32.gmra.mxu1 %vm434_vm1, %v243_v31 }
  0x54   : > { %4647 = vmatmul.msk.f32.gmra.mxu2 %vm434_vm1, %v307_v32 }
  0x55   : > { %4711 = vmatmul.msk.f32.gmra.mxu3 %vm434_vm1, %v371_v33 }
  0x5a   : > { %4520 = vmatmul.msk.f32.gmra.mxu0 %vm434_vm1, %v180_v34 }
  0x5b   : > { %4584 = vmatmul.msk.f32.gmra.mxu1 %vm434_vm1, %v244_v35 }
  0x5c   : > { %4648 = vmatmul.msk.f32.gmra.mxu2 %vm434_vm1, %v308_v36 }
  0x5d   : > { %4712 = vmatmul.msk.f32.gmra.mxu3 %vm434_vm1, %v372_v37 }
  0x62   : > { %4521 = vmatmul.msk.f32.gmra.mxu0 %vm434_vm1, %v181_v38 }
  0x63   : > { %4585 = vmatmul.msk.f32.gmra.mxu1 %vm434_vm1, %v245_v39 }
  0x64   : > { %4649 = vmatmul.msk.f32.gmra.mxu2 %vm434_vm1, %v309_v40 }
  0x65   : > { %4713 = vmatmul.msk.f32.gmra.mxu3 %vm434_vm1, %v373_v41 }
  0x6a   : > { %4522 = vmatmul.msk.f32.gmra.mxu0 %vm434_vm1, %v182_v42 }
  0x6b   : > { %4586 = vmatmul.msk.f32.gmra.mxu1 %vm434_vm1, %v246_v43  ;;  %v190_v43 = vld [vmem:[%s4975_s5 + $0x90] sm:$0xff] }
  0x6c   : > { %4650 = vmatmul.msk.f32.gmra.mxu2 %vm434_vm1, %v310_v44  ;;  %v254_v44 = vld [vmem:[%s4975_s5 + $0x290] sm:$0xff] }
  0x6d   : > { %4714 = vmatmul.msk.f32.gmra.mxu3 %vm434_vm1, %v374_v45  ;;  %v318_v45 = vld [vmem:[%s4975_s5 + $0x490] sm:$0xff] }
  0x72   : > { %4523 = vmatmul.msk.f32.gmra.mxu0 %vm434_vm1, %v183_v46  ;;  %v382_v46 = vld [vmem:[%s4975_s5 + $0x690] sm:$0xff] }
  0x73   : > { %4587 = vmatmul.msk.f32.gmra.mxu1 %vm434_vm1, %v247_v47 }
  0x74   : > { %4651 = vmatmul.msk.f32.gmra.mxu2 %vm434_vm1, %v311_v48 }
  0x75   : > { %4715 = vmatmul.msk.f32.gmra.mxu3 %vm434_vm1, %v375_v49 }
  0x7a   : > { %4524 = vmatmul.msk.f32.gmra.mxu0 %vm434_vm1, %v184_v50 }
  0x7b   : > { %4588 = vmatmul.msk.f32.gmra.mxu1 %vm434_vm1, %v248_v51 }
  0x7c   : > { %4652 = vmatmul.msk.f32.gmra.mxu2 %vm434_vm1, %v312_v52 }
  0x7d   : > { %4716 = vmatmul.msk.f32.gmra.mxu3 %vm434_vm1, %v376_v53 }
  0x82   : > { %4525 = vmatmul.msk.f32.gmra.mxu0 %vm434_vm1, %v185_v54 }
  0x83   : > { %4589 = vmatmul.msk.f32.gmra.mxu1 %vm434_vm1, %v249_v55 }
  0x84   : > { %4653 = vmatmul.msk.f32.gmra.mxu2 %vm434_vm1, %v313_v56 }
  0x85   : > { %4717 = vmatmul.msk.f32.gmra.mxu3 %vm434_vm1, %v377_v57 }
  0x8a   : > { %4526 = vmatmul.msk.f32.gmra.mxu0 %vm434_vm1, %v186_v58 }
  0x8b   : > { %4590 = vmatmul.msk.f32.gmra.mxu1 %vm434_vm1, %v250_v59 }
  0x8c   : > { %4654 = vmatmul.msk.f32.gmra.mxu2 %vm434_vm1, %v314_v60 }
  0x8d   : > { %4718 = vmatmul.msk.f32.gmra.mxu3 %vm434_vm1, %v378_v61 }
  0x92   : > { %4527 = vmatmul.msk.f32.gmra.mxu0 %vm434_vm1, %v187_v62 }
  0x93   : > { %4591 = vmatmul.msk.f32.gmra.mxu1 %vm434_vm1, %v251_v63 }
  0x94   : > { %4655 = vmatmul.msk.f32.gmra.mxu2 %vm434_vm1, %v315_v0 }
  0x95   : > { %4719 = vmatmul.msk.f32.gmra.mxu3 %vm434_vm1, %v379_v1 }
  0x97   : > { %v1224_v2 = vpop.f32.mrf.mxu0 }
  0x98   : > { %v1416_v3 = vpop.f32.mrf.mxu1  ;;  %v5119_v9 = vadd.f32 %v5110_v6, %v1224_v2 }
  0x99   : > { %v5122_v10 = vadd.f32 %v5110_v6, %v1416_v3 }
  0x9a   : > { %4528 = vmatmul.msk.f32.gmra.mxu0 %vm434_vm1, %v188_v4  ;;  %v8535_v17 = vmax.f32 %v5119_v9, 0.0 }
  0x9b   : > { %4592 = vmatmul.msk.f32.gmra.mxu1 %vm434_vm1, %v252_v5  ;;  %v8547_v18 = vmax.f32 %v5122_v10, 0.0 }
  0x9c   : > { %4656 = vmatmul.msk.f32.gmra.mxu2 %vm434_vm1, %v316_v7  ;;  %v2249_v27 = vsel %vm2248_vm2, %v8535_v17, -inf  ;;  %v388_v17 = vld [vmem:[%s4975_s5 + $0x6c0] sm:$0xff] }
  0x9d   : > { %4720 = vmatmul.msk.f32.gmra.mxu3 %vm434_vm1, %v380_v8  ;;  %v2537_v28 = vsel %vm2248_vm2, %v8547_v18, -inf  ;;  %v390_v18 = vld [vmem:[%s4975_s5 + $0x6d0] sm:$0xff] }
  0x9f   : > { %v1608_v11 = vpop.f32.mrf.mxu2  ;;  %v1227_v13 = vpop.f32.mrf.mxu0 }
  0xa0   : > { %v1800_v12 = vpop.f32.mrf.mxu3  ;;  %v1419_v14 = vpop.f32.mrf.mxu1  ;;  %v5129_v19 = vadd.f32 %v5110_v6, %v1227_v13  ;;  %v5137_v23 = vadd.f32 %v5110_v6, %v1608_v11  ;;  %v191_v11 = vld [vmem:[%s4975_s5 + $0x98] sm:$0xff] }
  0xa1   : > { %v5132_v20 = vadd.f32 %v5110_v6, %v1419_v14  ;;  %v5140_v24 = vadd.f32 %v5110_v6, %v1800_v12  ;;  %v255_v12 = vld [vmem:[%s4975_s5 + $0x298] sm:$0xff] }
  0xa2   : > { %v8534_v25 = vmax.f32 %v5129_v19, 0.0  ;;  %4529 = vmatmul.msk.f32.gmra.mxu0 %vm434_vm1, %v189_v15  ;;  %v8533_v33 = vmax.f32 %v5137_v23, 0.0 }
  0xa3   : > { %v8546_v26 = vmax.f32 %v5132_v20, 0.0  ;;  %4593 = vmatmul.msk.f32.gmra.mxu1 %vm434_vm1, %v253_v16  ;;  %v8531_v34 = vmax.f32 %v5140_v24, 0.0 }
  0xa4   : > { %4657 = vmatmul.msk.f32.gmra.mxu2 %vm434_vm1, %v317_v21  ;;  %v2250_v29 = vsel %vm2248_vm2, %v8534_v25, -inf  ;;  %v2825_v51 = vsel %vm2248_vm2, %v8533_v33, -inf  ;;  %v324_v25 = vld [vmem:[%s4975_s5 + $0x4c0] sm:$0xff] }
  0xa5   : > { %4721 = vmatmul.msk.f32.gmra.mxu3 %vm434_vm1, %v381_v22  ;;  %v2538_v30 = vsel %vm2248_vm2, %v8546_v26, -inf  ;;  %v2251_v31 = vmax.f32 %v2249_v27, %v2250_v29  ;;  %v3113_v52 = vsel %vm2248_vm2, %v8531_v34, -inf  ;;  %v319_v22 = vld [vmem:[%s4975_s5 + $0x498] sm:$0xff] }
  0xa6   : > { %v2539_v32 = vmax.f32 %v2537_v28, %v2538_v30  ;;  %v383_v27 = vld [vmem:[%s4975_s5 + $0x698] sm:$0xff] }
  0xa7   : > { %v1611_v35 = vpop.f32.mrf.mxu2  ;;  %v2252_v37 = vrot.slane %v2251_v31, 4  ;;  %v1230_v41 = vpop.f32.mrf.mxu0 }
  0xa8   : > { %v1803_v36 = vpop.f32.mrf.mxu3  ;;  %v2540_v38 = vrot.slane %v2539_v32, 4  ;;  %v5163_v39 = vadd.f32 %v5110_v6, %v1611_v35  ;;  %v1422_v42 = vpop.f32.mrf.mxu1  ;;  %v5181_v53 = vadd.f32 %v5110_v6, %v1230_v41 }
  0xa9   : > { %v5166_v40 = vadd.f32 %v5110_v6, %v1803_v36  ;;  %v2253_v50 = vmax.f32 %v2251_v31, %v2252_v37  ;;  %v5184_v54 = vadd.f32 %v5110_v6, %v1422_v42 }
  0xaa   : > { %v8532_v47 = vmax.f32 %v5163_v39, 0.0  ;;  %v2541_v49 = vmax.f32 %v2539_v32, %v2540_v38  ;;  %4530 = vmatmul.msk.f32.gmra.mxu0 %vm434_vm1, %v190_v43  ;;  %v8523_v1 = vmax.f32 %v5181_v53, 0.0 }
  0xab   : > { %v8530_v48 = vmax.f32 %v5166_v40, 0.0  ;;  %4594 = vmatmul.msk.f32.gmra.mxu1 %vm434_vm1, %v254_v44  ;;  %v2254_v58 = vrot.slane %v2253_v50, 2  ;;  %v8517_v4 = vmax.f32 %v5184_v54, 0.0 }
  0xac   : > { %v2826_v55 = vsel %vm2248_vm2, %v8532_v47, -inf  ;;  %4658 = vmatmul.msk.f32.gmra.mxu2 %vm434_vm1, %v318_v45  ;;  %v2542_v57 = vrot.slane %v2541_v49, 2  ;;  %v2258_v38 = vsel %vm2248_vm2, %v8523_v1, -inf  ;;  %v387_v1 = vld [vmem:[%s4975_s5 + $0x6b8] sm:$0xff] }
  0xad   : > { %v3114_v56 = vsel %vm2248_vm2, %v8530_v48, -inf  ;;  %4722 = vmatmul.msk.f32.gmra.mxu3 %vm434_vm1, %v382_v46  ;;  %v2827_v59 = vmax.f32 %v2825_v51, %v2826_v55  ;;  %v2255_v62 = vmax.f32 %v2253_v50, %v2254_v58  ;;  %v2546_v41 = vsel %vm2248_vm2, %v8517_v4, -inf }
  0xae   : > { %v3115_v60 = vmax.f32 %v3113_v52, %v3114_v56  ;;  %v2543_v61 = vmax.f32 %v2541_v49, %v2542_v57 }
  0xaf   : > { %v2828_v63 = vrot.slane %v2827_v59, 4  ;;  %v1614_v2 = vpop.f32.mrf.mxu2  ;;  %v1233_v7 = vpop.f32.mrf.mxu0  ;;  %v2256_v14 = vrot.slane %v2255_v62, 1 }
  0xb0   : > { %v3116_v0 = vrot.slane %v3115_v60, 4  ;;  %v1806_v3 = vpop.f32.mrf.mxu3  ;;  %v5199_v5 = vadd.f32 %v5110_v6, %v1614_v2  ;;  %v1425_v8 = vpop.f32.mrf.mxu1  ;;  %v2544_v13 = vrot.slane %v2543_v61, 1  ;;  %v5204_v16 = vadd.f32 %v5110_v6, %v1233_v7  ;;  %v256_v7 = vld [vmem:[%s4975_s5 + $0x2a0] sm:$0xff] }
  0xb1   : > { %v5207_v21 = vadd.f32 %v5110_v6, %v1425_v8  ;;  %v2829_v28 = vmax.f32 %v2827_v59, %v2828_v63  ;;  %v5212_v29 = vadd.f32 %v5110_v6, %v1806_v3  ;;  %v2257_v31 = vmax.f32 %v2255_v62, %v2256_v14  ;;  %v320_v8 = vld [vmem:[%s4975_s5 + $0x4a0] sm:$0xff] }
  0xb2   : > { %v3117_v15 = vmax.f32 %v3115_v60, %v3116_v0  ;;  %v2545_v30 = vmax.f32 %v2543_v61, %v2544_v13  ;;  %v8522_v32 = vmax.f32 %v5204_v16, 0.0  ;;  %4531 = vmatmul.msk.f32.gmra.mxu0 %vm434_vm1, %v191_v11  ;;  %v8545_v42 = vmax.f32 %v5199_v5, 0.0  ;;  %v192_v0 = vld [vmem:[%s4975_s5 + $0xa0] sm:$0xff] }
  0xb3   : > { %v8516_v35 = vmax.f32 %v5207_v21, 0.0  ;;  %4595 = vmatmul.msk.f32.gmra.mxu1 %vm434_vm1, %v255_v12  ;;  %v2830_v36 = vrot.slane %v2829_v28, 2  ;;  %3529 = vrot.lane.b32.xlu0 %v2257_v31, %s4894_s8  ;;  %v8519_v51 = vmax.f32 %v5212_v29, 0.0 }
  0xb4   : > { %v3118_v37 = vrot.slane %v3117_v15, 2  ;;  %4659 = vmatmul.msk.f32.gmra.mxu2 %vm434_vm1, %v319_v22  ;;  %v2259_v43 = vsel %vm2248_vm2, %v8522_v32, -inf  ;;  %3593 = vrot.lane.b32.xlu2 %v2545_v30, %s4894_s8  ;;  %v2834_v2 = vsel %vm2248_vm2, %v8545_v42, -inf  ;;  %v323_v32 = vld [vmem:[%s4975_s5 + $0x4b8] sm:$0xff] }
  0xb5   : > { %4723 = vmatmul.msk.f32.gmra.mxu3 %vm434_vm1, %v383_v27  ;;  %v2547_v44 = vsel %vm2248_vm2, %v8516_v35, -inf  ;;  %v2831_v45 = vmax.f32 %v2829_v28, %v2830_v36  ;;  %v2260_v49 = vmax.f32 %v2258_v38, %v2259_v43  ;;  %v3122_v22 = vsel %vm2248_vm2, %v8519_v51, -inf  ;;  %v386_v51 = vld [vmem:[%s4975_s5 + $0x6b0] sm:$0xff] }
  0xb6   : > { %v3119_v46 = vmax.f32 %v3117_v15, %v3118_v37  ;;  %v2548_v50 = vmax.f32 %v2546_v41, %v2547_v44  ;;  %v384_v15 = vld [vmem:[%s4975_s5 + $0x6a0] sm:$0xff] }
  0xb7   : > { %v1617_v52 = vpop.f32.mrf.mxu2  ;;  %v2832_v56 = vrot.slane %v2831_v45, 1  ;;  %v2261_v58 = vrot.slane %v2260_v49, 4  ;;  %v1236_v62 = vpop.f32.mrf.mxu0 }
  0xb8   : > { %v1809_v55 = vpop.f32.mrf.mxu3  ;;  %v3120_v57 = vrot.slane %v3119_v46, 1  ;;  %v2549_v59 = vrot.slane %v2548_v50, 4  ;;  %v5237_v60 = vadd.f32 %v5110_v6, %v1617_v52  ;;  %v1428_v63 = vpop.f32.mrf.mxu1  ;;  %v5255_v27 = vadd.f32 %v5110_v6, %v1236_v62 }
  0xb9   : > { %v5240_v61 = vadd.f32 %v5110_v6, %v1809_v55  ;;  %v2833_v3 = vmax.f32 %v2831_v45, %v2832_v56  ;;  %v2262_v11 = vmax.f32 %v2260_v49, %v2261_v58  ;;  %v5258_v28 = vadd.f32 %v5110_v6, %v1428_v63  ;;  %v193_v58 = vld [vmem:[%s4975_s5 + $0xa8] sm:$0xff] }
  0xba   : > { %v2550_v12 = vmax.f32 %v2548_v50, %v2549_v59  ;;  %v8540_v13 = vmax.f32 %v5237_v60, 0.0  ;;  %4532 = vmatmul.msk.f32.gmra.mxu0 %vm434_vm1, %v192_v0  ;;  %v3121_v30 = vmax.f32 %v3119_v46, %v3120_v57  ;;  %v8515_v52 = vmax.f32 %v5255_v27, 0.0 }
  0xbb   : > { %v8518_v14 = vmax.f32 %v5240_v61, 0.0  ;;  %3657 = vrot.lane.b32.xlu1 %v2833_v3, %s4894_s8  ;;  %4596 = vmatmul.msk.f32.gmra.mxu1 %vm434_vm1, %v256_v7  ;;  %v2263_v37 = vrot.slane %v2262_v11, 2  ;;  %v8512_v55 = vmax.f32 %v5258_v28, 0.0  ;;  %v257_v7 = vld [vmem:[%s4975_s5 + $0x2a8] sm:$0xff] }
  0xbc   : > { %v2835_v31 = vsel %vm2248_vm2, %v8540_v13, -inf  ;;  %4660 = vmatmul.msk.f32.gmra.mxu2 %vm434_vm1, %v320_v8  ;;  %v2551_v38 = vrot.slane %v2550_v12, 2  ;;  %3721 = vrot.lane.b32.xlu0 %v3121_v30, %s4894_s8  ;;  %v321_v8 = vld [vmem:[%s4975_s5 + $0x4a8] sm:$0xff] }
  0xbd   : > { %v3123_v36 = vsel %vm2248_vm2, %v8518_v14, -inf  ;;  %v2836_v41 = vmax.f32 %v2834_v2, %v2835_v31  ;;  %4724 = vmatmul.msk.f32.gmra.mxu3 %vm434_vm1, %v384_v15  ;;  %v2264_v44 = vmax.f32 %v2262_v11, %v2263_v37  ;;  %v322_v14 = vld [vmem:[%s4975_s5 + $0x4b0] sm:$0xff] }
  0xbe   : > { %v3124_v43 = vmax.f32 %v3122_v22, %v3123_v36  ;;  %v2552_v62 = vmax.f32 %v2550_v12, %v2551_v38  ;;  %v385_v22 = vld [vmem:[%s4975_s5 + $0x6a8] sm:$0xff]  ;;  %v2267_v38 = vsel %vm2248_vm2, %v8515_v52, -inf }
  0xbf   : > { %v2837_v45 = vrot.slane %v2836_v41, 4  ;;  %v1620_v49 = vpop.f32.mrf.mxu2  ;;  %v1239_v56 = vpop.f32.mrf.mxu0  ;;  %v2265_v59 = vrot.slane %v2264_v44, 1 }
  0xc0   : > { %v3125_v46 = vrot.slane %v3124_v43, 4  ;;  %v1812_v50 = vpop.f32.mrf.mxu3  ;;  %v1431_v57 = vpop.f32.mrf.mxu1  ;;  %v5276_v2 = vadd.f32 %v5110_v6, %v1239_v56  ;;  %v5284_v11 = vadd.f32 %v5110_v6, %v1620_v49 }
  0xc1   : > { %v2838_v63 = vmax.f32 %v2836_v41, %v2837_v45  ;;  %v5279_v3 = vadd.f32 %v5110_v6, %v1431_v57  ;;  %v5287_v15 = vadd.f32 %v5110_v6, %v1812_v50  ;;  %v2266_v30 = vmax.f32 %v2264_v44, %v2265_v59 }
  0xc2   : > { %v3126_v0 = vmax.f32 %v3124_v43, %v3125_v46  ;;  %v8514_v12 = vmax.f32 %v5276_v2, 0.0  ;;  %4533 = vmatmul.msk.f32.gmra.mxu0 %vm434_vm1, %v193_v58  ;;  %v2555_v41 = vsel %vm2248_vm2, %v8512_v55, -inf  ;;  %v2553_v43 = vrot.slane %v2552_v62, 1 }
  0xc3   : > { %v8513_v31 = vmax.f32 %v5279_v3, 0.0  ;;  %v2839_v37 = vrot.slane %v2838_v63, 2  ;;  %4597 = vmatmul.msk.f32.gmra.mxu1 %vm434_vm1, %v257_v7  ;;  %v8521_v57 = vmax.f32 %v5284_v11, 0.0  ;;  %v8528_v58 = vmax.f32 %v5287_v15, 0.0 }
  0xc4   : > { %v3127_v36 = vrot.slane %v3126_v0, 2  ;;  %4661 = vmatmul.msk.f32.gmra.mxu2 %vm434_vm1, %v321_v8  ;;  %v2268_v44 = vsel %vm2248_vm2, %v8514_v12, -inf  ;;  %3531 = vrot.lane.b32.xlu0 %v2266_v30, %s4894_s8 }
  0xc5   : > { %v2556_v45 = vsel %vm2248_vm2, %v8513_v31, -inf  ;;  %4725 = vmatmul.msk.f32.gmra.mxu3 %vm434_vm1, %v385_v22  ;;  %v2840_v49 = vmax.f32 %v2838_v63, %v2839_v37  ;;  %v2269_v50 = vmax.f32 %v2267_v38, %v2268_v44  ;;  %v258_v44 = vld [vmem:[%s4975_s5 + $0x2b0] sm:$0xff] }
  0xc6   : > { %v3128_v46 = vmax.f32 %v3126_v0, %v3127_v36  ;;  %v2557_v56 = vmax.f32 %v2555_v41, %v2556_v45  ;;  %v194_v41 = vld [vmem:[%s4975_s5 + $0xb0] sm:$0xff]  ;;  %v2554_v45 = vmax.f32 %v2552_v62, %v2553_v43 }
  0xc7   : > { %v1623_v59 = vpop.f32.mrf.mxu2  ;;  %v2841_v55 = vrot.slane %v2840_v49, 1  ;;  %v2270_v31 = vrot.slane %v2269_v50, 4  ;;  %v1242_v0 = vpop.f32.mrf.mxu0 }
  0xc8   : > { %v1815_v7 = vpop.f32.mrf.mxu3  ;;  %v3129_v8 = vrot.slane %v3128_v46, 1  ;;  %v2558_v22 = vrot.slane %v2557_v56, 4  ;;  %v5312_v30 = vadd.f32 %v5110_v6, %v1623_v59  ;;  %v1434_v36 = vpop.f32.mrf.mxu1  ;;  %v2843_v59 = vsel %vm2248_vm2, %v8521_v57, -inf }
  0xc9   : > { %v5315_v63 = vadd.f32 %v5110_v6, %v1815_v7  ;;  %v2842_v38 = vmax.f32 %v2840_v49, %v2841_v55  ;;  %v2271_v12 = vmax.f32 %v2269_v50, %v2270_v31  ;;  %v5330_v55 = vadd.f32 %v5110_v6, %v1242_v0 }
  0xca   : > { %v3130_v37 = vmax.f32 %v3128_v46, %v3129_v8  ;;  %v2559_v52 = vmax.f32 %v2557_v56, %v2558_v22  ;;  %v8520_v35 = vmax.f32 %v5312_v30, 0.0  ;;  %v3131_v46 = vsel %vm2248_vm2, %v8528_v58, -inf  ;;  %4534 = vmatmul.msk.f32.gmra.mxu0 %vm434_vm1, %v194_v41 }
  0xcb   : > { %v8524_v4 = vmax.f32 %v5315_v63, 0.0  ;;  %v5333_v62 = vadd.f32 %v5110_v6, %v1434_v36  ;;  %3659 = vrot.lane.b32.xlu2 %v2842_v38, %s4894_s8  ;;  %4598 = vmatmul.msk.f32.gmra.mxu1 %vm434_vm1, %v258_v44  ;;  %v2272_v49 = vrot.slane %v2271_v12, 2  ;;  %v8525_v38 = vmax.f32 %v5330_v55, 0.0 }
  0xcc   : > { %3723 = vrot.lane.b32.xlu1 %v3130_v37, %s4894_s8  ;;  %v2844_v31 = vsel %vm2248_vm2, %v8520_v35, -inf  ;;  %v2560_v50 = vrot.slane %v2559_v52, 2  ;;  %4662 = vmatmul.msk.f32.gmra.mxu2 %vm434_vm1, %v322_v14 }
  0xcd   : > { %v3132_v43 = vsel %vm2248_vm2, %v8524_v4, -inf  ;;  %v2845_v56 = vmax.f32 %v2843_v59, %v2844_v31  ;;  %4726 = vmatmul.msk.f32.gmra.mxu3 %vm434_vm1, %v386_v51  ;;  %3595 = vrot.lane.b32.xlu0 %v2554_v45, %s4894_s8  ;;  %v2273_v8 = vmax.f32 %v2271_v12, %v2272_v49  ;;  %v8527_v41 = vmax.f32 %v5333_v62, 0.0  ;;  %v259_v49 = vld [vmem:[%s4975_s5 + $0x2b8] sm:$0xff] }
  0xce   : > { %v3133_v7 = vmax.f32 %v3131_v46, %v3132_v43  ;;  %v2561_v46 = vmax.f32 %v2559_v52, %v2560_v50  ;;  %v195_v43 = vld [vmem:[%s4975_s5 + $0xb8] sm:$0xff] }
  0xcf   : > { %v2846_v22 = vrot.slane %v2845_v56, 4  ;;  %v1626_v36 = vpop.f32.mrf.mxu2  ;;  %v1245_v44 = vpop.f32.mrf.mxu0  ;;  %v2274_v14 = vrot.slane %v2273_v8, 1 }
  0xd0   : > { %v3134_v0 = vrot.slane %v3133_v7, 4  ;;  %v1818_v37 = vpop.f32.mrf.mxu3  ;;  %v1437_v59 = vpop.f32.mrf.mxu1  ;;  %v5351_v45 = vadd.f32 %v5110_v6, %v1245_v44  ;;  %v5359_v35 = vadd.f32 %v5110_v6, %v1626_v36  ;;  %v2562_v36 = vrot.slane %v2561_v46, 1 }
  0xd1   : > { %v2847_v51 = vmax.f32 %v2845_v56, %v2846_v22  ;;  %v5354_v12 = vadd.f32 %v5110_v6, %v1437_v59  ;;  %v5362_v57 = vadd.f32 %v5110_v6, %v1818_v37  ;;  %v2275_v4 = vmax.f32 %v2273_v8, %v2274_v14 }
  0xd2   : > { %v3135_v31 = vmax.f32 %v3133_v7, %v3134_v0  ;;  %8800 = vst [vmem:[#allocation5_spill] sm:$0xff] %v5359_v35  ;;  %v8526_v52 = vmax.f32 %v5351_v45, 0.0  ;;  %v2276_v22 = vsel %vm2248_vm2, %v8525_v38, -inf  ;;  %v2564_v0 = vsel %vm2248_vm2, %v8527_v41, -inf  ;;  %4535 = vmatmul.msk.f32.gmra.mxu0 %vm434_vm1, %v195_v43 }
  0xd3   : > { %v8529_v50 = vmax.f32 %v5354_v12, 0.0  ;;  %v2848_v7 = vrot.slane %v2847_v51, 2  ;;  %4599 = vmatmul.msk.f32.gmra.mxu1 %vm434_vm1, %v259_v49  ;;  %v8537_v43 = vmax.f32 %v5359_v35, 0.0  ;;  %v8539_v49 = vmax.f32 %v5362_v57, 0.0 }
  0xd4   : > { %v3136_v56 = vrot.slane %v3135_v31, 2  ;;  %v2277_v8 = vsel %vm2248_vm2, %v8526_v52, -inf  ;;  %4663 = vmatmul.msk.f32.gmra.mxu2 %vm434_vm1, %v323_v32  ;;  %3533 = vrot.lane.b32.xlu1 %v2275_v4, %s4894_s8 }
  0xd5   : > { %v2565_v37 = vsel %vm2248_vm2, %v8529_v50, -inf  ;;  %4727 = vmatmul.msk.f32.gmra.mxu3 %vm434_vm1, %v387_v1  ;;  %v2849_v59 = vmax.f32 %v2847_v51, %v2848_v7  ;;  %v2278_v14 = vmax.f32 %v2276_v22, %v2277_v8  ;;  %v260_v8 = vld [vmem:[%s4975_s5 + $0x2c0] sm:$0xff] }
  0xd6   : > { %v3137_v44 = vmax.f32 %v3135_v31, %v3136_v56  ;;  %v2566_v38 = vmax.f32 %v2564_v0, %v2565_v37  ;;  %v196_v0 = vld [vmem:[%s4975_s5 + $0xc0] sm:$0xff]  ;;  %v2563_v37 = vmax.f32 %v2561_v46, %v2562_v36 }
  0xd7   : > { %v1629_v52 = vpop.f32.mrf.mxu2  ;;  %v2850_v50 = vrot.slane %v2849_v59, 1  ;;  %v2279_v32 = vrot.slane %v2278_v14, 4  ;;  %v1248_v4 = vpop.f32.mrf.mxu0 }
  0xd8   : > { %v1821_v41 = vpop.f32.mrf.mxu3  ;;  %v3138_v58 = vrot.slane %v3137_v44, 1  ;;  %v2567_v1 = vrot.slane %v2566_v38, 4  ;;  %v5388_v51 = vadd.f32 %v5110_v6, %v1629_v52  ;;  %v1440_v56 = vpop.f32.mrf.mxu1  ;;  %v5406_v52 = vadd.f32 %v5110_v6, %v1248_v4 }
  0xd9   : > { %v5391_v31 = vadd.f32 %v5110_v6, %v1821_v41  ;;  %v2851_v22 = vmax.f32 %v2849_v59, %v2850_v50  ;;  %v2280_v48 = vmax.f32 %v2278_v14, %v2279_v32  ;;  %v2852_v41 = vsel %vm2248_vm2, %v8537_v43, -inf  ;;  %v325_v43 = vld [vmem:[%s4975_s5 + $0x4c8] sm:$0xff] }
  0xda   : > { %8801 = vst [vmem:[#allocation6_spill] sm:$0xff] %v5388_v51  ;;  %v3139_v7 = vmax.f32 %v3137_v44, %v3138_v58  ;;  %v2568_v34 = vmax.f32 %v2566_v38, %v2567_v1  ;;  %v8536_v47 = vmax.f32 %v5388_v51, 0.0  ;;  %v3140_v58 = vsel %vm2248_vm2, %v8539_v49, -inf  ;;  %4536 = vmatmul.msk.f32.gmra.mxu0 %vm434_vm1, %v196_v0  ;;  %v392_v51 = vld [vmem:[%s4975_s5 + $0x6e0] sm:$0xff] }
  0xdb   : > { %v8538_v33 = vmax.f32 %v5391_v31, 0.0  ;;  %v5409_v46 = vadd.f32 %v5110_v6, %v1440_v56  ;;  %3661 = vrot.lane.b32.xlu0 %v2851_v22, %s4894_s8  ;;  %4600 = vmatmul.msk.f32.gmra.mxu1 %vm434_vm1, %v260_v8  ;;  %v2281_v44 = vrot.slane %v2280_v48, 2 }
  0xdc   : > { %3725 = vrot.lane.b32.xlu2 %v3139_v7, %s4894_s8  ;;  %v2853_v38 = vsel %vm2248_vm2, %v8536_v47, -inf  ;;  %v2569_v36 = vrot.slane %v2568_v34, 2  ;;  %4664 = vmatmul.msk.f32.gmra.mxu2 %vm434_vm1, %v324_v25  ;;  %v8543_v7 = vmax.f32 %v5406_v52, 0.0 }
  0xdd   : > { %8802 = vst [vmem:[#allocation7_spill] sm:$0xff] %v5409_v46  ;;  %v3141_v50 = vsel %vm2248_vm2, %v8538_v33, -inf  ;;  %v2854_v59 = vmax.f32 %v2852_v41, %v2853_v38  ;;  %4728 = vmatmul.msk.f32.gmra.mxu3 %vm434_vm1, %v388_v17  ;;  %3597 = vrot.lane.b32.xlu1 %v2563_v37, %s4894_s8  ;;  %v2282_v1 = vmax.f32 %v2280_v48, %v2281_v44  ;;  %v8541_v8 = vmax.f32 %v5409_v46, 0.0  ;;  %v261_v44 = vld [vmem:[%s4975_s5 + $0x2c8] sm:$0xff] }
  0xde   : > { %v3142_v14 = vmax.f32 %v3140_v58, %v3141_v50  ;;  %v2570_v32 = vmax.f32 %v2568_v34, %v2569_v36  ;;  %v197_v36 = vld [vmem:[%s4975_s5 + $0xc8] sm:$0xff] }
  0xdf   : > { %v2855_v4 = vrot.slane %v2854_v59, 4  ;;  %v1632_v22 = vpop.f32.mrf.mxu2  ;;  %v1251_v17 = vpop.f32.mrf.mxu0  ;;  %v2283_v34 = vrot.slane %v2282_v1, 1 }
  0xe0   : > { %v3143_v56 = vrot.slane %v3142_v14, 4  ;;  %v1824_v0 = vpop.f32.mrf.mxu3  ;;  %v5427_v25 = vadd.f32 %v5110_v6, %v1632_v22  ;;  %v1443_v41 = vpop.f32.mrf.mxu1  ;;  %v2571_v37 = vrot.slane %v2570_v32, 1  ;;  %v5430_v38 = vadd.f32 %v5110_v6, %v1251_v17  ;;  %v389_v22 = vld [vmem:[%s4975_s5 + $0x6c8] sm:$0xff] }
  0xe1   : > { %v2856_v48 = vmax.f32 %v2854_v59, %v2855_v4  ;;  %v5433_v50 = vadd.f32 %v5110_v6, %v1443_v41  ;;  %v5438_v47 = vadd.f32 %v5110_v6, %v1824_v0  ;;  %v2284_v49 = vmax.f32 %v2282_v1, %v2283_v34 }
  0xe2   : > { %v3144_v58 = vmax.f32 %v3142_v14, %v3143_v56  ;;  %v2572_v33 = vmax.f32 %v2570_v32, %v2571_v37  ;;  %v8542_v13 = vmax.f32 %v5430_v38, 0.0  ;;  %v2285_v56 = vsel %vm2248_vm2, %v8543_v7, -inf  ;;  %4537 = vmatmul.msk.f32.gmra.mxu0 %vm434_vm1, %v197_v36 }
  0xe3   : > { %8803 = vst [vmem:[#allocation8_spill] sm:$0xff] %v5433_v50  ;;  %v8544_v59 = vmax.f32 %v5433_v50, 0.0  ;;  %v2857_v4 = vrot.slane %v2856_v48, 2  ;;  %v2573_v17 = vsel %vm2248_vm2, %v8541_v8, -inf  ;;  %v8549_v0 = vmax.f32 %v5427_v25, 0.0  ;;  %4601 = vmatmul.msk.f32.gmra.mxu1 %vm434_vm1, %v261_v44 }
  0xe4   : > { %8804 = vst [vmem:[#allocation9_spill] sm:$0xff] %v5438_v47  ;;  %v3145_v14 = vrot.slane %v3144_v58, 2  ;;  %v2286_v32 = vsel %vm2248_vm2, %v8542_v13, -inf  ;;  %4665 = vmatmul.msk.f32.gmra.mxu2 %vm434_vm1, %v325_v43  ;;  %3599 = vrot.lane.b32.xlu2 %v2572_v33, %s4894_s8  ;;  %v8551_v36 = vmax.f32 %v5438_v47, 0.0 }
  0xe5   : > { %v2574_v1 = vsel %vm2248_vm2, %v8544_v59, -inf  ;;  %4729 = vmatmul.msk.f32.gmra.mxu3 %vm434_vm1, %v389_v22  ;;  %v2858_v37 = vmax.f32 %v2856_v48, %v2857_v4  ;;  %v2287_v34 = vmax.f32 %v2285_v56, %v2286_v32  ;;  %3535 = vrot.lane.b32.xlu1 %v2284_v49, %s4894_s8  ;;  %v2861_v49 = vsel %vm2248_vm2, %v8549_v0, -inf  ;;  %v198_v56 = vld [vmem:[%s4975_s5 + $0xd0] sm:$0xff] }
  0xe6   : > { %v3146_v41 = vmax.f32 %v3144_v58, %v3145_v14  ;;  %v2575_v8 = vmax.f32 %v2573_v17, %v2574_v1  ;;  %v262_v17 = vld [vmem:[%s4975_s5 + $0x2d0] sm:$0xff] }
  0xe7   : > { %v1635_v44 = vpop.f32.mrf.mxu2  ;;  %v2859_v59 = vrot.slane %v2858_v37, 1  ;;  %v2288_v43 = vrot.slane %v2287_v34, 4  ;;  %v1254_v33 = vpop.f32.mrf.mxu0 }
  0xe8   : > { %v1827_v13 = vpop.f32.mrf.mxu3  ;;  %v3147_v7 = vrot.slane %v3146_v41, 1  ;;  %v2576_v22 = vrot.slane %v2575_v8, 4  ;;  %v5465_v48 = vadd.f32 %v5110_v6, %v1635_v44  ;;  %v1446_v14 = vpop.f32.mrf.mxu1  ;;  %v326_v44 = vld [vmem:[%s4975_s5 + $0x4d0] sm:$0xff]  ;;  %v5483_v50 = vadd.f32 %v5110_v6, %v1254_v33 }
  0xe9   : > { %v5468_v58 = vadd.f32 %v5110_v6, %v1827_v13  ;;  %v2289_v32 = vmax.f32 %v2287_v34, %v2288_v43  ;;  %v3149_v13 = vsel %vm2248_vm2, %v8551_v36, -inf  ;;  %v5486_v0 = vadd.f32 %v5110_v6, %v1446_v14  ;;  %v263_v36 = vld [vmem:[%s4975_s5 + $0x2d8] sm:$0xff] }
  0xea   : > { %v3148_v4 = vmax.f32 %v3146_v41, %v3147_v7  ;;  %v2577_v1 = vmax.f32 %v2575_v8, %v2576_v22  ;;  %v8552_v42 = vmax.f32 %v5465_v48, 0.0  ;;  %v2860_v7 = vmax.f32 %v2858_v37, %v2859_v59  ;;  %4538 = vmatmul.msk.f32.gmra.mxu0 %vm434_vm1, %v198_v56 }
  0xeb   : > { %8805 = vst [vmem:[#allocation10_spill] sm:$0xff] %v5468_v58  ;;  %v8550_v26 = vmax.f32 %v5468_v58, 0.0  ;;  %4602 = vmatmul.msk.f32.gmra.mxu1 %vm434_vm1, %v262_v17  ;;  %v2290_v34 = vrot.slane %v2289_v32, 2 }
  0xec   : > { %8806 = vst [vmem:[#allocation11_spill] sm:$0xff] %v5486_v0  ;;  %3727 = vrot.lane.b32.xlu0 %v3148_v4, %s4894_s8  ;;  %v2862_v8 = vsel %vm2248_vm2, %v8552_v42, -inf  ;;  %v2578_v43 = vrot.slane %v2577_v1, 2  ;;  %4666 = vmatmul.msk.f32.gmra.mxu2 %vm434_vm1, %v326_v44 }
  0xed   : > { %v3150_v41 = vsel %vm2248_vm2, %v8550_v26, -inf  ;;  %v2863_v22 = vmax.f32 %v2861_v49, %v2862_v8  ;;  %4730 = vmatmul.msk.f32.gmra.mxu3 %vm434_vm1, %v390_v18  ;;  %3663 = vrot.lane.b32.xlu1 %v2860_v7, %s4894_s8  ;;  %v2291_v59 = vmax.f32 %v2289_v32, %v2290_v34  ;;  %v327_v49 = vld [vmem:[%s4975_s5 + $0x4d8] sm:$0xff] }
  0xee   : > { %v3151_v33 = vmax.f32 %v3149_v13, %v3150_v41  ;;  %v2579_v37 = vmax.f32 %v2577_v1, %v2578_v43  ;;  %v199_v43 = vld [vmem:[%s4975_s5 + $0xd8] sm:$0xff] }
  0xef   : > { %v2864_v14 = vrot.slane %v2863_v22, 4  ;;  %v1638_v17 = vpop.f32.mrf.mxu2  ;;  %v1257_v18 = vpop.f32.mrf.mxu0  ;;  %v2292_v7 = vrot.slane %v2291_v59, 1 }
  0xf0   : > { %v3152_v4 = vrot.slane %v3151_v33, 4  ;;  %v1830_v26 = vpop.f32.mrf.mxu3  ;;  %v5503_v44 = vadd.f32 %v5110_v6, %v1638_v17  ;;  %v1449_v13 = vpop.f32.mrf.mxu1  ;;  %v2580_v32 = vrot.slane %v2579_v37, 1  ;;  %v5506_v41 = vadd.f32 %v5110_v6, %v1257_v18  ;;  %v391_v17 = vld [vmem:[%s4975_s5 + $0x6d8] sm:$0xff] }
  0xf1   : > { %v2865_v1 = vmax.f32 %v2863_v22, %v2864_v14  ;;  %v5509_v34 = vadd.f32 %v5110_v6, %v1449_v13  ;;  %v5514_v42 = vadd.f32 %v5110_v6, %v1830_v26  ;;  %v2293_v56 = vmax.f32 %v2291_v59, %v2292_v7 }
  0xf2   : > { %8807 = vst [vmem:[#allocation12_spill] sm:$0xff] %v5503_v44  ;;  %v3153_v8 = vmax.f32 %v3151_v33, %v3152_v4  ;;  %v2581_v58 = vmax.f32 %v2579_v37, %v2580_v32  ;;  %v8556_v47 = vmax.f32 %v5506_v41, 0.0  ;;  %v8810_v4 = vmax.f32 %v5483_v50, 0.0  ;;  %4539 = vmatmul.msk.f32.gmra.mxu0 %vm434_vm1, %v199_v43 }
  0xf3   : > { %8808 = vst [vmem:[#allocation13_spill] sm:$0xff] %v5506_v41  ;;  %v8557_v22 = vmax.f32 %v5509_v34, 0.0  ;;  %v2866_v14 = vrot.slane %v2865_v1, 2  ;;  %v8811_v13 = vmax.f32 %v5486_v0, 0.0  ;;  %4603 = vmatmul.msk.f32.gmra.mxu1 %vm434_vm1, %v263_v36  ;;  %3537 = vrot.lane.b32.xlu2 %v2293_v56, %s4894_s8 }
  0xf4   : > { %8809 = vst [vmem:[#allocation14_spill] sm:$0xff] %v5509_v34  ;;  %v3154_v33 = vrot.slane %v3153_v8, 2  ;;  %v2294_v18 = vsel %vm2248_vm2, %v8810_v4, -inf  ;;  %v2295_v59 = vsel %vm2248_vm2, %v8556_v47, -inf  ;;  %4667 = vmatmul.msk.f32.gmra.mxu2 %vm434_vm1, %v327_v49  ;;  %3601 = vrot.lane.b32.xlu0 %v2581_v58, %s4894_s8  ;;  %v8814_v58 = vmax.f32 %v5503_v44, 0.0 }
  0xf5   : > { %v2582_v46 = vsel %vm2248_vm2, %v8811_v13, -inf  ;;  %v2583_v37 = vsel %vm2248_vm2, %v8557_v22, -inf  ;;  %4731 = vmatmul.msk.f32.gmra.mxu3 %vm434_vm1, %v391_v17  ;;  %v2867_v32 = vmax.f32 %v2865_v1, %v2866_v14  ;;  %v2296_v4 = vmax.f32 %v2294_v18, %v2295_v59  ;;  %v200_v18 = vld [vmem:[%s4975_s5 + $0xe0] sm:$0xff] }
  0xf6   : > { %v3155_v7 = vmax.f32 %v3153_v8, %v3154_v33  ;;  %v2584_v13 = vmax.f32 %v2582_v46, %v2583_v37  ;;  %v2870_v33 = vsel %vm2248_vm2, %v8814_v58, -inf  ;;  %v264_v59 = vld [vmem:[%s4975_s5 + $0x2e0] sm:$0xff] }
  0xf7   : > { %v1641_v43 = vpop.f32.mrf.mxu2  ;;  %v2868_v22 = vrot.slane %v2867_v32, 1  ;;  %v2297_v49 = vrot.slane %v2296_v4, 4  ;;  %v1260_v56 = vpop.f32.mrf.mxu0 }
  0xf8   : > { %v1833_v47 = vpop.f32.mrf.mxu3  ;;  %v3156_v26 = vrot.slane %v3155_v7, 1  ;;  %v2585_v17 = vrot.slane %v2584_v13, 4  ;;  %v5541_v1 = vadd.f32 %v5110_v6, %v1641_v43  ;;  %v1452_v8 = vpop.f32.mrf.mxu1  ;;  %v328_v43 = vld [vmem:[%s4975_s5 + $0x4e0] sm:$0xff]  ;;  %v5559_v41 = vadd.f32 %v5110_v6, %v1260_v56 }
  0xf9   : > { %v5544_v46 = vadd.f32 %v5110_v6, %v1833_v47  ;;  %v2298_v37 = vmax.f32 %v2296_v4, %v2297_v49  ;;  %v8815_v47 = vmax.f32 %v5514_v42, 0.0  ;;  %v5562_v58 = vadd.f32 %v5110_v6, %v1452_v8 }
  0xfa   : > { %8812 = vst [vmem:[#allocation15_spill] sm:$0xff] %v5541_v1  ;;  %v3157_v14 = vmax.f32 %v3155_v7, %v3156_v26  ;;  %v2586_v36 = vmax.f32 %v2584_v13, %v2585_v17  ;;  %v8563_v34 = vmax.f32 %v5541_v1, 0.0  ;;  %v2869_v26 = vmax.f32 %v2867_v32, %v2868_v22  ;;  %4540 = vmatmul.msk.f32.gmra.mxu0 %vm434_vm1, %v200_v18 }
  0xfb   : > { %8813 = vst [vmem:[#allocation16_spill] sm:$0xff] %v5544_v46  ;;  %v8564_v0 = vmax.f32 %v5544_v46, 0.0  ;;  %v3158_v35 = vsel %vm2248_vm2, %v8815_v47, -inf  ;;  %4604 = vmatmul.msk.f32.gmra.mxu1 %vm434_vm1, %v264_v59  ;;  %v2299_v13 = vrot.slane %v2298_v37, 2 }
  0xfc   : > { %8816 = vst [vmem:[#allocation17_spill] sm:$0xff] %v5559_v41  ;;  %3729 = vrot.lane.b32.xlu1 %v3157_v14, %s4894_s8  ;;  %v2871_v7 = vsel %vm2248_vm2, %v8563_v34, -inf  ;;  %v2587_v49 = vrot.slane %v2586_v36, 2  ;;  %4668 = vmatmul.msk.f32.gmra.mxu2 %vm434_vm1, %v328_v43  ;;  %v265_v34 = vld [vmem:[%s4975_s5 + $0x2e8] sm:$0xff] }
  0xfd   : > { %8817 = vst [vmem:[#allocation18_spill] sm:$0xff] %v5562_v58  ;;  %v3159_v4 = vsel %vm2248_vm2, %v8564_v0, -inf  ;;  %v2872_v17 = vmax.f32 %v2870_v33, %v2871_v7  ;;  %4732 = vmatmul.msk.f32.gmra.mxu3 %vm434_vm1, %v392_v51  ;;  %3665 = vrot.lane.b32.xlu2 %v2869_v26, %s4894_s8  ;;  %v2300_v22 = vmax.f32 %v2298_v37, %v2299_v13 }
  0xfe   : > { %v3160_v56 = vmax.f32 %v3158_v35, %v3159_v4  ;;  %v2588_v32 = vmax.f32 %v2586_v36, %v2587_v49  ;;  %v201_v49 = vld [vmem:[%s4975_s5 + $0xe8] sm:$0xff] }
  0xff   : > { %v2873_v8 = vrot.slane %v2872_v17, 4  ;;  %v1644_v59 = vpop.f32.mrf.mxu2  ;;  %v1263_v51 = vpop.f32.mrf.mxu0  ;;  %v2301_v26 = vrot.slane %v2300_v22, 1  ;;  %v329_v35 = vld [vmem:[%s4975_s5 + $0x4e8] sm:$0xff] }
 0x100   : > { %v3161_v14 = vrot.slane %v3160_v56, 4  ;;  %v1836_v47 = vpop.f32.mrf.mxu3  ;;  %v5579_v33 = vadd.f32 %v5110_v6, %v1644_v59  ;;  %v1455_v43 = vpop.f32.mrf.mxu1  ;;  %v2589_v37 = vrot.slane %v2588_v32, 1  ;;  %v5582_v4 = vadd.f32 %v5110_v6, %v1263_v51  ;;  %v393_v59 = vld [vmem:[%s4975_s5 + $0x6e8] sm:$0xff] }
 0x101   : > { %v2874_v36 = vmax.f32 %v2872_v17, %v2873_v8  ;;  %v5585_v13 = vadd.f32 %v5110_v6, %v1455_v43  ;;  %v5590_v0 = vadd.f32 %v5110_v6, %v1836_v47  ;;  %v2302_v18 = vmax.f32 %v2300_v22, %v2301_v26 }
 0x102   : > { %8818 = vst [vmem:[#allocation19_spill] sm:$0xff] %v5579_v33  ;;  %v3162_v7 = vmax.f32 %v3160_v56, %v3161_v14  ;;  %v2590_v1 = vmax.f32 %v2588_v32, %v2589_v37  ;;  %v8568_v44 = vmax.f32 %v5582_v4, 0.0  ;;  %v8822_v14 = vmax.f32 %v5559_v41, 0.0  ;;  %4541 = vmatmul.msk.f32.gmra.mxu0 %vm434_vm1, %v201_v49  ;;  %v330_v41 = vld [vmem:[%s4975_s5 + $0x4f0] sm:$0xff] }
 0x103   : > { %8819 = vst [vmem:[#allocation20_spill] sm:$0xff] %v5582_v4  ;;  %v8569_v17 = vmax.f32 %v5585_v13, 0.0  ;;  %v2875_v56 = vrot.slane %v2874_v36, 2  ;;  %v8823_v43 = vmax.f32 %v5562_v58, 0.0  ;;  %v8577_v6 = vmax.f32 %v5579_v33, 0.0  ;;  %4605 = vmatmul.msk.f32.gmra.mxu1 %vm434_vm1, %v265_v34 }
 0x104   : > { %8820 = vst [vmem:[#allocation21_spill] sm:$0xff] %v5585_v13  ;;  %v3163_v8 = vrot.slane %v3162_v7, 2  ;;  %v2303_v51 = vsel %vm2248_vm2, %v8822_v14, -inf  ;;  %v2304_v22 = vsel %vm2248_vm2, %v8568_v44, -inf  ;;  %4669 = vmatmul.msk.f32.gmra.mxu2 %vm434_vm1, %v329_v35  ;;  %3603 = vrot.lane.b32.xlu1 %v2590_v1, %s4894_s8  ;;  %v8825_v13 = vmax.f32 %v5590_v0, 0.0 }
 0x105   : > { %8821 = vst [vmem:[#allocation22_spill] sm:$0xff] %v5590_v0  ;;  %v2591_v46 = vsel %vm2248_vm2, %v8823_v43, -inf  ;;  %v2592_v32 = vsel %vm2248_vm2, %v8569_v17, -inf  ;;  %4733 = vmatmul.msk.f32.gmra.mxu3 %vm434_vm1, %v393_v59  ;;  %v2876_v47 = vmax.f32 %v2874_v36, %v2875_v56  ;;  %v2305_v37 = vmax.f32 %v2303_v51, %v2304_v22  ;;  %3539 = vrot.lane.b32.xlu2 %v2302_v18, %s4894_s8  ;;  %v202_v51 = vld [vmem:[%s4975_s5 + $0xf0] sm:$0xff] }
 0x106   : > { %v3164_v26 = vmax.f32 %v3162_v7, %v3163_v8  ;;  %v2593_v14 = vmax.f32 %v2591_v46, %v2592_v32  ;;  %v5619_v46 = vld [vmem:[%s8510_s2] ss:$0 sm:$0xff]  ;;  %v2879_v56 = vsel %vm2248_vm2, %v8577_v6, -inf  ;;  %v266_v22 = vld [vmem:[%s4975_s5 + $0x2f0] sm:$0xff]  ;;  %v3167_v58 = vsel %vm2248_vm2, %v8825_v13, -inf  ;;  %v203_v6 = vld [vmem:[%s4975_s5 + $0xf8] sm:$0xff] }
 0x107   : > { %v1647_v49 = vpop.f32.mrf.mxu2  ;;  %v2877_v44 = vrot.slane %v2876_v47, 1  ;;  %v2306_v35 = vrot.slane %v2305_v37, 4  ;;  %v1266_v36 = vpop.f32.mrf.mxu0 }
 0x108   : > { %v1839_v43 = vpop.f32.mrf.mxu3  ;;  %v3165_v17 = vrot.slane %v3164_v26, 1  ;;  %v2594_v59 = vrot.slane %v2593_v14, 4  ;;  %v5622_v18 = vadd.f32 %v5619_v46, %v1647_v49  ;;  %v1458_v7 = vpop.f32.mrf.mxu1  ;;  %v5641_v33 = vadd.f32 %v5619_v46, %v1266_v36 }
 0x109   : > { %v5625_v1 = vadd.f32 %v5619_v46, %v1839_v43  ;;  %v2878_v8 = vmax.f32 %v2876_v47, %v2877_v44  ;;  %v2307_v32 = vmax.f32 %v2305_v37, %v2306_v35  ;;  %v394_v43 = vld [vmem:[%s4975_s5 + $0x6f0] sm:$0xff]  ;;  %v5644_v44 = vadd.f32 %v5619_v46, %v1458_v7 }
 0x10a   : > { %v2595_v34 = vmax.f32 %v2593_v14, %v2594_v59  ;;  %v8576_v4 = vmax.f32 %v5622_v18, 0.0  ;;  %8826 = vst [vmem:[#allocation24_spill] sm:$0xff] %v5641_v33  ;;  %v3166_v47 = vmax.f32 %v3164_v26, %v3165_v17  ;;  %4542 = vmatmul.msk.f32.gmra.mxu0 %vm434_vm1, %v202_v51 }
 0x10b   : > { %8824 = vst [vmem:[#allocation23_spill] sm:$0xff] %v5625_v1  ;;  %v8575_v49 = vmax.f32 %v5625_v1, 0.0  ;;  %3667 = vrot.lane.b32.xlu0 %v2878_v8, %s4894_s8  ;;  %4606 = vmatmul.msk.f32.gmra.mxu1 %vm434_vm1, %v266_v22  ;;  %v2308_v35 = vrot.slane %v2307_v32, 2 }
 0x10c   : > { %8827 = vst [vmem:[#allocation25_spill] sm:$0xff] %v5644_v44  ;;  %v2880_v37 = vsel %vm2248_vm2, %v8576_v4, -inf  ;;  %v2596_v13 = vrot.slane %v2595_v34, 2  ;;  %4670 = vmatmul.msk.f32.gmra.mxu2 %vm434_vm1, %v330_v41 }
 0x10d   : > { %v3168_v14 = vsel %vm2248_vm2, %v8575_v49, -inf  ;;  %v2881_v59 = vmax.f32 %v2879_v56, %v2880_v37  ;;  %4734 = vmatmul.msk.f32.gmra.mxu3 %vm434_vm1, %v394_v43  ;;  %3731 = vrot.lane.b32.xlu2 %v3166_v47, %s4894_s8  ;;  %v2309_v26 = vmax.f32 %v2307_v32, %v2308_v35  ;;  %v267_v49 = vld [vmem:[%s4975_s5 + $0x2f8] sm:$0xff] }
 0x10e   : > { %v3169_v36 = vmax.f32 %v3167_v58, %v3168_v14  ;;  %v2597_v17 = vmax.f32 %v2595_v34, %v2596_v13  ;;  %v3594_v56 = vpop.permute.xlu2 %3593  ;;  %v8828_v34 = vmax.f32 %v5122_v10, 0.0  ;;  %v8829_v14 = vmax.f32 %v5132_v20, 0.0 }
 0x10f   : > { %v2882_v7 = vrot.slane %v2881_v59, 4  ;;  %v1650_v51 = vpop.f32.mrf.mxu2  ;;  %v1269_v58 = vpop.f32.mrf.mxu0  ;;  %v2310_v43 = vrot.slane %v2309_v26, 1 }
 0x110   : > { %v3170_v8 = vrot.slane %v3169_v36, 4  ;;  %v1842_v22 = vpop.f32.mrf.mxu3  ;;  %v2598_v41 = vrot.slane %v2597_v17, 1  ;;  %v3977_v32 = vsel %vm2248_vm2, %v8828_v34, %v3594_v56  ;;  %v3978_v13 = vsel %vm2248_vm2, %v8829_v14, %v3594_v56  ;;  %v1461_v35 = vpop.f32.mrf.mxu1  ;;  %v396_v14 = vld [vmem:[%s4975_s5 + $0x700] sm:$0xff] }
 0x111   : > { %v2883_v37 = vmax.f32 %v2881_v59, %v2882_v7  ;;  %v5671_v4 = vadd.f32 %v5619_v46, %v1650_v51  ;;  %v5674_v1 = vadd.f32 %v5619_v46, %v1842_v22  ;;  %4233 = vst [vmem:[%s5676_s19 + $0x200] sm:$0xff] %v3977_v32  ;;  %v5680_v10 = vadd.f32 %v5619_v46, %v1269_v58  ;;  %v331_v59 = vld [vmem:[%s4975_s5 + $0x4f8] sm:$0xff] }
 0x112   : > { %v3171_v47 = vmax.f32 %v3169_v36, %v3170_v8  ;;  %v5683_v20 = vadd.f32 %v5619_v46, %v1461_v35  ;;  %v395_v36 = vld [vmem:[%s4975_s5 + $0x6f8] sm:$0xff]  ;;  %4234 = vst [vmem:[%s5676_s19 + $0x208] sm:$0xff] %v3978_v13  ;;  %v2599_v7 = vmax.f32 %v2597_v17, %v2598_v41  ;;  %v2311_v8 = vmax.f32 %v2309_v26, %v2310_v43 }
 0x113   : > { %8830 = vst [vmem:[#allocation26_spill] sm:$0xff] %v5674_v1  ;;  %v2884_v51 = vrot.slane %v2883_v37, 2  ;;  %v8580_v22 = vmax.f32 %v5680_v10, 0.0  ;;  %4543 = vmatmul.msk.f32.gmra.mxu0 %vm434_vm1, %v203_v6  ;;  %4607 = vmatmul.msk.f32.gmra.mxu1 %vm434_vm1, %v267_v49  ;;  %v8833_v58 = vmax.f32 %v5641_v33, 0.0  ;;  %v8834_v41 = vmax.f32 %v5644_v44, 0.0 }
 0x114   : > { %8831 = vst [vmem:[#allocation27_spill] sm:$0xff] %v5680_v10  ;;  %v3172_v56 = vrot.slane %v3171_v47, 2  ;;  %v8579_v34 = vmax.f32 %v5683_v20, 0.0  ;;  %4671 = vmatmul.msk.f32.gmra.mxu2 %vm434_vm1, %v331_v59  ;;  %3541 = vrot.lane.b32.xlu0 %v2311_v8, %s4894_s8  ;;  %v8838_v44 = vmax.f32 %v5674_v1, 0.0 }
 0x115   : > { %8832 = vst [vmem:[#allocation28_spill] sm:$0xff] %v5683_v20  ;;  %v2312_v32 = vsel %vm2248_vm2, %v8833_v58, -inf  ;;  %4735 = vmatmul.msk.f32.gmra.mxu3 %vm434_vm1, %v395_v36  ;;  %v2885_v17 = vmax.f32 %v2883_v37, %v2884_v51  ;;  %v2600_v43 = vsel %vm2248_vm2, %v8834_v41, -inf  ;;  %v2313_v6 = vsel %vm2248_vm2, %v8580_v22, -inf  ;;  %3605 = vrot.lane.b32.xlu2 %v2599_v7, %s4894_s8  ;;  %v204_v37 = vld [vmem:[%s4975_s5 + $0x100] sm:$0xff] }
 0x116   : > { %v3173_v26 = vmax.f32 %v3171_v47, %v3172_v56  ;;  %v2601_v49 = vsel %vm2248_vm2, %v8579_v34, -inf  ;;  %v2314_v47 = vmax.f32 %v2312_v32, %v2313_v6  ;;  %v268_v32 = vld [vmem:[%s4975_s5 + $0x300] sm:$0xff]  ;;  %v3176_v10 = vsel %vm2248_vm2, %v8838_v44, -inf }
 0x117   : > { %v2602_v13 = vmax.f32 %v2600_v43, %v2601_v49  ;;  %v1653_v35 = vpop.f32.mrf.mxu2  ;;  %v2886_v36 = vrot.slane %v2885_v17, 1  ;;  %v1272_v7 = vpop.f32.mrf.mxu0 }
 0x118   : > { %v1845_v59 = vpop.f32.mrf.mxu3  ;;  %v5711_v51 = vadd.f32 %v5619_v46, %v1653_v35  ;;  %v3174_v58 = vrot.slane %v3173_v26, 1  ;;  %v2315_v41 = vrot.slane %v2314_v47, 4  ;;  %v1464_v34 = vpop.f32.mrf.mxu1  ;;  %v5721_v49 = vadd.f32 %v5619_v46, %v1272_v7  ;;  %v332_v35 = vld [vmem:[%s4975_s5 + $0x500] sm:$0xff] }
 0x119   : > { %v5714_v56 = vadd.f32 %v5619_v46, %v1845_v59  ;;  %v2603_v8 = vrot.slane %v2602_v13, 4  ;;  %v2887_v22 = vmax.f32 %v2885_v17, %v2886_v36  ;;  %v8837_v59 = vmax.f32 %v5671_v4, 0.0 }
 0x11a   : > { %v8586_v43 = vmax.f32 %v5711_v51, 0.0  ;;  %8836 = vst [vmem:[#allocation30_spill] sm:$0xff] %v5721_v49  ;;  %v2316_v17 = vmax.f32 %v2314_v47, %v2315_v41  ;;  %v5739_v0 = vadd.f32 %v5619_v46, %v1464_v34  ;;  %v3175_v44 = vmax.f32 %v3173_v26, %v3174_v58  ;;  %v269_v41 = vld [vmem:[%s4975_s5 + $0x308] sm:$0xff] }
 0x11b   : > { %8835 = vst [vmem:[#allocation29_spill] sm:$0xff] %v5714_v56  ;;  %v2888_v20 = vsel %vm2248_vm2, %v8837_v59, -inf  ;;  %v2604_v36 = vmax.f32 %v2602_v13, %v2603_v8  ;;  %3669 = vrot.lane.b32.xlu1 %v2887_v22, %s4894_s8  ;;  %v8839_v7 = vmax.f32 %v5714_v56, 0.0  ;;  %4544 = vmatmul.msk.f32.gmra.mxu0 %vm434_vm1, %v204_v37  ;;  %v397_v56 = vld [vmem:[%s4975_s5 + $0x708] sm:$0xff] }
 0x11c   : > { %v2889_v6 = vsel %vm2248_vm2, %v8586_v43, -inf  ;;  %8840 = vst [vmem:[#allocation31_spill] sm:$0xff] %v5739_v0  ;;  %4608 = vmatmul.msk.f32.gmra.mxu1 %vm434_vm1, %v268_v32  ;;  %4672 = vmatmul.msk.f32.gmra.mxu2 %vm434_vm1, %v332_v35  ;;  %v2317_v22 = vrot.slane %v2316_v17, 2  ;;  %v205_v43 = vld [vmem:[%s4975_s5 + $0x108] sm:$0xff] }
 0x11d   : > { %v3177_v33 = vsel %vm2248_vm2, %v8839_v7, -inf  ;;  %v2890_v47 = vmax.f32 %v2888_v20, %v2889_v6  ;;  %4736 = vmatmul.msk.f32.gmra.mxu3 %vm434_vm1, %v396_v14  ;;  %3733 = vrot.lane.b32.xlu0 %v3175_v44, %s4894_s8  ;;  %v2605_v8 = vrot.slane %v2604_v36, 2 }
 0x11e   : > { %v3178_v13 = vmax.f32 %v3176_v10, %v3177_v33  ;;  %v2318_v26 = vmax.f32 %v2316_v17, %v2317_v22  ;;  %v8842_v22 = vmax.f32 %v5721_v49, 0.0 }
 0x11f   : > { %v2891_v34 = vrot.slane %v2890_v47, 4  ;;  %v1656_v37 = vpop.f32.mrf.mxu2  ;;  %v1275_v14 = vpop.f32.mrf.mxu0  ;;  %v2606_v58 = vmax.f32 %v2604_v36, %v2605_v8 }
 0x120   : > { %v3179_v59 = vrot.slane %v3178_v13, 4  ;;  %v1848_v7 = vpop.f32.mrf.mxu3  ;;  %v5749_v10 = vadd.f32 %v5619_v46, %v1656_v37  ;;  %v5755_v35 = vadd.f32 %v5619_v46, %v1275_v14  ;;  %v1467_v44 = vpop.f32.mrf.mxu1  ;;  %v2319_v17 = vrot.slane %v2318_v26, 1 }
 0x121   : > { %v5752_v20 = vadd.f32 %v5619_v46, %v1848_v7  ;;  %v2892_v32 = vmax.f32 %v2890_v47, %v2891_v34  ;;  %v2321_v33 = vsel %vm2248_vm2, %v8842_v22, -inf  ;;  %v5763_v37 = vadd.f32 %v5619_v46, %v1467_v44  ;;  %v333_v7 = vld [vmem:[%s4975_s5 + $0x508] sm:$0xff] }
 0x122   : > { %8841 = vst [vmem:[#allocation32_spill] sm:$0xff] %v5749_v10  ;;  %v3180_v6 = vmax.f32 %v3178_v13, %v3179_v59  ;;  %v2607_v1 = vrot.slane %v2606_v58, 1  ;;  %v8590_v36 = vmax.f32 %v5755_v35, 0.0  ;;  %v2320_v47 = vmax.f32 %v2318_v26, %v2319_v17 }
 0x123   : > { %8843 = vst [vmem:[#allocation33_spill] sm:$0xff] %v5763_v37  ;;  %v2893_v13 = vrot.slane %v2892_v32, 2  ;;  %v8844_v34 = vmax.f32 %v5739_v0, 0.0  ;;  %4545 = vmatmul.msk.f32.gmra.mxu0 %vm434_vm1, %v205_v43  ;;  %v8845_v43 = vmax.f32 %v5763_v37, 0.0  ;;  %v8847_v22 = vmax.f32 %v5237_v60, 0.0  ;;  %v398_v0 = vld [vmem:[%s4975_s5 + $0x710] sm:$0xff] }
 0x124   : > { %v3181_v8 = vrot.slane %v3180_v6, 2  ;;  %4609 = vmatmul.msk.f32.gmra.mxu1 %vm434_vm1, %v269_v41  ;;  %v2608_v44 = vmax.f32 %v2606_v58, %v2607_v1  ;;  %v2322_v26 = vsel %vm2248_vm2, %v8590_v36, -inf  ;;  %4673 = vmatmul.msk.f32.gmra.mxu2 %vm434_vm1, %v333_v7  ;;  %v8846_v1 = vmax.f32 %v5199_v5, 0.0 }
 0x125   : > { %v2609_v59 = vsel %vm2248_vm2, %v8844_v34, -inf  ;;  %4737 = vmatmul.msk.f32.gmra.mxu3 %vm434_vm1, %v397_v56  ;;  %v3660_v17 = vpop.permute.xlu2 %3659  ;;  %v2894_v34 = vmax.f32 %v2892_v32, %v2893_v13  ;;  %v2323_v49 = vmax.f32 %v2321_v33, %v2322_v26  ;;  %v2610_v41 = vsel %vm2248_vm2, %v8845_v43, -inf  ;;  %3543 = vrot.lane.b32.xlu1 %v2320_v47, %s4894_s8  ;;  %v3530_v47 = vpop.permute.xlu0 %3529 }
 0x126   : > { %v3182_v14 = vmax.f32 %v3180_v6, %v3181_v8  ;;  %v4043_v58 = vsel %vm2248_vm2, %v8846_v1, %v3660_v17  ;;  %v4044_v36 = vsel %vm2248_vm2, %v8847_v22, %v3660_v17  ;;  %3607 = vrot.lane.b32.xlu0 %v2608_v44, %s4894_s8  ;;  %v2611_v56 = vmax.f32 %v2609_v59, %v2610_v41  ;;  %v206_v1 = vld [vmem:[%s4975_s5 + $0x110] sm:$0xff] }
 0x127   : > { %4299 = vst [vmem:[%s5676_s19 + $0x410] sm:$0xff] %v4043_v58  ;;  %v1659_v33 = vpop.f32.mrf.mxu2  ;;  %v2895_v6 = vrot.slane %v2894_v34, 1  ;;  %v2324_v7 = vrot.slane %v2323_v49, 4  ;;  %v1278_v13 = vpop.f32.mrf.mxu0  ;;  %v8848_v59 = vmax.f32 %v5749_v10, 0.0  ;;  %v8849_v26 = vmax.f32 %v5119_v9, 0.0  ;;  %v270_v58 = vld [vmem:[%s4975_s5 + $0x310] sm:$0xff] }
 0x128   : > { %v1851_v32 = vpop.f32.mrf.mxu3  ;;  %4300 = vst [vmem:[%s5676_s19 + $0x418] sm:$0xff] %v4044_v36  ;;  %v5795_v5 = vadd.f32 %v5619_v46, %v1659_v33  ;;  %v3183_v8 = vrot.slane %v3182_v14, 1  ;;  %v2612_v22 = vrot.slane %v2611_v56, 4  ;;  %v8850_v17 = vmax.f32 %v5129_v19, 0.0  ;;  %v1470_v41 = vpop.f32.mrf.mxu1  ;;  %v334_v9 = vld [vmem:[%s4975_s5 + $0x510] sm:$0xff] }
 0x129   : > { %v5798_v60 = vadd.f32 %v5619_v46, %v1851_v32  ;;  %v2897_v44 = vsel %vm2248_vm2, %v8848_v59, -inf  ;;  %v3913_v36 = vsel %vm2248_vm2, %v8849_v26, %v3530_v47  ;;  %v8851_v33 = vmax.f32 %v5752_v20, 0.0 }
 0x12a   : > { %v3914_v43 = vsel %vm2248_vm2, %v8850_v17, %v3530_v47  ;;  %v2325_v10 = vmax.f32 %v2323_v49, %v2324_v7  ;;  %v8596_v59 = vmax.f32 %v5795_v5, 0.0  ;;  %4169 = vst [vmem:[%s5676_s19] sm:$0xff] %v3913_v36  ;;  %v2613_v26 = vmax.f32 %v2611_v56, %v2612_v22 }
 0x12b   : > { %v3185_v32 = vsel %vm2248_vm2, %v8851_v33, -inf  ;;  %v8599_v37 = vmax.f32 %v5798_v60, 0.0  ;;  %4170 = vst [vmem:[%s5676_s19 + $0x8] sm:$0xff] %v3914_v43  ;;  %v5820_v19 = vadd.f32 %v5619_v46, %v1278_v13  ;;  %v5823_v47 = vadd.f32 %v5619_v46, %v1470_v41  ;;  %4546 = vmatmul.msk.f32.gmra.mxu0 %vm434_vm1, %v206_v1 }
 0x12c   : > { %v2896_v17 = vmax.f32 %v2894_v34, %v2895_v6  ;;  %v2898_v49 = vsel %vm2248_vm2, %v8596_v59, -inf  ;;  %4610 = vmatmul.msk.f32.gmra.mxu1 %vm434_vm1, %v270_v58  ;;  %v3184_v56 = vmax.f32 %v3182_v14, %v3183_v8  ;;  %v2326_v13 = vrot.slane %v2325_v10, 2  ;;  %4674 = vmatmul.msk.f32.gmra.mxu2 %vm434_vm1, %v334_v9 }
 0x12d   : > { %v3186_v7 = vsel %vm2248_vm2, %v8599_v37, -inf  ;;  %v2899_v22 = vmax.f32 %v2897_v44, %v2898_v49  ;;  %v3658_v34 = vpop.permute.xlu1 %3657  ;;  %v2614_v6 = vrot.slane %v2613_v26, 2  ;;  %4738 = vmatmul.msk.f32.gmra.mxu3 %vm434_vm1, %v398_v0  ;;  %v8852_v43 = vmax.f32 %v5137_v23, 0.0 }
 0x12e   : > { %v3187_v36 = vmax.f32 %v3185_v32, %v3186_v7  ;;  %3671 = vrot.lane.b32.xlu2 %v2896_v17, %s4894_s8  ;;  %v8853_v1 = vmax.f32 %v5163_v39, 0.0  ;;  %3735 = vrot.lane.b32.xlu1 %v3184_v56, %s4894_s8  ;;  %v2327_v8 = vmax.f32 %v2325_v10, %v2326_v13  ;;  %v8594_v23 = vmax.f32 %v5820_v19, 0.0  ;;  %v3722_v10 = vpop.permute.xlu0 %3721 }
 0x12f   : > { %v4041_v41 = vsel %vm2248_vm2, %v8852_v43, %v3658_v34  ;;  %v2900_v44 = vrot.slane %v2899_v22, 4  ;;  %v1662_v33 = vpop.f32.mrf.mxu2  ;;  %v2615_v9 = vmax.f32 %v2613_v26, %v2614_v6  ;;  %v8598_v0 = vmax.f32 %v5823_v47, 0.0  ;;  %v1281_v17 = vpop.f32.mrf.mxu0 }
 0x130   : > { %v4042_v14 = vsel %vm2248_vm2, %v8853_v1, %v3658_v34  ;;  %v3188_v58 = vrot.slane %v3187_v36, 4  ;;  %4297 = vst [vmem:[%s5676_s19 + $0x400] sm:$0xff] %v4041_v41  ;;  %v1854_v32 = vpop.f32.mrf.mxu3  ;;  %v5849_v39 = vadd.f32 %v5619_v46, %v1662_v33  ;;  %v2328_v49 = vrot.slane %v2327_v8, 1  ;;  %v1473_v43 = vpop.f32.mrf.mxu1  ;;  %v207_v41 = vld [vmem:[%s4975_s5 + $0x118] sm:$0xff] }
 0x131   : > { %4298 = vst [vmem:[%s5676_s19 + $0x408] sm:$0xff] %v4042_v14  ;;  %v2901_v7 = vmax.f32 %v2899_v22, %v2900_v44  ;;  %v8854_v13 = vmax.f32 %v5140_v24, 0.0  ;;  %v8855_v34 = vmax.f32 %v5166_v40, 0.0  ;;  %v271_v1 = vld [vmem:[%s4975_s5 + $0x318] sm:$0xff]  ;;  %v5860_v14 = vadd.f32 %v5619_v46, %v1854_v32 }
 0x132   : > { %v3189_v56 = vmax.f32 %v3187_v36, %v3188_v58  ;;  %v5864_v33 = vadd.f32 %v5619_v46, %v1281_v17  ;;  %v5867_v22 = vadd.f32 %v5619_v46, %v1473_v43  ;;  %v335_v24 = vld [vmem:[%s4975_s5 + $0x518] sm:$0xff]  ;;  %v2329_v44 = vmax.f32 %v2327_v8, %v2328_v49 }
 0x133   : > { %v4105_v26 = vsel %vm2248_vm2, %v8854_v13, %v3722_v10  ;;  %v4106_v6 = vsel %vm2248_vm2, %v8855_v34, %v3722_v10  ;;  %v399_v36 = vld [vmem:[%s4975_s5 + $0x718] sm:$0xff]  ;;  %v2616_v40 = vrot.slane %v2615_v9, 1  ;;  %v2902_v58 = vrot.slane %v2901_v7, 2  ;;  %4547 = vmatmul.msk.f32.gmra.mxu0 %vm434_vm1, %v207_v41 }
 0x134   : > { %4361 = vst [vmem:[%s5676_s19 + $0x600] sm:$0xff] %v4105_v26  ;;  %v3190_v10 = vrot.slane %v3189_v56, 2  ;;  %v2330_v13 = vsel %vm2248_vm2, %v8594_v23, -inf  ;;  %v2618_v32 = vsel %vm2248_vm2, %v8598_v0, -inf  ;;  %v8595_v17 = vmax.f32 %v5864_v33, 0.0  ;;  %4611 = vmatmul.msk.f32.gmra.mxu1 %vm434_vm1, %v271_v1  ;;  %4675 = vmatmul.msk.f32.gmra.mxu2 %vm434_vm1, %v335_v24 }
 0x135   : > { %4362 = vst [vmem:[%s5676_s19 + $0x608] sm:$0xff] %v4106_v6  ;;  %v8597_v26 = vmax.f32 %v5867_v22, 0.0  ;;  %v8600_v8 = vmax.f32 %v5849_v39, 0.0  ;;  %v2617_v34 = vmax.f32 %v2615_v9, %v2616_v40  ;;  %v2903_v6 = vmax.f32 %v2901_v7, %v2902_v58  ;;  %4739 = vmatmul.msk.f32.gmra.mxu3 %vm434_vm1, %v399_v36 }
 0x136   : > { %v3726_v49 = vpop.permute.xlu2 %3725  ;;  %3545 = vrot.lane.b32.xlu2 %v2329_v44, %s4894_s8  ;;  %v3191_v43 = vmax.f32 %v3189_v56, %v3190_v10  ;;  %v2331_v23 = vsel %vm2248_vm2, %v8595_v17, -inf  ;;  %v8856_v1 = vmax.f32 %v5287_v15, 0.0  ;;  %v8857_v44 = vmax.f32 %v5315_v63, 0.0  ;;  %v272_v17 = vld [vmem:[%s4975_s5 + $0x320] sm:$0xff] }
 0x137   : > { %v2619_v41 = vsel %vm2248_vm2, %v8597_v26, -inf  ;;  %v8606_v7 = vmax.f32 %v5860_v14, 0.0  ;;  %v2332_v56 = vmax.f32 %v2330_v13, %v2331_v23  ;;  %3609 = vrot.lane.b32.xlu1 %v2617_v34, %s4894_s8  ;;  %v1665_v58 = vpop.f32.mrf.mxu2  ;;  %v2904_v36 = vrot.slane %v2903_v6, 1  ;;  %v1284_v23 = vpop.f32.mrf.mxu0 }
 0x138   : > { %v4109_v24 = vsel %vm2248_vm2, %v8856_v1, %v3726_v49  ;;  %v4110_v9 = vsel %vm2248_vm2, %v8857_v44, %v3726_v49  ;;  %v2620_v40 = vmax.f32 %v2618_v32, %v2619_v41  ;;  %v1857_v10 = vpop.f32.mrf.mxu3  ;;  %v5903_v15 = vadd.f32 %v5619_v46, %v1665_v58  ;;  %v3532_v49 = vpop.permute.xlu0 %3531  ;;  %v208_v58 = vld [vmem:[%s4975_s5 + $0x120] sm:$0xff] }
 0x139   : > { %4365 = vst [vmem:[%s5676_s19 + $0x620] sm:$0xff] %v4109_v24  ;;  %v5906_v63 = vadd.f32 %v5619_v46, %v1857_v10  ;;  %v3192_v13 = vrot.slane %v3191_v43, 1  ;;  %v2333_v32 = vrot.slane %v2332_v56, 4  ;;  %v8858_v34 = vmax.f32 %v5181_v53, 0.0  ;;  %v336_v53 = vld [vmem:[%s4975_s5 + $0x520] sm:$0xff] }
 0x13a   : > { %4366 = vst [vmem:[%s5676_s19 + $0x628] sm:$0xff] %v4110_v9  ;;  %v2621_v41 = vrot.slane %v2620_v40, 4  ;;  %v8859_v24 = vmax.f32 %v5204_v16, 0.0  ;;  %v1476_v9 = vpop.f32.mrf.mxu1  ;;  %v2906_v10 = vsel %vm2248_vm2, %v8600_v8, -inf  ;;  %v8609_v59 = vmax.f32 %v5903_v15, 0.0 }
 0x13b   : > { %v3915_v1 = vsel %vm2248_vm2, %v8858_v34, %v3532_v49  ;;  %v8605_v26 = vmax.f32 %v5906_v63, 0.0  ;;  %v3194_v34 = vsel %vm2248_vm2, %v8606_v7, -inf  ;;  %v2334_v16 = vmax.f32 %v2332_v56, %v2333_v32  ;;  %4548 = vmatmul.msk.f32.gmra.mxu0 %vm434_vm1, %v208_v58 }
 0x13c   : > { %v3916_v44 = vsel %vm2248_vm2, %v8859_v24, %v3532_v49  ;;  %4171 = vst [vmem:[%s5676_s19 + $0x10] sm:$0xff] %v3915_v1  ;;  %v2622_v0 = vmax.f32 %v2620_v40, %v2621_v41  ;;  %v2905_v49 = vmax.f32 %v2903_v6, %v2904_v36  ;;  %v400_v24 = vld [vmem:[%s4975_s5 + $0x720] sm:$0xff]  ;;  %v2907_v37 = vsel %vm2248_vm2, %v8609_v59, -inf  ;;  %4612 = vmatmul.msk.f32.gmra.mxu1 %vm434_vm1, %v272_v17 }
 0x13d   : > { %4172 = vst [vmem:[%s5676_s19 + $0x18] sm:$0xff] %v3916_v44  ;;  %v3195_v8 = vsel %vm2248_vm2, %v8605_v26, -inf  ;;  %v5935_v1 = vadd.f32 %v5619_v46, %v1284_v23  ;;  %v3193_v56 = vmax.f32 %v3191_v43, %v3192_v13  ;;  %v2908_v40 = vmax.f32 %v2906_v10, %v2907_v37  ;;  %4676 = vmatmul.msk.f32.gmra.mxu2 %vm434_vm1, %v336_v53 }
 0x13e   : > { %v3196_v6 = vmax.f32 %v3194_v34, %v3195_v8  ;;  %3673 = vrot.lane.b32.xlu0 %v2905_v49, %s4894_s8  ;;  %v3724_v36 = vpop.permute.xlu1 %3723  ;;  %v2623_v32 = vrot.slane %v2622_v0, 2  ;;  %v2335_v41 = vrot.slane %v2334_v16, 2  ;;  %v5942_v44 = vadd.f32 %v5619_v46, %v1476_v9  ;;  %4740 = vmatmul.msk.f32.gmra.mxu3 %vm434_vm1, %v400_v24  ;;  %v3600_v53 = vpop.permute.xlu2 %3599 }
 0x13f   : > { %v8860_v23 = vmax.f32 %v5212_v29, 0.0  ;;  %v8861_v37 = vmax.f32 %v5240_v61, 0.0  ;;  %3737 = vrot.lane.b32.xlu2 %v3193_v56, %s4894_s8  ;;  %v2909_v43 = vrot.slane %v2908_v40, 4  ;;  %v1668_v58 = vpop.f32.mrf.mxu2  ;;  %v8604_v49 = vmax.f32 %v5935_v1, 0.0 }
 0x140   : > { %v3197_v13 = vrot.slane %v3196_v6, 4  ;;  %v2624_v9 = vmax.f32 %v2622_v0, %v2623_v32  ;;  %v1860_v10 = vpop.f32.mrf.mxu3  ;;  %v2336_v29 = vmax.f32 %v2334_v16, %v2335_v41  ;;  %v8862_v24 = vmax.f32 %v5333_v62, 0.0  ;;  %v273_v0 = vld [vmem:[%s4975_s5 + $0x328] sm:$0xff] }
 0x141   : > { %v4107_v17 = vsel %vm2248_vm2, %v8860_v23, %v3724_v36  ;;  %v4108_v8 = vsel %vm2248_vm2, %v8861_v37, %v3724_v36  ;;  %v2910_v34 = vmax.f32 %v2908_v40, %v2909_v43  ;;  %v3596_v36 = vpop.permute.xlu0 %3595  ;;  %v1287_v23 = vpop.f32.mrf.mxu0  ;;  %v8602_v32 = vmax.f32 %v5942_v44, 0.0  ;;  %v337_v43 = vld [vmem:[%s4975_s5 + $0x528] sm:$0xff] }
 0x142   : > { %4363 = vst [vmem:[%s5676_s19 + $0x610] sm:$0xff] %v4107_v17  ;;  %v3198_v61 = vmax.f32 %v3196_v6, %v3197_v13  ;;  %v3983_v56 = vsel %vm2248_vm2, %v8862_v24, %v3600_v53  ;;  %v209_v17 = vld [vmem:[%s4975_s5 + $0x128] sm:$0xff]  ;;  %v8863_v37 = vmax.f32 %v5354_v12, 0.0  ;;  %v8864_v40 = vmax.f32 %v5184_v54, 0.0 }
 0x143   : > { %4364 = vst [vmem:[%s5676_s19 + $0x618] sm:$0xff] %v4108_v8  ;;  %v8865_v62 = vmax.f32 %v5207_v21, 0.0  ;;  %v1479_v8 = vpop.f32.mrf.mxu1  ;;  %v5973_v13 = vadd.f32 %v5619_v46, %v1668_v58  ;;  %v5977_v12 = vadd.f32 %v5619_v46, %v1287_v23  ;;  %v401_v54 = vld [vmem:[%s4975_s5 + $0x728] sm:$0xff]  ;;  %v2625_v24 = vrot.slane %v2624_v9, 1  ;;  %4549 = vmatmul.msk.f32.gmra.mxu0 %vm434_vm1, %v209_v17 }
 0x144   : > { %v3984_v16 = vsel %vm2248_vm2, %v8863_v37, %v3600_v53  ;;  %4239 = vst [vmem:[%s5676_s19 + $0x230] sm:$0xff] %v3983_v56  ;;  %v3979_v6 = vsel %vm2248_vm2, %v8864_v40, %v3596_v36  ;;  %v5980_v53 = vadd.f32 %v5619_v46, %v1479_v8  ;;  %4613 = vmatmul.msk.f32.gmra.mxu1 %vm434_vm1, %v273_v0  ;;  %v2337_v21 = vrot.slane %v2336_v29, 1 }
 0x145   : > { %v3980_v41 = vsel %vm2248_vm2, %v8865_v62, %v3596_v36  ;;  %4240 = vst [vmem:[%s5676_s19 + $0x238] sm:$0xff] %v3984_v16  ;;  %v2911_v56 = vrot.slane %v2910_v34, 2  ;;  %v3199_v36 = vrot.slane %v3198_v61, 2  ;;  %v5987_v58 = vadd.f32 %v5619_v46, %v1860_v10  ;;  %4677 = vmatmul.msk.f32.gmra.mxu2 %vm434_vm1, %v337_v43 }
 0x146   : > { %4235 = vst [vmem:[%s5676_s19 + $0x210] sm:$0xff] %v3979_v6  ;;  %v8603_v23 = vmax.f32 %v5977_v12, 0.0  ;;  %v8601_v37 = vmax.f32 %v5980_v53, 0.0  ;;  %v2626_v16 = vmax.f32 %v2624_v9, %v2625_v24  ;;  %v2339_v17 = vsel %vm2248_vm2, %v8604_v49, -inf  ;;  %4741 = vmatmul.msk.f32.gmra.mxu3 %vm434_vm1, %v401_v54  ;;  %v3534_v54 = vpop.permute.xlu1 %3533 }
 0x147   : > { %4236 = vst [vmem:[%s5676_s19 + $0x218] sm:$0xff] %v3980_v41  ;;  %v2338_v0 = vmax.f32 %v2336_v29, %v2337_v21  ;;  %v2912_v40 = vmax.f32 %v2910_v34, %v2911_v56  ;;  %v3200_v6 = vmax.f32 %v3198_v61, %v3199_v36  ;;  %v2627_v10 = vsel %vm2248_vm2, %v8602_v32, -inf  ;;  %v1671_v29 = vpop.f32.mrf.mxu2 }
 0x148   : > { %v8611_v62 = vmax.f32 %v5973_v13, 0.0  ;;  %v2340_v41 = vsel %vm2248_vm2, %v8603_v23, -inf  ;;  %v2628_v9 = vsel %vm2248_vm2, %v8601_v37, -inf  ;;  %3611 = vrot.lane.b32.xlu2 %v2626_v16, %s4894_s8  ;;  %v6010_v8 = vadd.f32 %v5619_v46, %v1671_v29  ;;  %v1863_v43 = vpop.f32.mrf.mxu3 }
 0x149   : > { %v2341_v34 = vmax.f32 %v2339_v17, %v2340_v41  ;;  %v2629_v61 = vmax.f32 %v2627_v10, %v2628_v9  ;;  %3547 = vrot.lane.b32.xlu0 %v2338_v0, %s4894_s8  ;;  %v2913_v24 = vrot.slane %v2912_v40, 1  ;;  %v8608_v21 = vmax.f32 %v5987_v58, 0.0  ;;  %v1290_v10 = vpop.f32.mrf.mxu0  ;;  %v210_v41 = vld [vmem:[%s4975_s5 + $0x130] sm:$0xff] }
 0x14a   : > { %v6014_v56 = vadd.f32 %v5619_v46, %v1863_v43  ;;  %v8866_v36 = vmax.f32 %v5255_v27, 0.0  ;;  %v8867_v17 = vmax.f32 %v5276_v2, 0.0  ;;  %v274_v9 = vld [vmem:[%s4975_s5 + $0x330] sm:$0xff]  ;;  %v8610_v32 = vmax.f32 %v6010_v8, 0.0 }
 0x14b   : > { %v2342_v29 = vrot.slane %v2341_v34, 4  ;;  %v2630_v37 = vrot.slane %v2629_v61, 4  ;;  %v1482_v23 = vpop.f32.mrf.mxu1  ;;  %v338_v43 = vld [vmem:[%s4975_s5 + $0x530] sm:$0xff]  ;;  %v3201_v49 = vrot.slane %v3200_v6, 1  ;;  %v2915_v27 = vsel %vm2248_vm2, %v8611_v62, -inf  ;;  %4550 = vmatmul.msk.f32.gmra.mxu0 %vm434_vm1, %v210_v41  ;;  %v339_v62 = vld [vmem:[%s4975_s5 + $0x538] sm:$0xff] }
 0x14c   : > { %v3917_v16 = vsel %vm2248_vm2, %v8866_v36, %v3534_v54  ;;  %v3918_v0 = vsel %vm2248_vm2, %v8867_v17, %v3534_v54  ;;  %v8607_v2 = vmax.f32 %v6014_v56, 0.0  ;;  %v2914_v36 = vmax.f32 %v2912_v40, %v2913_v24  ;;  %v402_v54 = vld [vmem:[%s4975_s5 + $0x730] sm:$0xff]  ;;  %4614 = vmatmul.msk.f32.gmra.mxu1 %vm434_vm1, %v274_v9 }
 0x14d   : > { %4173 = vst [vmem:[%s5676_s19 + $0x20] sm:$0xff] %v3917_v16  ;;  %v2343_v17 = vmax.f32 %v2341_v34, %v2342_v29  ;;  %v2631_v26 = vmax.f32 %v2629_v61, %v2630_v37  ;;  %v2916_v7 = vsel %vm2248_vm2, %v8610_v32, -inf  ;;  %v6037_v16 = vadd.f32 %v5619_v46, %v1290_v10  ;;  %4678 = vmatmul.msk.f32.gmra.mxu2 %vm434_vm1, %v338_v43  ;;  %v3662_v61 = vpop.permute.xlu0 %3661 }
 0x14e   : > { %4174 = vst [vmem:[%s5676_s19 + $0x28] sm:$0xff] %v3918_v0  ;;  %v3203_v0 = vsel %vm2248_vm2, %v8608_v21, -inf  ;;  %v2917_v40 = vmax.f32 %v2915_v27, %v2916_v7  ;;  %v3204_v37 = vsel %vm2248_vm2, %v8607_v2, -inf  ;;  %v6048_v34 = vadd.f32 %v5619_v46, %v1482_v23  ;;  %3675 = vrot.lane.b32.xlu1 %v2914_v36, %s4894_s8  ;;  %4742 = vmatmul.msk.f32.gmra.mxu3 %vm434_vm1, %v402_v54 }
 0x14f   : > { %v3205_v24 = vmax.f32 %v3203_v0, %v3204_v37  ;;  %v3202_v10 = vmax.f32 %v3200_v6, %v3201_v49  ;;  %v8868_v41 = vmax.f32 %v5284_v11, 0.0  ;;  %v8869_v9 = vmax.f32 %v5312_v30, 0.0  ;;  %v1674_v49 = vpop.f32.mrf.mxu2  ;;  %v3538_v37 = vpop.permute.xlu2 %3537 }
 0x150   : > { %v2918_v23 = vrot.slane %v2917_v40, 4  ;;  %v2344_v27 = vrot.slane %v2343_v17, 2  ;;  %v8615_v43 = vmax.f32 %v6037_v16, 0.0  ;;  %v1866_v6 = vpop.f32.mrf.mxu3  ;;  %v2632_v11 = vrot.slane %v2631_v26, 2 }
 0x151   : > { %v4045_v7 = vsel %vm2248_vm2, %v8868_v41, %v3662_v61  ;;  %v4046_v29 = vsel %vm2248_vm2, %v8869_v9, %v3662_v61  ;;  %v3206_v36 = vrot.slane %v3205_v24, 4  ;;  %3739 = vrot.lane.b32.xlu0 %v3202_v10, %s4894_s8  ;;  %v6065_v0 = vadd.f32 %v5619_v46, %v1674_v49  ;;  %v3598_v61 = vpop.permute.xlu1 %3597  ;;  %v211_v41 = vld [vmem:[%s4975_s5 + $0x138] sm:$0xff]  ;;  %v1293_v59 = vpop.f32.mrf.mxu0 }
 0x152   : > { %4301 = vst [vmem:[%s5676_s19 + $0x420] sm:$0xff] %v4045_v7  ;;  %v2919_v54 = vmax.f32 %v2917_v40, %v2918_v23  ;;  %v275_v7 = vld [vmem:[%s4975_s5 + $0x338] sm:$0xff]  ;;  %v2345_v9 = vmax.f32 %v2343_v17, %v2344_v27  ;;  %v8871_v40 = vmax.f32 %v5430_v38, 0.0  ;;  %v8872_v21 = vmax.f32 %v5258_v28, 0.0 }
 0x153   : > { %4302 = vst [vmem:[%s5676_s19 + $0x428] sm:$0xff] %v4046_v29  ;;  %v3207_v10 = vmax.f32 %v3205_v24, %v3206_v36  ;;  %v8870_v29 = vmax.f32 %v5406_v52, 0.0  ;;  %v1485_v32 = vpop.f32.mrf.mxu1  ;;  %v8612_v30 = vmax.f32 %v6065_v0, 0.0  ;;  %v6081_v17 = vadd.f32 %v5619_v46, %v1866_v6  ;;  %v403_v28 = vld [vmem:[%s4975_s5 + $0x738] sm:$0xff]  ;;  %4551 = vmatmul.msk.f32.gmra.mxu0 %vm434_vm1, %v211_v41 }
 0x154   : > { %v3922_v23 = vsel %vm2248_vm2, %v8871_v40, %v3538_v37  ;;  %v3981_v49 = vsel %vm2248_vm2, %v8872_v21, %v3598_v61  ;;  %v8873_v52 = vmax.f32 %v5279_v3, 0.0  ;;  %v6088_v24 = vadd.f32 %v5619_v46, %v1293_v59  ;;  %4615 = vmatmul.msk.f32.gmra.mxu1 %vm434_vm1, %v275_v7 }
 0x155   : > { %v3921_v2 = vsel %vm2248_vm2, %v8870_v29, %v3538_v37  ;;  %4178 = vst [vmem:[%s5676_s19 + $0x48] sm:$0xff] %v3922_v23  ;;  %v6093_v21 = vadd.f32 %v5619_v46, %v1485_v32  ;;  %v2346_v27 = vrot.slane %v2345_v9, 1  ;;  %v2633_v36 = vmax.f32 %v2631_v26, %v2632_v11  ;;  %4679 = vmatmul.msk.f32.gmra.mxu2 %vm434_vm1, %v339_v62  ;;  %v404_v29 = vld [vmem:[%s4975_s5 + $0x740] sm:$0xff] }
 0x156   : > { %4177 = vst [vmem:[%s5676_s19 + $0x40] sm:$0xff] %v3921_v2  ;;  %v3982_v38 = vsel %vm2248_vm2, %v8873_v52, %v3598_v61  ;;  %v2920_v2 = vrot.slane %v2919_v54, 2  ;;  %v2348_v3 = vsel %vm2248_vm2, %v8615_v43, -inf  ;;  %v8874_v6 = vmax.f32 %v6048_v34, 0.0  ;;  %4743 = vmatmul.msk.f32.gmra.mxu3 %vm434_vm1, %v403_v28 }
 0x157   : > { %4237 = vst [vmem:[%s5676_s19 + $0x220] sm:$0xff] %v3981_v49  ;;  %v8614_v37 = vmax.f32 %v6088_v24, 0.0  ;;  %v3208_v32 = vrot.slane %v3207_v10, 2  ;;  %v8613_v61 = vmax.f32 %v6093_v21, 0.0  ;;  %v2347_v26 = vmax.f32 %v2345_v9, %v2346_v27 }
 0x158   : > { %v2636_v59 = vsel %vm2248_vm2, %v8874_v6, -inf  ;;  %4238 = vst [vmem:[%s5676_s19 + $0x228] sm:$0xff] %v3982_v38  ;;  %v2634_v11 = vrot.slane %v2633_v36, 1  ;;  %v2921_v41 = vmax.f32 %v2919_v54, %v2920_v2  ;;  %v2924_v7 = vsel %vm2248_vm2, %v8612_v30, -inf  ;;  %v1677_v54 = vpop.f32.mrf.mxu2  ;;  %v1869_v52 = vpop.f32.mrf.mxu3  ;;  %v212_v30 = vld [vmem:[%s4975_s5 + $0x140] sm:$0xff] }
 0x159   : > { %v2349_v40 = vsel %vm2248_vm2, %v8614_v37, -inf  ;;  %v3209_v62 = vmax.f32 %v3207_v10, %v3208_v32  ;;  %v2637_v49 = vsel %vm2248_vm2, %v8613_v61, -inf  ;;  %3549 = vrot.lane.b32.xlu1 %v2347_v26, %s4894_s8  ;;  %v6121_v27 = vadd.f32 %v5619_v46, %v1677_v54  ;;  %v3666_v10 = vpop.permute.xlu2 %3665  ;;  %v1296_v54 = vpop.f32.mrf.mxu0  ;;  %v276_v61 = vld [vmem:[%s4975_s5 + $0x340] sm:$0xff] }
 0x15a   : > { %v2350_v23 = vmax.f32 %v2348_v3, %v2349_v40  ;;  %v2635_v9 = vmax.f32 %v2633_v36, %v2634_v11  ;;  %v2922_v38 = vrot.slane %v2921_v41, 1  ;;  %v2638_v28 = vmax.f32 %v2636_v59, %v2637_v49  ;;  %v3536_v3 = vpop.permute.xlu1 %3535 }
 0x15b   : > { %v6124_v2 = vadd.f32 %v5619_v46, %v1869_v52  ;;  %v3210_v6 = vrot.slane %v3209_v62, 1  ;;  %v8875_v36 = vmax.f32 %v5427_v25, 0.0  ;;  %v8876_v59 = vmax.f32 %v5465_v48, 0.0  ;;  %v1488_v52 = vpop.f32.mrf.mxu1  ;;  %4552 = vmatmul.msk.f32.gmra.mxu0 %vm434_vm1, %v212_v30 }
 0x15c   : > { %v2351_v32 = vrot.slane %v2350_v23, 4  ;;  %3613 = vrot.lane.b32.xlu0 %v2635_v9, %s4894_s8  ;;  %v8877_v40 = vmax.f32 %v5330_v55, 0.0  ;;  %v2639_v37 = vrot.slane %v2638_v28, 4  ;;  %v8878_v48 = vmax.f32 %v5351_v45, 0.0  ;;  %4616 = vmatmul.msk.f32.gmra.mxu1 %vm434_vm1, %v276_v61 }
 0x15d   : > { %v4049_v26 = vsel %vm2248_vm2, %v8875_v36, %v3666_v10  ;;  %v4050_v11 = vsel %vm2248_vm2, %v8876_v59, %v3666_v10  ;;  %v340_v36 = vld [vmem:[%s4975_s5 + $0x540] sm:$0xff]  ;;  %v6147_v59 = vadd.f32 %v5619_v46, %v1296_v54  ;;  %v2923_v43 = vmax.f32 %v2921_v41, %v2922_v38 }
 0x15e   : > { %v3919_v49 = vsel %vm2248_vm2, %v8877_v40, %v3536_v3  ;;  %4305 = vst [vmem:[%s5676_s19 + $0x440] sm:$0xff] %v4049_v26  ;;  %v3920_v10 = vsel %vm2248_vm2, %v8878_v48, %v3536_v3  ;;  %v2352_v55 = vmax.f32 %v2350_v23, %v2351_v32  ;;  %v6150_v40 = vadd.f32 %v5619_v46, %v1488_v52  ;;  %v3728_v46 = vpop.permute.xlu0 %3727 }
 0x15f   : > { %4306 = vst [vmem:[%s5676_s19 + $0x448] sm:$0xff] %v4050_v11  ;;  %v8879_v9 = vmax.f32 %v6081_v17, 0.0  ;;  %v2640_v25 = vmax.f32 %v2638_v28, %v2639_v37  ;;  %v8880_v45 = vmax.f32 %v6121_v27, 0.0  ;;  %v8881_v23 = vmax.f32 %v6124_v2, 0.0  ;;  %3677 = vrot.lane.b32.xlu2 %v2923_v43, %s4894_s8  ;;  %4680 = vmatmul.msk.f32.gmra.mxu2 %vm434_vm1, %v340_v36 }
 0x160   : > { %4175 = vst [vmem:[%s5676_s19 + $0x30] sm:$0xff] %v3919_v49  ;;  %v3211_v37 = vmax.f32 %v3209_v62, %v3210_v6  ;;  %4744 = vmatmul.msk.f32.gmra.mxu3 %vm434_vm1, %v404_v29  ;;  %v8882_v28 = vmax.f32 %v5362_v57, 0.0  ;;  %v8883_v30 = vmax.f32 %v5391_v31, 0.0  ;;  %v8619_v43 = vmax.f32 %v6147_v59, 0.0  ;;  %v1680_v29 = vpop.f32.mrf.mxu2  ;;  %v1872_v57 = vpop.f32.mrf.mxu3  ;;  %v6183_v31 = vld [vmem:[%s8510_s2] ss:$0 sm:$0xff] }
 0x161   : > { %v3212_v26 = vsel %vm2248_vm2, %v8879_v9, -inf  ;;  %v2925_v3 = vsel %vm2248_vm2, %v8880_v45, -inf  ;;  %v3213_v32 = vsel %vm2248_vm2, %v8881_v23, -inf  ;;  %4176 = vst [vmem:[%s5676_s19 + $0x38] sm:$0xff] %v3920_v10  ;;  %v2641_v49 = vrot.slane %v2640_v25, 2  ;;  %v3540_v48 = vpop.permute.xlu2 %3539 }
 0x162   : > { %v2926_v41 = vmax.f32 %v2924_v7, %v2925_v3  ;;  %v3214_v38 = vmax.f32 %v3212_v26, %v3213_v32  ;;  %v4111_v11 = vsel %vm2248_vm2, %v8882_v28, %v3728_v46  ;;  %v4112_v61 = vsel %vm2248_vm2, %v8883_v30, %v3728_v46  ;;  %3741 = vrot.lane.b32.xlu1 %v3211_v37, %s4894_s8  ;;  %v3664_v10 = vpop.permute.xlu1 %3663  ;;  %v8887_v46 = vld [vmem:[#allocation13_spill] sm:$0xff] }
 0x163   : > { %v2353_v7 = vrot.slane %v2352_v55, 2  ;;  %v8621_v9 = vmax.f32 %v6150_v40, 0.0  ;;  %4367 = vst [vmem:[%s5676_s19 + $0x630] sm:$0xff] %v4111_v11  ;;  %v6186_v62 = vadd.f32 %v6183_v31, %v1680_v29  ;;  %v6189_v6 = vadd.f32 %v6183_v31, %v1872_v57  ;;  %v1299_v11 = vpop.f32.mrf.mxu0  ;;  %v1491_v30 = vpop.f32.mrf.mxu1  ;;  %v277_v29 = vld [vmem:[%s4975_s5 + $0x348] sm:$0xff] }
 0x164   : > { %v2927_v54 = vrot.slane %v2926_v41, 4  ;;  %v3215_v52 = vrot.slane %v3214_v38, 4  ;;  %4368 = vst [vmem:[%s5676_s19 + $0x638] sm:$0xff] %v4112_v61  ;;  %v2642_v26 = vmax.f32 %v2640_v25, %v2641_v49  ;;  %v8886_v23 = vmax.f32 %v5483_v50, 0.0  ;;  %v213_v61 = vld [vmem:[%s4975_s5 + $0x148] sm:$0xff]  ;;  %4617 = vmatmul.msk.f32.gmra.mxu1 %vm434_vm1, %v277_v29 }
 0x165   : > { %8884 = vst [vmem:[#allocation34_spill] sm:$0xff] %v6186_v62  ;;  %v2354_v36 = vmax.f32 %v2352_v55, %v2353_v7  ;;  %v8888_v37 = vmax.f32 %v8887_v46, 0.0  ;;  %v8617_v55 = vmax.f32 %v6186_v62, 0.0  ;;  %v8616_v25 = vmax.f32 %v6189_v6, 0.0  ;;  %v8891_v7 = vld [vmem:[#allocation6_spill] sm:$0xff]  ;;  %4553 = vmatmul.msk.f32.gmra.mxu0 %vm434_vm1, %v213_v61 }
 0x166   : > { %8885 = vst [vmem:[#allocation35_spill] sm:$0xff] %v6189_v6  ;;  %v2928_v45 = vmax.f32 %v2926_v41, %v2927_v54  ;;  %v3216_v3 = vmax.f32 %v3214_v38, %v3215_v52  ;;  %v3923_v32 = vsel %vm2248_vm2, %v8886_v23, %v3540_v48  ;;  %v8889_v41 = vld [vmem:[#allocation5_spill] sm:$0xff]  ;;  %v8892_v49 = vmax.f32 %v8891_v7, 0.0  ;;  %v341_v52 = vld [vmem:[%s4975_s5 + $0x548] sm:$0xff] }
 0x167   : > { %v3924_v28 = vsel %vm2248_vm2, %v8888_v37, %v3540_v48  ;;  %4179 = vst [vmem:[%s5676_s19 + $0x50] sm:$0xff] %v3923_v32  ;;  %v8890_v50 = vmax.f32 %v8889_v41, 0.0  ;;  %v6211_v57 = vadd.f32 %v6183_v31, %v1299_v11  ;;  %v6214_v48 = vadd.f32 %v6183_v31, %v1491_v30  ;;  %v405_v23 = vld [vmem:[%s4975_s5 + $0x748] sm:$0xff]  ;;  %4681 = vmatmul.msk.f32.gmra.mxu2 %vm434_vm1, %v341_v52 }
 0x168   : > { %v4048_v54 = vsel %vm2248_vm2, %v8892_v49, %v3664_v10  ;;  %4180 = vst [vmem:[%s5676_s19 + $0x58] sm:$0xff] %v3924_v28  ;;  %v2355_v46 = vrot.slane %v2354_v36, 1  ;;  %v2643_v37 = vrot.slane %v2642_v26, 1  ;;  %v2929_v32 = vrot.slane %v2928_v45, 2  ;;  %4745 = vmatmul.msk.f32.gmra.mxu3 %vm434_vm1, %v405_v23  ;;  %v1683_v7 = vpop.f32.mrf.mxu2  ;;  %v1875_v49 = vpop.f32.mrf.mxu3 }
 0x169   : > { %v4047_v38 = vsel %vm2248_vm2, %v8890_v50, %v3664_v10  ;;  %8893 = vst [vmem:[#allocation13_spill] sm:$0xff] %v6211_v57  ;;  %v3217_v41 = vrot.slane %v3216_v3, 2  ;;  %v8618_v10 = vmax.f32 %v6211_v57, 0.0  ;;  %v8620_v28 = vmax.f32 %v6214_v48, 0.0 }
 0x16a   : > { %4303 = vst [vmem:[%s5676_s19 + $0x430] sm:$0xff] %v4047_v38  ;;  %v2356_v11 = vmax.f32 %v2354_v36, %v2355_v46  ;;  %v2644_v30 = vmax.f32 %v2642_v26, %v2643_v37  ;;  %v2357_v50 = vsel %vm2248_vm2, %v8619_v43, -inf  ;;  %v2645_v61 = vsel %vm2248_vm2, %v8621_v9, -inf  ;;  %v8897_v43 = vld [vmem:[#allocation16_spill] sm:$0xff]  ;;  %v278_v9 = vld [vmem:[%s4975_s5 + $0x350] sm:$0xff] }
 0x16b   : > { %4304 = vst [vmem:[%s5676_s19 + $0x438] sm:$0xff] %v4048_v54  ;;  %v2933_v29 = vsel %vm2248_vm2, %v8617_v55, -inf  ;;  %v3221_v38 = vsel %vm2248_vm2, %v8616_v25, -inf  ;;  %v2358_v36 = vsel %vm2248_vm2, %v8618_v10, -inf  ;;  %v2646_v26 = vsel %vm2248_vm2, %v8620_v28, -inf  ;;  %v3732_v55 = vpop.permute.xlu2 %3731  ;;  %v214_v28 = vld [vmem:[%s4975_s5 + $0x150] sm:$0xff] }
 0x16c   : > { %3551 = vrot.lane.b32.xlu2 %v2356_v11, %s4894_s8  ;;  %3615 = vrot.lane.b32.xlu1 %v2644_v30, %s4894_s8  ;;  %v2930_v54 = vmax.f32 %v2928_v45, %v2929_v32  ;;  %v3218_v52 = vmax.f32 %v3216_v3, %v3217_v41  ;;  %v2359_v46 = vmax.f32 %v2357_v50, %v2358_v36  ;;  %v3602_v11 = vpop.permute.xlu0 %3601  ;;  %v8896_v30 = vmax.f32 %v5514_v42, 0.0  ;;  %v8899_v32 = vld [vmem:[#allocation7_spill] sm:$0xff] }
 0x16d   : > { %v2647_v23 = vmax.f32 %v2645_v61, %v2646_v26  ;;  %v6246_v37 = vadd.f32 %v6183_v31, %v1683_v7  ;;  %v6249_v25 = vadd.f32 %v6183_v31, %v1875_v49  ;;  %v8898_v45 = vmax.f32 %v8897_v43, 0.0  ;;  %v8901_v61 = vld [vmem:[#allocation8_spill] sm:$0xff]  ;;  %v1302_v7 = vpop.f32.mrf.mxu0  ;;  %v1494_v49 = vpop.f32.mrf.mxu1  ;;  %4554 = vmatmul.msk.f32.gmra.mxu0 %vm434_vm1, %v214_v28  ;;  %4618 = vmatmul.msk.f32.gmra.mxu1 %vm434_vm1, %v278_v9 }
 0x16e   : > { %v4115_v10 = vsel %vm2248_vm2, %v8896_v30, %v3732_v55  ;;  %v8900_v41 = vmax.f32 %v8899_v32, 0.0  ;;  %v8902_v36 = vmax.f32 %v8901_v61, 0.0  ;;  %v2360_v42 = vrot.slane %v2359_v46, 4  ;;  %v406_v61 = vld [vmem:[%s4975_s5 + $0x750] sm:$0xff] }
 0x16f   : > { %8894 = vst [vmem:[#allocation5_spill] sm:$0xff] %v6246_v37  ;;  %v4116_v3 = vsel %vm2248_vm2, %v8898_v45, %v3732_v55  ;;  %v2648_v30 = vrot.slane %v2647_v23, 4  ;;  %v8626_v43 = vmax.f32 %v6246_v37, 0.0  ;;  %v8625_v55 = vmax.f32 %v6249_v25, 0.0  ;;  %v342_v45 = vld [vmem:[%s4975_s5 + $0x550] sm:$0xff] }
 0x170   : > { %8895 = vst [vmem:[#allocation6_spill] sm:$0xff] %v6249_v25  ;;  %v3985_v50 = vsel %vm2248_vm2, %v8900_v41, %v3602_v11  ;;  %v3986_v26 = vsel %vm2248_vm2, %v8902_v36, %v3602_v11  ;;  %v6271_v32 = vadd.f32 %v6183_v31, %v1302_v7  ;;  %v6274_v11 = vadd.f32 %v6183_v31, %v1494_v49 }
 0x171   : > { %4371 = vst [vmem:[%s5676_s19 + $0x650] sm:$0xff] %v4115_v10  ;;  %v2931_v41 = vrot.slane %v2930_v54, 1  ;;  %v3219_v36 = vrot.slane %v3218_v52, 1  ;;  %v2361_v6 = vmax.f32 %v2359_v46, %v2360_v42  ;;  %v2649_v62 = vmax.f32 %v2647_v23, %v2648_v30  ;;  %4682 = vmatmul.msk.f32.gmra.mxu2 %vm434_vm1, %v342_v45  ;;  %4746 = vmatmul.msk.f32.gmra.mxu3 %vm434_vm1, %v406_v61  ;;  %v8905_v42 = vld [vmem:[#allocation9_spill] sm:$0xff]  ;;  %v8909_v61 = vld [vmem:[#allocation18_spill] sm:$0xff] }
 0x172   : > { %4372 = vst [vmem:[%s5676_s19 + $0x658] sm:$0xff] %v4116_v3  ;;  %v2934_v57 = vsel %vm2248_vm2, %v8626_v43, -inf  ;;  %v3222_v10 = vsel %vm2248_vm2, %v8625_v55, -inf  ;;  %v3730_v3 = vpop.permute.xlu1 %3729  ;;  %v8906_v30 = vmax.f32 %v8905_v42, 0.0  ;;  %v8907_v55 = vld [vmem:[#allocation10_spill] sm:$0xff] }
 0x173   : > { %8903 = vst [vmem:[#allocation16_spill] sm:$0xff] %v6271_v32  ;;  %v2935_v7 = vmax.f32 %v2933_v29, %v2934_v57  ;;  %v3223_v49 = vmax.f32 %v3221_v38, %v3222_v10  ;;  %v2932_v46 = vmax.f32 %v2930_v54, %v2931_v41  ;;  %v3220_v23 = vmax.f32 %v3218_v52, %v3219_v36  ;;  %v1686_v29 = vpop.f32.mrf.mxu2  ;;  %v1878_v38 = vpop.f32.mrf.mxu3 }
 0x174   : > { %8904 = vst [vmem:[#allocation7_spill] sm:$0xff] %v6274_v11  ;;  %v8908_v43 = vmax.f32 %v8907_v55, 0.0  ;;  %v8628_v57 = vmax.f32 %v6271_v32, 0.0  ;;  %v6302_v52 = vadd.f32 %v6183_v31, %v1686_v29  ;;  %v2362_v55 = vrot.slane %v2361_v6, 2  ;;  %v408_v32 = vld [vmem:[%s4975_s5 + $0x760] sm:$0xff] }
 0x175   : > { %4241 = vst [vmem:[%s5676_s19 + $0x240] sm:$0xff] %v3985_v50  ;;  %v4113_v50 = vsel %vm2248_vm2, %v8906_v30, %v3730_v3  ;;  %v2936_v9 = vrot.slane %v2935_v7, 4  ;;  %v3224_v25 = vrot.slane %v3223_v49, 4  ;;  %3679 = vrot.lane.b32.xlu0 %v2932_v46, %s4894_s8  ;;  %3743 = vrot.lane.b32.xlu2 %v3220_v23, %s4894_s8  ;;  %v8910_v36 = vmax.f32 %v8909_v61, 0.0  ;;  %v1305_v42 = vpop.f32.mrf.mxu0  ;;  %v1497_v30 = vpop.f32.mrf.mxu1 }
 0x176   : > { %4242 = vst [vmem:[%s5676_s19 + $0x248] sm:$0xff] %v3986_v26  ;;  %v4114_v28 = vsel %vm2248_vm2, %v8908_v43, %v3730_v3  ;;  %v3606_v26 = vpop.permute.xlu2 %3605  ;;  %v2650_v43 = vrot.slane %v2649_v62, 2  ;;  %v8911_v3 = vld [vmem:[#allocation21_spill] sm:$0xff]  ;;  %v6313_v29 = vadd.f32 %v6183_v31, %v1878_v38  ;;  %v6317_v54 = vadd.f32 %v6183_v31, %v1305_v42 }
 0x177   : > { %4369 = vst [vmem:[%s5676_s19 + $0x640] sm:$0xff] %v4113_v50  ;;  %v2937_v45 = vmax.f32 %v2935_v7, %v2936_v9  ;;  %v3225_v41 = vmax.f32 %v3223_v49, %v3224_v25  ;;  %v3989_v10 = vsel %vm2248_vm2, %v8910_v36, %v3606_v26  ;;  %v8912_v46 = vmax.f32 %v8911_v3, 0.0  ;;  %v215_v50 = vld [vmem:[%s4975_s5 + $0x158] sm:$0xff] }
 0x178   : > { %4370 = vst [vmem:[%s5676_s19 + $0x648] sm:$0xff] %v4114_v28  ;;  %v279_v28 = vld [vmem:[%s4975_s5 + $0x358] sm:$0xff]  ;;  %v6320_v25 = vadd.f32 %v6183_v31, %v1497_v30  ;;  %v2651_v9 = vmax.f32 %v2649_v62, %v2650_v43  ;;  %v2363_v61 = vmax.f32 %v2361_v6, %v2362_v55  ;;  %v2366_v3 = vsel %vm2248_vm2, %v8628_v57, -inf  ;;  %4555 = vmatmul.msk.f32.gmra.mxu0 %vm434_vm1, %v215_v50 }
 0x179   : > { %v3990_v23 = vsel %vm2248_vm2, %v8912_v46, %v3606_v26  ;;  %8913 = vst [vmem:[#allocation8_spill] sm:$0xff] %v6313_v29  ;;  %v343_v7 = vld [vmem:[%s4975_s5 + $0x558] sm:$0xff]  ;;  %v2938_v26 = vrot.slane %v2937_v45, 2  ;;  %v3226_v36 = vrot.slane %v3225_v41, 2  ;;  %v8916_v38 = vmax.f32 %v6274_v11, 0.0  ;;  %4619 = vmatmul.msk.f32.gmra.mxu1 %vm434_vm1, %v279_v28 }
 0x17a   : > { %4245 = vst [vmem:[%s5676_s19 + $0x260] sm:$0xff] %v3989_v10  ;;  %v407_v49 = vld [vmem:[%s4975_s5 + $0x758] sm:$0xff]  ;;  %v8629_v46 = vmax.f32 %v6317_v54, 0.0  ;;  %v8631_v42 = vmax.f32 %v6320_v25, 0.0  ;;  %4683 = vmatmul.msk.f32.gmra.mxu2 %vm434_vm1, %v343_v7  ;;  %v2652_v6 = vrot.slane %v2651_v9, 1  ;;  %v2364_v43 = vrot.slane %v2363_v61, 1 }
 0x17b   : > { %8914 = vst [vmem:[#allocation9_spill] sm:$0xff] %v6317_v54  ;;  %v2654_v10 = vsel %vm2248_vm2, %v8916_v38, -inf  ;;  %v2939_v55 = vmax.f32 %v2937_v45, %v2938_v26  ;;  %4747 = vmatmul.msk.f32.gmra.mxu3 %vm434_vm1, %v407_v49  ;;  %v3227_v50 = vmax.f32 %v3225_v41, %v3226_v36  ;;  %v1689_v45 = vpop.f32.mrf.mxu2  ;;  %v1881_v26 = vpop.f32.mrf.mxu3  ;;  %v8923_v11 = vmax.f32 %v6313_v29, 0.0 }
 0x17c   : > { %8915 = vst [vmem:[#allocation10_spill] sm:$0xff] %v6320_v25  ;;  %v2367_v30 = vsel %vm2248_vm2, %v8629_v46, -inf  ;;  %v2655_v38 = vsel %vm2248_vm2, %v8631_v42, -inf  ;;  %v2653_v62 = vmax.f32 %v2651_v9, %v2652_v6  ;;  %v2365_v7 = vmax.f32 %v2363_v61, %v2364_v43  ;;  %v3604_v25 = vpop.permute.xlu1 %3603  ;;  %v8918_v9 = vld [vmem:[#allocation11_spill] sm:$0xff] }
 0x17d   : > { %4246 = vst [vmem:[%s5676_s19 + $0x268] sm:$0xff] %v3990_v23  ;;  %v2368_v28 = vmax.f32 %v2366_v3, %v2367_v30  ;;  %v2656_v57 = vmax.f32 %v2654_v10, %v2655_v38  ;;  %v6346_v23 = vadd.f32 %v6183_v31, %v1689_v45  ;;  %v6349_v46 = vadd.f32 %v6183_v31, %v1881_v26  ;;  %v8920_v3 = vld [vmem:[#allocation14_spill] sm:$0xff]  ;;  %v1308_v43 = vpop.f32.mrf.mxu0  ;;  %v1500_v30 = vpop.f32.mrf.mxu1  ;;  %v216_v38 = vld [vmem:[%s4975_s5 + $0x160] sm:$0xff] }
 0x17e   : > { %v2940_v42 = vrot.slane %v2939_v55, 1  ;;  %3617 = vrot.lane.b32.xlu2 %v2653_v62, %s4894_s8  ;;  %3553 = vrot.lane.b32.xlu0 %v2365_v7, %s4894_s8  ;;  %v8919_v61 = vmax.f32 %v8918_v9, 0.0  ;;  %v8921_v10 = vmax.f32 %v8920_v3, 0.0  ;;  %v280_v45 = vld [vmem:[%s4975_s5 + $0x360] sm:$0xff]  ;;  %v8922_v26 = vmax.f32 %v6302_v52, 0.0 }
 0x17f   : > { %8917 = vst [vmem:[#allocation18_spill] sm:$0xff] %v6349_v46  ;;  %v2369_v49 = vrot.slane %v2368_v28, 4  ;;  %v2657_v41 = vrot.slane %v2656_v57, 4  ;;  %v3230_v7 = vsel %vm2248_vm2, %v8923_v11, -inf  ;;  %v8638_v9 = vmax.f32 %v6346_v23, 0.0  ;;  %v344_v3 = vld [vmem:[%s4975_s5 + $0x560] sm:$0xff] }
 0x180   : > { %v3987_v36 = vsel %vm2248_vm2, %v8919_v61, %v3604_v25  ;;  %v3988_v6 = vsel %vm2248_vm2, %v8921_v10, %v3604_v25  ;;  %v2942_v62 = vsel %vm2248_vm2, %v8922_v26, -inf  ;;  %v8637_v61 = vmax.f32 %v6349_v46, 0.0  ;;  %4556 = vmatmul.msk.f32.gmra.mxu0 %vm434_vm1, %v216_v38 }
 0x181   : > { %4243 = vst [vmem:[%s5676_s19 + $0x250] sm:$0xff] %v3987_v36  ;;  %v2370_v54 = vmax.f32 %v2368_v28, %v2369_v49  ;;  %v2658_v25 = vmax.f32 %v2656_v57, %v2657_v41  ;;  %v2941_v10 = vmax.f32 %v2939_v55, %v2940_v42  ;;  %v3228_v37 = vrot.slane %v3227_v50, 1  ;;  %4620 = vmatmul.msk.f32.gmra.mxu1 %vm434_vm1, %v280_v45  ;;  %v3668_v57 = vpop.permute.xlu0 %3667  ;;  %v8926_v28 = vld [vmem:[#allocation12_spill] sm:$0xff] }
 0x182   : > { %4244 = vst [vmem:[%s5676_s19 + $0x258] sm:$0xff] %v3988_v6  ;;  %v2943_v26 = vsel %vm2248_vm2, %v8638_v9, -inf  ;;  %v3231_v11 = vsel %vm2248_vm2, %v8637_v61, -inf  ;;  %v6380_v29 = vadd.f32 %v6183_v31, %v1308_v43  ;;  %v6383_v36 = vadd.f32 %v6183_v31, %v1500_v30  ;;  %4684 = vmatmul.msk.f32.gmra.mxu2 %vm434_vm1, %v344_v3  ;;  %v8928_v43 = vld [vmem:[#allocation15_spill] sm:$0xff]  ;;  %v217_v61 = vld [vmem:[%s4975_s5 + $0x168] sm:$0xff] }
 0x183   : > { %v2944_v42 = vmax.f32 %v2942_v62, %v2943_v26  ;;  %v3232_v55 = vmax.f32 %v3230_v7, %v3231_v11  ;;  %3681 = vrot.lane.b32.xlu1 %v2941_v10, %s4894_s8  ;;  %v8927_v49 = vmax.f32 %v8926_v28, 0.0  ;;  %v2371_v6 = vrot.slane %v2370_v54, 2  ;;  %4748 = vmatmul.msk.f32.gmra.mxu3 %vm434_vm1, %v408_v32  ;;  %v1692_v3 = vpop.f32.mrf.mxu2  ;;  %v1884_v26 = vpop.f32.mrf.mxu3  ;;  %v281_v9 = vld [vmem:[%s4975_s5 + $0x368] sm:$0xff] }
 0x184   : > { %8924 = vst [vmem:[#allocation21_spill] sm:$0xff] %v6380_v29  ;;  %v8929_v30 = vmax.f32 %v8928_v43, 0.0  ;;  %v2659_v45 = vrot.slane %v2658_v25, 2  ;;  %v3229_v10 = vmax.f32 %v3227_v50, %v3228_v37  ;;  %v8639_v28 = vmax.f32 %v6380_v29, 0.0 }
 0x185   : > { %8925 = vst [vmem:[#allocation11_spill] sm:$0xff] %v6383_v36  ;;  %v4051_v41 = vsel %vm2248_vm2, %v8927_v49, %v3668_v57  ;;  %v2945_v62 = vrot.slane %v2944_v42, 4  ;;  %v3233_v7 = vrot.slane %v3232_v55, 4  ;;  %v2372_v11 = vmax.f32 %v2370_v54, %v2371_v6 }
 0x186   : > { %v4052_v38 = vsel %vm2248_vm2, %v8929_v30, %v3668_v57  ;;  %4307 = vst [vmem:[%s5676_s19 + $0x450] sm:$0xff] %v4051_v41  ;;  %v2660_v32 = vmax.f32 %v2658_v25, %v2659_v45  ;;  %v8640_v57 = vmax.f32 %v6383_v36, 0.0  ;;  %3745 = vrot.lane.b32.xlu0 %v3229_v10, %s4894_s8  ;;  %v1311_v41 = vpop.f32.mrf.mxu0  ;;  %v1503_v30 = vpop.f32.mrf.mxu1  ;;  %v6404_v50 = vadd.f32 %v6183_v31, %v1692_v3 }
 0x187   : > { %4308 = vst [vmem:[%s5676_s19 + $0x458] sm:$0xff] %v4052_v38  ;;  %v2946_v49 = vmax.f32 %v2944_v42, %v2945_v62  ;;  %v3234_v43 = vmax.f32 %v3232_v55, %v3233_v7  ;;  %v2373_v37 = vrot.slane %v2372_v11, 1  ;;  %v6407_v54 = vadd.f32 %v6183_v31, %v1884_v26  ;;  %v345_v42 = vld [vmem:[%s4975_s5 + $0x568] sm:$0xff] }
 0x188   : > { %8930 = vst [vmem:[#allocation14_spill] sm:$0xff] %v6404_v50  ;;  %v6410_v6 = vadd.f32 %v6183_v31, %v1311_v41  ;;  %v6413_v25 = vadd.f32 %v6183_v31, %v1503_v30  ;;  %v409_v55 = vld [vmem:[%s4975_s5 + $0x768] sm:$0xff]  ;;  %v2661_v45 = vrot.slane %v2660_v32, 1  ;;  %v2375_v10 = vsel %vm2248_vm2, %v8639_v28, -inf  ;;  %4557 = vmatmul.msk.f32.gmra.mxu0 %vm434_vm1, %v217_v61  ;;  %v218_v28 = vld [vmem:[%s4975_s5 + $0x170] sm:$0xff] }
 0x189   : > { %8931 = vst [vmem:[#allocation12_spill] sm:$0xff] %v6407_v54  ;;  %v2374_v38 = vmax.f32 %v2372_v11, %v2373_v37  ;;  %v2947_v62 = vrot.slane %v2946_v49, 2  ;;  %v3235_v7 = vrot.slane %v3234_v43, 2  ;;  %4621 = vmatmul.msk.f32.gmra.mxu1 %vm434_vm1, %v281_v9  ;;  %v2663_v41 = vsel %vm2248_vm2, %v8640_v57, -inf }
 0x18a   : > { %8932 = vst [vmem:[#allocation15_spill] sm:$0xff] %v6410_v6  ;;  %v8641_v3 = vmax.f32 %v6410_v6, 0.0  ;;  %4685 = vmatmul.msk.f32.gmra.mxu2 %vm434_vm1, %v345_v42  ;;  %v2662_v11 = vmax.f32 %v2660_v32, %v2661_v45  ;;  %v8934_v61 = vmax.f32 %v6413_v25, 0.0  ;;  %v3672_v42 = vpop.permute.xlu2 %3671  ;;  %v8936_v45 = vmax.f32 %v5711_v51, 0.0 }
 0x18b   : > { %8933 = vst [vmem:[#allocation36_spill] sm:$0xff] %v6413_v25  ;;  %3555 = vrot.lane.b32.xlu1 %v2374_v38, %s4894_s8  ;;  %v2948_v30 = vmax.f32 %v2946_v49, %v2947_v62  ;;  %v3236_v37 = vmax.f32 %v3234_v43, %v3235_v7  ;;  %4749 = vmatmul.msk.f32.gmra.mxu3 %vm434_vm1, %v409_v55  ;;  %v8935_v49 = vmax.f32 %v5671_v4, 0.0  ;;  %v1695_v7 = vpop.f32.mrf.mxu2  ;;  %v282_v25 = vld [vmem:[%s4975_s5 + $0x370] sm:$0xff]  ;;  %v8943_v36 = vmax.f32 %v6404_v50, 0.0 }
 0x18c   : > { %v2376_v9 = vsel %vm2248_vm2, %v8641_v3, -inf  ;;  %v2664_v57 = vsel %vm2248_vm2, %v8934_v61, -inf  ;;  %v4056_v62 = vsel %vm2248_vm2, %v8936_v45, %v3672_v42  ;;  %v1887_v3 = vpop.f32.mrf.mxu3  ;;  %v6446_v61 = vadd.f32 %v6183_v31, %v1695_v7  ;;  %v410_v50 = vld [vmem:[%s4975_s5 + $0x770] sm:$0xff] }
 0x18d   : > { %v2377_v38 = vmax.f32 %v2375_v10, %v2376_v9  ;;  %v2665_v32 = vmax.f32 %v2663_v41, %v2664_v57  ;;  %v4055_v43 = vsel %vm2248_vm2, %v8935_v49, %v3672_v42  ;;  %v6449_v55 = vadd.f32 %v6183_v31, %v1887_v3  ;;  %v3542_v57 = vpop.permute.xlu0 %3541  ;;  %4312 = vst [vmem:[%s5676_s19 + $0x478] sm:$0xff] %v4056_v62  ;;  %v8939_v9 = vld [vmem:[#allocation17_spill] sm:$0xff] }
 0x18e   : > { %4311 = vst [vmem:[%s5676_s19 + $0x470] sm:$0xff] %v4055_v43  ;;  %v2949_v4 = vrot.slane %v2948_v30, 1  ;;  %v3237_v10 = vrot.slane %v3236_v37, 1  ;;  %3619 = vrot.lane.b32.xlu0 %v2662_v11, %s4894_s8  ;;  %v8940_v42 = vmax.f32 %v8939_v9, 0.0  ;;  %v8941_v43 = vld [vmem:[#allocation20_spill] sm:$0xff]  ;;  %v1314_v7 = vpop.f32.mrf.mxu0  ;;  %v1506_v26 = vpop.f32.mrf.mxu1  ;;  %v2951_v62 = vsel %vm2248_vm2, %v8943_v36, -inf }
 0x18f   : > { %8937 = vst [vmem:[#allocation37_spill] sm:$0xff] %v6446_v61  ;;  %v2378_v41 = vrot.slane %v2377_v38, 4  ;;  %v2666_v51 = vrot.slane %v2665_v32, 4  ;;  %v8942_v45 = vmax.f32 %v8941_v43, 0.0  ;;  %v8648_v11 = vmax.f32 %v6446_v61, 0.0  ;;  %v346_v43 = vld [vmem:[%s4975_s5 + $0x570] sm:$0xff] }
 0x190   : > { %8938 = vst [vmem:[#allocation38_spill] sm:$0xff] %v6449_v55  ;;  %v3925_v49 = vsel %vm2248_vm2, %v8940_v42, %v3542_v57  ;;  %v8649_v9 = vmax.f32 %v6449_v55, 0.0  ;;  %v6468_v42 = vadd.f32 %v6183_v31, %v1314_v7  ;;  %v2950_v29 = vmax.f32 %v2948_v30, %v2949_v4  ;;  %4558 = vmatmul.msk.f32.gmra.mxu0 %vm434_vm1, %v218_v28 }
 0x191   : > { %v3926_v3 = vsel %vm2248_vm2, %v8942_v45, %v3542_v57  ;;  %4181 = vst [vmem:[%s5676_s19 + $0x60] sm:$0xff] %v3925_v49  ;;  %v8945_v57 = vmax.f32 %v6407_v54, 0.0  ;;  %v2379_v46 = vmax.f32 %v2377_v38, %v2378_v41  ;;  %v2667_v6 = vmax.f32 %v2665_v32, %v2666_v51  ;;  %4622 = vmatmul.msk.f32.gmra.mxu1 %vm434_vm1, %v282_v25  ;;  %v3670_v32 = vpop.permute.xlu1 %3669  ;;  %v8947_v41 = vld [vmem:[#allocation19_spill] sm:$0xff]  ;;  %v8975_v54 = vld [vmem:[#allocation28_spill] sm:$0xff] }
 0x192   : > { %8944 = vst [vmem:[#allocation17_spill] sm:$0xff] %v6468_v42  ;;  %v2952_v36 = vsel %vm2248_vm2, %v8648_v11, -inf  ;;  %v3240_v49 = vsel %vm2248_vm2, %v8649_v9, -inf  ;;  %v6483_v7 = vadd.f32 %v6183_v31, %v1506_v26  ;;  %v3238_v38 = vmax.f32 %v3236_v37, %v3237_v10  ;;  %3683 = vrot.lane.b32.xlu2 %v2950_v29, %s4894_s8  ;;  %4686 = vmatmul.msk.f32.gmra.mxu2 %vm434_vm1, %v346_v43  ;;  %v3546_v29 = vpop.permute.xlu2 %3545  ;;  %v283_v26 = vld [vmem:[%s4975_s5 + $0x378] sm:$0xff] }
 0x193   : > { %v3239_v45 = vsel %vm2248_vm2, %v8945_v57, -inf  ;;  %4182 = vst [vmem:[%s5676_s19 + $0x68] sm:$0xff] %v3926_v3  ;;  %v2953_v30 = vmax.f32 %v2951_v62, %v2952_v36  ;;  %v8948_v51 = vmax.f32 %v8947_v41, 0.0  ;;  %v2380_v57 = vrot.slane %v2379_v46, 2  ;;  %4750 = vmatmul.msk.f32.gmra.mxu3 %vm434_vm1, %v410_v50  ;;  %v1698_v43 = vpop.f32.mrf.mxu2  ;;  %v8950_v36 = vld [vmem:[#allocation30_spill] sm:$0xff] }
 0x194   : > { %8946 = vst [vmem:[#allocation20_spill] sm:$0xff] %v6483_v7  ;;  %v3241_v4 = vmax.f32 %v3239_v45, %v3240_v49  ;;  %3747 = vrot.lane.b32.xlu1 %v3238_v38, %s4894_s8  ;;  %v8949_v28 = vmax.f32 %v5622_v18, 0.0  ;;  %v2668_v37 = vrot.slane %v2667_v6, 2  ;;  %v1890_v45 = vpop.f32.mrf.mxu3  ;;  %v8951_v49 = vmax.f32 %v8950_v36, 0.0 }
 0x195   : > { %v4053_v3 = vsel %vm2248_vm2, %v8948_v51, %v3670_v32  ;;  %v2954_v10 = vrot.slane %v2953_v30, 4  ;;  %v8952_v38 = vmax.f32 %v5755_v35, 0.0  ;;  %v6508_v41 = vadd.f32 %v6183_v31, %v1698_v43  ;;  %v3734_v51 = vpop.permute.xlu0 %3733  ;;  %v8954_v35 = vld [vmem:[#allocation22_spill] sm:$0xff] }
 0x196   : > { %v4054_v25 = vsel %vm2248_vm2, %v8949_v28, %v3670_v32  ;;  %4309 = vst [vmem:[%s5676_s19 + $0x460] sm:$0xff] %v4053_v3  ;;  %v3242_v62 = vrot.slane %v3241_v4, 4  ;;  %v3929_v50 = vsel %vm2248_vm2, %v8951_v49, %v3546_v29  ;;  %v2381_v3 = vmax.f32 %v2379_v46, %v2380_v57  ;;  %v1317_v9 = vpop.f32.mrf.mxu0  ;;  %v1509_v32 = vpop.f32.mrf.mxu1  ;;  %v347_v57 = vld [vmem:[%s4975_s5 + $0x578] sm:$0xff] }
 0x197   : > { %4310 = vst [vmem:[%s5676_s19 + $0x468] sm:$0xff] %v4054_v25  ;;  %v3930_v18 = vsel %vm2248_vm2, %v8952_v38, %v3546_v29  ;;  %v2669_v28 = vmax.f32 %v2667_v6, %v2668_v37  ;;  %v2955_v25 = vmax.f32 %v2953_v30, %v2954_v10  ;;  %v8955_v49 = vmax.f32 %v8954_v35, 0.0  ;;  %v8956_v38 = vld [vmem:[#allocation23_spill] sm:$0xff]  ;;  %v411_v37 = vld [vmem:[%s4975_s5 + $0x778] sm:$0xff] }
 0x198   : > { %8953 = vst [vmem:[#allocation19_spill] sm:$0xff] %v6508_v41  ;;  %v3243_v36 = vmax.f32 %v3241_v4, %v3242_v62  ;;  %v8957_v11 = vmax.f32 %v8956_v38, 0.0  ;;  %v6522_v6 = vadd.f32 %v6183_v31, %v1890_v45  ;;  %v6526_v30 = vadd.f32 %v6183_v31, %v1317_v9 }
 0x199   : > { %4185 = vst [vmem:[%s5676_s19 + $0x80] sm:$0xff] %v3929_v50  ;;  %v4117_v29 = vsel %vm2248_vm2, %v8955_v49, %v3734_v51  ;;  %v219_v50 = vld [vmem:[%s4975_s5 + $0x178] sm:$0xff]  ;;  %v6529_v4 = vadd.f32 %v6183_v31, %v1509_v32  ;;  %v2670_v10 = vrot.slane %v2669_v28, 1  ;;  %v2956_v62 = vrot.slane %v2955_v25, 2  ;;  %4623 = vmatmul.msk.f32.gmra.mxu1 %vm434_vm1, %v283_v26 }
 0x19a   : > { %4186 = vst [vmem:[%s5676_s19 + $0x88] sm:$0xff] %v3930_v18  ;;  %v4118_v43 = vsel %vm2248_vm2, %v8957_v11, %v3734_v51  ;;  %v2382_v11 = vrot.slane %v2381_v3, 1  ;;  %v3244_v18 = vrot.slane %v3243_v36, 2  ;;  %v8650_v51 = vmax.f32 %v6526_v30, 0.0  ;;  %4559 = vmatmul.msk.f32.gmra.mxu0 %vm434_vm1, %v219_v50  ;;  %4687 = vmatmul.msk.f32.gmra.mxu2 %vm434_vm1, %v347_v57 }
 0x19b   : > { %8958 = vst [vmem:[#allocation30_spill] sm:$0xff] %v6522_v6  ;;  %v8651_v35 = vmax.f32 %v6529_v4, 0.0  ;;  %v2671_v45 = vmax.f32 %v2669_v28, %v2670_v10  ;;  %v2957_v32 = vmax.f32 %v2955_v25, %v2956_v62  ;;  %4751 = vmatmul.msk.f32.gmra.mxu3 %vm434_vm1, %v411_v37 }
 0x19c   : > { %4373 = vst [vmem:[%s5676_s19 + $0x660] sm:$0xff] %v4117_v29  ;;  %v2383_v9 = vmax.f32 %v2381_v3, %v2382_v11  ;;  %v3245_v49 = vmax.f32 %v3243_v36, %v3244_v18  ;;  %v8961_v29 = vmax.f32 %v6468_v42, 0.0  ;;  %v2385_v50 = vsel %vm2248_vm2, %v8650_v51, -inf  ;;  %v1701_v11 = vpop.f32.mrf.mxu2  ;;  %v1893_v10 = vpop.f32.mrf.mxu3  ;;  %v220_v51 = vld [vmem:[%s4975_s5 + $0x180] sm:$0xff]  ;;  %v8968_v42 = vld [vmem:[#allocation27_spill] sm:$0xff] }
 0x19d   : > { %8959 = vst [vmem:[#allocation22_spill] sm:$0xff] %v6526_v30  ;;  %v2673_v26 = vsel %vm2248_vm2, %v8651_v35, -inf  ;;  %v8963_v3 = vmax.f32 %v6508_v41, 0.0  ;;  %3621 = vrot.lane.b32.xlu1 %v2671_v45, %s4894_s8  ;;  %v6559_v62 = vadd.f32 %v6183_v31, %v1701_v11  ;;  %v6562_v37 = vadd.f32 %v6183_v31, %v1893_v10  ;;  %v3738_v18 = vpop.permute.xlu2 %3737  ;;  %v3608_v11 = vpop.permute.xlu0 %3607  ;;  %v284_v35 = vld [vmem:[%s4975_s5 + $0x380] sm:$0xff]  ;;  %v8966_v30 = vld [vmem:[#allocation24_spill] sm:$0xff] }
 0x19e   : > { %8960 = vst [vmem:[#allocation23_spill] sm:$0xff] %v6529_v4  ;;  %v2384_v38 = vsel %vm2248_vm2, %v8961_v29, -inf  ;;  %3557 = vrot.lane.b32.xlu2 %v2383_v9, %s4894_s8  ;;  %v3544_v29 = vpop.permute.xlu1 %3543  ;;  %v1320_v10 = vpop.f32.mrf.mxu0  ;;  %v8970_v4 = vmax.f32 %v6522_v6, 0.0  ;;  %v8971_v41 = vld [vmem:[#allocation25_spill] sm:$0xff] }
 0x19f   : > { %4374 = vst [vmem:[%s5676_s19 + $0x668] sm:$0xff] %v4118_v43  ;;  %v8962_v43 = vmax.f32 %v6483_v7, 0.0  ;;  %v2960_v28 = vsel %vm2248_vm2, %v8963_v3, -inf  ;;  %v2386_v36 = vmax.f32 %v2384_v38, %v2385_v50  ;;  %v8964_v50 = vmax.f32 %v5752_v20, 0.0 }
 0x1a0   : > { %v8967_v20 = vmax.f32 %v8966_v30, 0.0  ;;  %v3248_v7 = vsel %vm2248_vm2, %v8970_v4, -inf  ;;  %v8976_v4 = vmax.f32 %v8975_v54, 0.0 }
 0x1a1   : > { %v2672_v46 = vsel %vm2248_vm2, %v8962_v43, -inf  ;;  %v2958_v43 = vrot.slane %v2957_v32, 1  ;;  %v2387_v38 = vrot.slane %v2386_v36, 4  ;;  %v4121_v45 = vsel %vm2248_vm2, %v8964_v50, %v3738_v18  ;;  %4624 = vmatmul.msk.f32.gmra.mxu1 %vm434_vm1, %v284_v35 }
 0x1a2   : > { %v2674_v57 = vmax.f32 %v2672_v46, %v2673_v26  ;;  %v3246_v46 = vrot.slane %v3245_v49, 1  ;;  %v8965_v26 = vmax.f32 %v5798_v60, 0.0  ;;  %4377 = vst [vmem:[%s5676_s19 + $0x680] sm:$0xff] %v4121_v45  ;;  %v3927_v50 = vsel %vm2248_vm2, %v8967_v20, %v3544_v29  ;;  %v412_v20 = vld [vmem:[%s4975_s5 + $0x780] sm:$0xff]  ;;  %4560 = vmatmul.msk.f32.gmra.mxu0 %vm434_vm1, %v220_v51 }
 0x1a3   : > { %v8969_v60 = vmax.f32 %v8968_v42, 0.0  ;;  %v2388_v55 = vmax.f32 %v2386_v36, %v2387_v38  ;;  %v8972_v45 = vmax.f32 %v8971_v41, 0.0  ;;  %v8973_v42 = vmax.f32 %v6559_v62, 0.0  ;;  %4183 = vst [vmem:[%s5676_s19 + $0x70] sm:$0xff] %v3927_v50  ;;  %4752 = vmatmul.msk.f32.gmra.mxu3 %vm434_vm1, %v412_v20  ;;  %v221_v20 = vld [vmem:[%s4975_s5 + $0x188] sm:$0xff] }
 0x1a4   : > { %v2675_v9 = vrot.slane %v2674_v57, 4  ;;  %v4122_v3 = vsel %vm2248_vm2, %v8965_v26, %v3738_v18  ;;  %v1512_v18 = vpop.f32.mrf.mxu1  ;;  %v348_v26 = vld [vmem:[%s4975_s5 + $0x580] sm:$0xff]  ;;  %v3992_v36 = vsel %vm2248_vm2, %v8976_v4, %v3608_v11  ;;  %v6601_v41 = vadd.f32 %v6183_v31, %v1320_v10  ;;  %v8979_v4 = vld [vmem:[#allocation26_spill] sm:$0xff] }
 0x1a5   : > { %v3928_v61 = vsel %vm2248_vm2, %v8969_v60, %v3544_v29  ;;  %4378 = vst [vmem:[%s5676_s19 + $0x688] sm:$0xff] %v4122_v3  ;;  %v3991_v30 = vsel %vm2248_vm2, %v8972_v45, %v3608_v11  ;;  %v2961_v29 = vsel %vm2248_vm2, %v8973_v42, -inf  ;;  %v8974_v60 = vmax.f32 %v6562_v37, 0.0  ;;  %4688 = vmatmul.msk.f32.gmra.mxu2 %vm434_vm1, %v348_v26  ;;  %v285_v42 = vld [vmem:[%s4975_s5 + $0x388] sm:$0xff] }
 0x1a6   : > { %v2676_v25 = vmax.f32 %v2674_v57, %v2675_v9  ;;  %v2962_v57 = vmax.f32 %v2960_v28, %v2961_v29  ;;  %4184 = vst [vmem:[%s5676_s19 + $0x78] sm:$0xff] %v3928_v61  ;;  %v2959_v9 = vmax.f32 %v2957_v32, %v2958_v43  ;;  %v6609_v54 = vadd.f32 %v6183_v31, %v1512_v18  ;;  %v1896_v61 = vpop.f32.mrf.mxu3  ;;  %v3736_v28 = vpop.permute.xlu1 %3735 }
 0x1a7   : > { %v3249_v6 = vsel %vm2248_vm2, %v8974_v60, -inf  ;;  %4247 = vst [vmem:[%s5676_s19 + $0x270] sm:$0xff] %v3991_v30  ;;  %v3247_v11 = vmax.f32 %v3245_v49, %v3246_v46  ;;  %v2389_v51 = vrot.slane %v2388_v55, 2  ;;  %v8664_v35 = vmax.f32 %v6601_v41, 0.0  ;;  %v3612_v49 = vpop.permute.xlu2 %3611  ;;  %v1323_v30 = vpop.f32.mrf.mxu0 }
 0x1a8   : > { %v3250_v38 = vmax.f32 %v3248_v7, %v3249_v6  ;;  %v2677_v3 = vrot.slane %v2676_v25, 2  ;;  %v2963_v10 = vrot.slane %v2962_v57, 4  ;;  %4248 = vst [vmem:[%s5676_s19 + $0x278] sm:$0xff] %v3992_v36  ;;  %3685 = vrot.lane.b32.xlu0 %v2959_v9, %s4894_s8  ;;  %v1704_v7 = vpop.f32.mrf.mxu2  ;;  %v8977_v18 = vmax.f32 %v5823_v47, 0.0 }
 0x1a9   : > { %3749 = vrot.lane.b32.xlu2 %v3247_v11, %s4894_s8  ;;  %v6617_v32 = vadd.f32 %v6183_v31, %v1704_v7  ;;  %v8978_v26 = vmax.f32 %v5867_v22, 0.0  ;;  %v8662_v29 = vmax.f32 %v6609_v54, 0.0  ;;  %v6629_v60 = vadd.f32 %v6183_v31, %v1896_v61  ;;  %4625 = vmatmul.msk.f32.gmra.mxu1 %vm434_vm1, %v285_v42 }
 0x1aa   : > { %v3251_v50 = vrot.slane %v3250_v38, 4  ;;  %v2678_v6 = vmax.f32 %v2676_v25, %v2677_v3  ;;  %v2964_v43 = vmax.f32 %v2962_v57, %v2963_v10  ;;  %v3995_v25 = vsel %vm2248_vm2, %v8977_v18, %v3612_v49  ;;  %v8981_v57 = vld [vmem:[#allocation29_spill] sm:$0xff]  ;;  %v349_v3 = vld [vmem:[%s4975_s5 + $0x588] sm:$0xff]  ;;  %4561 = vmatmul.msk.f32.gmra.mxu0 %vm434_vm1, %v221_v20 }
 0x1ab   : > { %v3996_v45 = vsel %vm2248_vm2, %v8978_v26, %v3612_v49  ;;  %4251 = vst [vmem:[%s5676_s19 + $0x290] sm:$0xff] %v3995_v25  ;;  %v8980_v36 = vmax.f32 %v8979_v4, 0.0  ;;  %v6641_v11 = vadd.f32 %v6183_v31, %v1323_v30  ;;  %v2390_v61 = vmax.f32 %v2388_v55, %v2389_v51 }
 0x1ac   : > { %v3252_v46 = vmax.f32 %v3250_v38, %v3251_v50  ;;  %v8982_v38 = vmax.f32 %v8981_v57, 0.0  ;;  %v1515_v9 = vpop.f32.mrf.mxu1  ;;  %4252 = vst [vmem:[%s5676_s19 + $0x298] sm:$0xff] %v3996_v45  ;;  %v413_v50 = vld [vmem:[%s4975_s5 + $0x788] sm:$0xff]  ;;  %v2679_v7 = vrot.slane %v2678_v6, 1  ;;  %v8665_v49 = vmax.f32 %v6617_v32, 0.0 }
 0x1ad   : > { %v4119_v47 = vsel %vm2248_vm2, %v8980_v36, %v3736_v28  ;;  %v6644_v10 = vadd.f32 %v6183_v31, %v1515_v9  ;;  %v8663_v25 = vmax.f32 %v6641_v11, 0.0  ;;  %4689 = vmatmul.msk.f32.gmra.mxu2 %vm434_vm1, %v349_v3  ;;  %v2391_v30 = vrot.slane %v2390_v61, 1  ;;  %4753 = vmatmul.msk.f32.gmra.mxu3 %vm434_vm1, %v413_v50 }
 0x1ae   : > { %v4120_v22 = vsel %vm2248_vm2, %v8982_v38, %v3736_v28  ;;  %4375 = vst [vmem:[%s5676_s19 + $0x670] sm:$0xff] %v4119_v47  ;;  %v2965_v28 = vrot.slane %v2964_v43, 2  ;;  %v3253_v18 = vrot.slane %v3252_v46, 2  ;;  %v2680_v45 = vmax.f32 %v2678_v6, %v2679_v7  ;;  %v1899_v57 = vpop.f32.mrf.mxu3  ;;  %v3610_v50 = vpop.permute.xlu1 %3609 }
 0x1af   : > { %8983 = vst [vmem:[#allocation24_spill] sm:$0xff] %v6644_v10  ;;  %v8661_v26 = vmax.f32 %v6644_v10, 0.0  ;;  %v2393_v55 = vsel %vm2248_vm2, %v8664_v35, -inf  ;;  %v2681_v51 = vsel %vm2248_vm2, %v8662_v29, -inf  ;;  %v8667_v20 = vmax.f32 %v6629_v60, 0.0 }
 0x1b0   : > { %4376 = vst [vmem:[%s5676_s19 + $0x678] sm:$0xff] %v4120_v22  ;;  %v2966_v42 = vmax.f32 %v2964_v43, %v2965_v28  ;;  %v2394_v4 = vsel %vm2248_vm2, %v8663_v25, -inf  ;;  %v2392_v36 = vmax.f32 %v2390_v61, %v2391_v30  ;;  %v1707_v47 = vpop.f32.mrf.mxu2  ;;  %v3254_v38 = vmax.f32 %v3252_v46, %v3253_v18  ;;  %v8984_v46 = vld [vmem:[#allocation31_spill] sm:$0xff]  ;;  %v8986_v18 = vld [vmem:[#allocation33_spill] sm:$0xff] }
 0x1b1   : > { %v2682_v6 = vsel %vm2248_vm2, %v8661_v26, -inf  ;;  %v2395_v22 = vmax.f32 %v2393_v55, %v2394_v4  ;;  %3623 = vrot.lane.b32.xlu2 %v2680_v45, %s4894_s8  ;;  %v6671_v43 = vadd.f32 %v6183_v31, %v1707_v47  ;;  %v6674_v3 = vadd.f32 %v6183_v31, %v1899_v57  ;;  %v1326_v55 = vpop.f32.mrf.mxu0  ;;  %v222_v4 = vld [vmem:[%s4975_s5 + $0x190] sm:$0xff] }
 0x1b2   : > { %v2683_v9 = vmax.f32 %v2681_v51, %v2682_v6  ;;  %v2969_v7 = vsel %vm2248_vm2, %v8665_v49, -inf  ;;  %3559 = vrot.lane.b32.xlu0 %v2392_v36, %s4894_s8  ;;  %v8985_v61 = vmax.f32 %v8984_v46, 0.0  ;;  %v8987_v45 = vmax.f32 %v8986_v18, 0.0  ;;  %v286_v6 = vld [vmem:[%s4975_s5 + $0x390] sm:$0xff]  ;;  %4562 = vmatmul.msk.f32.gmra.mxu0 %vm434_vm1, %v222_v4 }
 0x1b3   : > { %v2967_v51 = vrot.slane %v2966_v42, 1  ;;  %v2396_v47 = vrot.slane %v2395_v22, 4  ;;  %v8668_v26 = vmax.f32 %v6671_v43, 0.0  ;;  %v350_v46 = vld [vmem:[%s4975_s5 + $0x590] sm:$0xff]  ;;  %v3255_v25 = vrot.slane %v3254_v38, 1  ;;  %4626 = vmatmul.msk.f32.gmra.mxu1 %vm434_vm1, %v286_v6  ;;  %v8989_v6 = vld [vmem:[#allocation32_spill] sm:$0xff] }
 0x1b4   : > { %v3993_v28 = vsel %vm2248_vm2, %v8985_v61, %v3610_v50  ;;  %v3994_v30 = vsel %vm2248_vm2, %v8987_v45, %v3610_v50  ;;  %v2684_v57 = vrot.slane %v2683_v9, 4  ;;  %v1518_v36 = vpop.f32.mrf.mxu1  ;;  %v3257_v61 = vsel %vm2248_vm2, %v8667_v20, -inf  ;;  %v414_v45 = vld [vmem:[%s4975_s5 + $0x790] sm:$0xff] }
 0x1b5   : > { %4249 = vst [vmem:[%s5676_s19 + $0x280] sm:$0xff] %v3993_v28  ;;  %v6697_v50 = vadd.f32 %v6183_v31, %v1326_v55  ;;  %v2968_v18 = vmax.f32 %v2966_v42, %v2967_v51  ;;  %v2397_v35 = vmax.f32 %v2395_v22, %v2396_v47  ;;  %v2970_v29 = vsel %vm2248_vm2, %v8668_v26, -inf  ;;  %4690 = vmatmul.msk.f32.gmra.mxu2 %vm434_vm1, %v350_v46  ;;  %v3674_v22 = vpop.permute.xlu0 %3673 }
 0x1b6   : > { %4250 = vst [vmem:[%s5676_s19 + $0x288] sm:$0xff] %v3994_v30  ;;  %v2685_v49 = vmax.f32 %v2683_v9, %v2684_v57  ;;  %v8988_v28 = vmax.f32 %v6674_v3, 0.0  ;;  %v2971_v30 = vmax.f32 %v2969_v7, %v2970_v29  ;;  %v6709_v42 = vadd.f32 %v6183_v31, %v1518_v36  ;;  %4754 = vmatmul.msk.f32.gmra.mxu3 %vm434_vm1, %v414_v45 }
 0x1b7   : > { %3687 = vrot.lane.b32.xlu1 %v2968_v18, %s4894_s8  ;;  %v2398_v9 = vrot.slane %v2397_v35, 2  ;;  %v3256_v29 = vmax.f32 %v3254_v38, %v3255_v25  ;;  %v8669_v7 = vmax.f32 %v6697_v50, 0.0  ;;  %v8990_v57 = vmax.f32 %v8989_v6, 0.0  ;;  %v1902_v18 = vpop.f32.mrf.mxu3  ;;  %v223_v38 = vld [vmem:[%s4975_s5 + $0x198] sm:$0xff] }
 0x1b8   : > { %v3258_v10 = vsel %vm2248_vm2, %v8988_v28, -inf  ;;  %v2686_v51 = vrot.slane %v2685_v49, 2  ;;  %v2972_v47 = vrot.slane %v2971_v30, 4  ;;  %v8991_v46 = vmax.f32 %v5795_v5, 0.0  ;;  %v287_v6 = vld [vmem:[%s4975_s5 + $0x398] sm:$0xff] }
 0x1b9   : > { %v3259_v55 = vmax.f32 %v3257_v61, %v3258_v10  ;;  %v1710_v10 = vpop.f32.mrf.mxu2  ;;  %v4057_v36 = vsel %vm2248_vm2, %v8990_v57, %v3674_v22  ;;  %v2399_v45 = vmax.f32 %v2397_v35, %v2398_v9  ;;  %v8671_v26 = vmax.f32 %v6709_v42, 0.0  ;;  %v1329_v25 = vpop.f32.mrf.mxu0  ;;  %v351_v35 = vld [vmem:[%s4975_s5 + $0x598] sm:$0xff]  ;;  %v6737_v9 = vld [vmem:[%s8510_s2] ss:$0 sm:$0xff] }
 0x1ba   : > { %v4058_v61 = vsel %vm2248_vm2, %v8991_v46, %v3674_v22  ;;  %v2973_v28 = vmax.f32 %v2971_v30, %v2972_v47  ;;  %3751 = vrot.lane.b32.xlu0 %v3256_v29, %s4894_s8  ;;  %4313 = vst [vmem:[%s5676_s19 + $0x480] sm:$0xff] %v4057_v36  ;;  %v6728_v57 = vadd.f32 %v6183_v31, %v1710_v10  ;;  %v352_v10 = vld [vmem:[%s4975_s5 + $0x5a0] sm:$0xff] }
 0x1bb   : > { %v3260_v4 = vrot.slane %v3259_v55, 4  ;;  %4314 = vst [vmem:[%s5676_s19 + $0x488] sm:$0xff] %v4058_v61  ;;  %v6731_v5 = vadd.f32 %v6183_v31, %v1329_v25  ;;  %v2400_v30 = vrot.slane %v2399_v45, 1  ;;  %v2402_v31 = vsel %vm2248_vm2, %v8669_v7, -inf  ;;  %4563 = vmatmul.msk.f32.gmra.mxu0 %vm434_vm1, %v223_v38  ;;  %4627 = vmatmul.msk.f32.gmra.mxu1 %vm434_vm1, %v287_v6 }
 0x1bc   : > { %v1521_v22 = vpop.f32.mrf.mxu1  ;;  %v2974_v29 = vrot.slane %v2973_v28, 2  ;;  %v6750_v46 = vadd.f32 %v6737_v9, %v1902_v18  ;;  %v2690_v7 = vsel %vm2248_vm2, %v8671_v26, -inf  ;;  %v8996_v26 = vmax.f32 %v5820_v19, 0.0 }
 0x1bd   : > { %v3261_v20 = vmax.f32 %v3259_v55, %v3260_v4  ;;  %v2687_v55 = vmax.f32 %v2685_v49, %v2686_v51  ;;  %v6740_v47 = vadd.f32 %v6737_v9, %v1521_v22  ;;  %v415_v4 = vld [vmem:[%s4975_s5 + $0x798] sm:$0xff]  ;;  %v2401_v49 = vmax.f32 %v2399_v45, %v2400_v30  ;;  %4691 = vmatmul.msk.f32.gmra.mxu2 %vm434_vm1, %v351_v35 }
 0x1be   : > { %v2975_v25 = vmax.f32 %v2973_v28, %v2974_v29  ;;  %v8993_v38 = vmax.f32 %v6731_v5, 0.0  ;;  %4755 = vmatmul.msk.f32.gmra.mxu3 %vm434_vm1, %v415_v4  ;;  %v3678_v28 = vpop.permute.xlu2 %3677 }
 0x1bf   : > { %8992 = vst [vmem:[#allocation27_spill] sm:$0xff] %v6740_v47  ;;  %v3262_v36 = vrot.slane %v3261_v20, 2  ;;  %v2688_v51 = vrot.slane %v2687_v55, 1  ;;  %v8670_v61 = vmax.f32 %v6740_v47, 0.0  ;;  %3561 = vrot.lane.b32.xlu1 %v2401_v49, %s4894_s8  ;;  %v8995_v49 = vmax.f32 %v6010_v8, 0.0 }
 0x1c0   : > { %v2403_v45 = vsel %vm2248_vm2, %v8993_v38, -inf  ;;  %v2976_v30 = vrot.slane %v2975_v25, 1  ;;  %v8994_v38 = vmax.f32 %v5973_v13, 0.0 }
 0x1c1   : > { %v3263_v22 = vmax.f32 %v3261_v20, %v3262_v36  ;;  %v2689_v18 = vmax.f32 %v2687_v55, %v2688_v51  ;;  %v2404_v6 = vmax.f32 %v2402_v31, %v2403_v45  ;;  %v2691_v20 = vsel %vm2248_vm2, %v8670_v61, -inf  ;;  %v1713_v35 = vpop.f32.mrf.mxu2  ;;  %v1905_v51 = vpop.f32.mrf.mxu3 }
 0x1c2   : > { %v2692_v36 = vmax.f32 %v2690_v7, %v2691_v20  ;;  %v4061_v4 = vsel %vm2248_vm2, %v8994_v38, %v3678_v28  ;;  %v4062_v55 = vsel %vm2248_vm2, %v8995_v49, %v3678_v28  ;;  %v6773_v31 = vadd.f32 %v6737_v9, %v1713_v35  ;;  %v3548_v7 = vpop.permute.xlu0 %3547  ;;  %v1332_v8 = vpop.f32.mrf.mxu0  ;;  %v224_v28 = vld [vmem:[%s4975_s5 + $0x1a0] sm:$0xff] }
 0x1c3   : > { %v3264_v29 = vrot.slane %v3263_v22, 1  ;;  %v2405_v61 = vrot.slane %v2404_v6, 4  ;;  %4317 = vst [vmem:[%s5676_s19 + $0x4a0] sm:$0xff] %v4061_v4  ;;  %3625 = vrot.lane.b32.xlu0 %v2689_v18, %s4894_s8  ;;  %v6779_v13 = vadd.f32 %v6737_v9, %v1905_v51  ;;  %v2977_v20 = vmax.f32 %v2975_v25, %v2976_v30  ;;  %v288_v38 = vld [vmem:[%s4975_s5 + $0x3a0] sm:$0xff]  ;;  %4564 = vmatmul.msk.f32.gmra.mxu0 %vm434_vm1, %v224_v28 }
 0x1c4   : > { %v2693_v35 = vrot.slane %v2692_v36, 4  ;;  %4318 = vst [vmem:[%s5676_s19 + $0x4a8] sm:$0xff] %v4062_v55  ;;  %v3931_v4 = vsel %vm2248_vm2, %v8996_v26, %v3548_v7  ;;  %v8997_v18 = vmax.f32 %v5864_v33, 0.0  ;;  %v1524_v45 = vpop.f32.mrf.mxu1  ;;  %v416_v30 = vld [vmem:[%s4975_s5 + $0x7a0] sm:$0xff]  ;;  %v8998_v55 = vmax.f32 %v6728_v57, 0.0  ;;  %4628 = vmatmul.msk.f32.gmra.mxu1 %vm434_vm1, %v288_v38 }
 0x1c5   : > { %v2406_v47 = vmax.f32 %v2404_v6, %v2405_v61  ;;  %v8673_v25 = vmax.f32 %v6779_v13, 0.0  ;;  %4187 = vst [vmem:[%s5676_s19 + $0x90] sm:$0xff] %v3931_v4  ;;  %3689 = vrot.lane.b32.xlu2 %v2977_v20, %s4894_s8  ;;  %v8999_v26 = vmax.f32 %v6773_v31, 0.0  ;;  %v3265_v61 = vmax.f32 %v3263_v22, %v3264_v29  ;;  %4692 = vmatmul.msk.f32.gmra.mxu2 %vm434_vm1, %v352_v10  ;;  %v3676_v22 = vpop.permute.xlu1 %3675 }
 0x1c6   : > { %v3932_v51 = vsel %vm2248_vm2, %v8997_v18, %v3548_v7  ;;  %v2978_v49 = vsel %vm2248_vm2, %v8998_v55, -inf  ;;  %v2694_v19 = vmax.f32 %v2692_v36, %v2693_v35  ;;  %v9000_v6 = vmax.f32 %v6750_v46, 0.0  ;;  %4756 = vmatmul.msk.f32.gmra.mxu3 %vm434_vm1, %v416_v30 }
 0x1c7   : > { %v2979_v33 = vsel %vm2248_vm2, %v8999_v26, -inf  ;;  %4188 = vst [vmem:[%s5676_s19 + $0x98] sm:$0xff] %v3932_v51  ;;  %v3267_v36 = vsel %vm2248_vm2, %v8673_v25, -inf  ;;  %v6812_v35 = vadd.f32 %v6737_v9, %v1332_v8  ;;  %v6816_v28 = vadd.f32 %v6737_v9, %v1524_v45  ;;  %3753 = vrot.lane.b32.xlu1 %v3265_v61, %s4894_s8 }
 0x1c8   : > { %v3266_v7 = vsel %vm2248_vm2, %v9000_v6, -inf  ;;  %v2980_v20 = vmax.f32 %v2978_v49, %v2979_v33  ;;  %v2407_v29 = vrot.slane %v2406_v47, 2  ;;  %v2695_v38 = vrot.slane %v2694_v19, 2 }
 0x1c9   : > { %v3268_v4 = vmax.f32 %v3266_v7, %v3267_v36  ;;  %v9001_v18 = vmax.f32 %v5849_v39, 0.0  ;;  %v1716_v10 = vpop.f32.mrf.mxu2  ;;  %v9002_v45 = vmax.f32 %v5903_v15, 0.0  ;;  %v1908_v26 = vpop.f32.mrf.mxu3  ;;  %v8674_v6 = vmax.f32 %v6812_v35, 0.0  ;;  %v225_v15 = vld [vmem:[%s4975_s5 + $0x1a8] sm:$0xff] }
 0x1ca   : > { %v2981_v49 = vrot.slane %v2980_v20, 4  ;;  %v6828_v30 = vadd.f32 %v6737_v9, %v1716_v10  ;;  %v2408_v33 = vmax.f32 %v2406_v47, %v2407_v29  ;;  %v6833_v39 = vadd.f32 %v6737_v9, %v1908_v26  ;;  %v3552_v7 = vpop.permute.xlu2 %3551  ;;  %v3740_v36 = vpop.permute.xlu0 %3739  ;;  %v353_v26 = vld [vmem:[%s4975_s5 + $0x5a8] sm:$0xff] }
 0x1cb   : > { %v4059_v8 = vsel %vm2248_vm2, %v9001_v18, %v3676_v22  ;;  %v3269_v51 = vrot.slane %v3268_v4, 4  ;;  %v4060_v55 = vsel %vm2248_vm2, %v9002_v45, %v3676_v22  ;;  %v289_v22 = vld [vmem:[%s4975_s5 + $0x3a8] sm:$0xff]  ;;  %v2696_v18 = vmax.f32 %v2694_v19, %v2695_v38  ;;  %v1335_v45 = vpop.f32.mrf.mxu0  ;;  %4565 = vmatmul.msk.f32.gmra.mxu0 %vm434_vm1, %v225_v15 }
 0x1cc   : > { %4315 = vst [vmem:[%s5676_s19 + $0x490] sm:$0xff] %v4059_v8  ;;  %v2982_v61 = vmax.f32 %v2980_v20, %v2981_v49  ;;  %v8675_v10 = vmax.f32 %v6816_v28, 0.0  ;;  %v9005_v47 = vmax.f32 %v6037_v16, 0.0  ;;  %v9006_v29 = vmax.f32 %v6088_v24, 0.0  ;;  %v417_v24 = vld [vmem:[%s4975_s5 + $0x7a8] sm:$0xff]  ;;  %4629 = vmatmul.msk.f32.gmra.mxu1 %vm434_vm1, %v289_v22 }
 0x1cd   : > { %9003 = vst [vmem:[#allocation25_spill] sm:$0xff] %v6828_v30  ;;  %v3270_v8 = vmax.f32 %v3268_v4, %v3269_v51  ;;  %v8677_v25 = vmax.f32 %v6828_v30, 0.0  ;;  %v9007_v19 = vmax.f32 %v5860_v14, 0.0  ;;  %v9008_v38 = vmax.f32 %v5906_v63, 0.0  ;;  %4693 = vmatmul.msk.f32.gmra.mxu2 %vm434_vm1, %v353_v26 }
 0x1ce   : > { %4316 = vst [vmem:[%s5676_s19 + $0x498] sm:$0xff] %v4060_v55  ;;  %v3935_v20 = vsel %vm2248_vm2, %v9005_v47, %v3552_v7  ;;  %v3936_v49 = vsel %vm2248_vm2, %v9006_v29, %v3552_v7  ;;  %v1527_v55 = vpop.f32.mrf.mxu1  ;;  %v6854_v51 = vadd.f32 %v6737_v9, %v1335_v45  ;;  %v8676_v7 = vmax.f32 %v6833_v39, 0.0  ;;  %4757 = vmatmul.msk.f32.gmra.mxu3 %vm434_vm1, %v417_v24 }
 0x1cf   : > { %9004 = vst [vmem:[#allocation28_spill] sm:$0xff] %v6833_v39  ;;  %v4123_v4 = vsel %vm2248_vm2, %v9007_v19, %v3740_v36  ;;  %v4124_v16 = vsel %vm2248_vm2, %v9008_v38, %v3740_v36  ;;  %v6860_v47 = vadd.f32 %v6737_v9, %v1527_v55  ;;  %v2409_v14 = vrot.slane %v2408_v33, 1 }
 0x1d0   : > { %4191 = vst [vmem:[%s5676_s19 + $0xb0] sm:$0xff] %v3935_v20  ;;  %v2697_v20 = vrot.slane %v2696_v18, 1  ;;  %v2411_v63 = vsel %vm2248_vm2, %v8674_v6, -inf  ;;  %v8678_v36 = vmax.f32 %v6854_v51, 0.0  ;;  %v2983_v29 = vrot.slane %v2982_v61, 2 }
 0x1d1   : > { %9009 = vst [vmem:[#allocation26_spill] sm:$0xff] %v6854_v51  ;;  %v2699_v45 = vsel %vm2248_vm2, %v8675_v10, -inf  ;;  %v8679_v15 = vmax.f32 %v6860_v47, 0.0  ;;  %v2410_v22 = vmax.f32 %v2408_v33, %v2409_v14  ;;  %v2987_v19 = vsel %vm2248_vm2, %v8677_v25, -inf  ;;  %v1911_v24 = vpop.f32.mrf.mxu3  ;;  %v3550_v14 = vpop.permute.xlu1 %3549 }
 0x1d2   : > { %4192 = vst [vmem:[%s5676_s19 + $0xb8] sm:$0xff] %v3936_v49  ;;  %v3271_v49 = vrot.slane %v3270_v8, 2  ;;  %v2698_v55 = vmax.f32 %v2696_v18, %v2697_v20  ;;  %v2412_v26 = vsel %vm2248_vm2, %v8678_v36, -inf  ;;  %v2984_v38 = vmax.f32 %v2982_v61, %v2983_v29 }
 0x1d3   : > { %4379 = vst [vmem:[%s5676_s19 + $0x690] sm:$0xff] %v4123_v4  ;;  %v1719_v4 = vpop.f32.mrf.mxu2  ;;  %v2413_v10 = vmax.f32 %v2411_v63, %v2412_v26  ;;  %v2700_v33 = vsel %vm2248_vm2, %v8679_v15, -inf  ;;  %3563 = vrot.lane.b32.xlu2 %v2410_v22, %s4894_s8  ;;  %v226_v63 = vld [vmem:[%s4975_s5 + $0x1b0] sm:$0xff]  ;;  %v3744_v26 = vpop.permute.xlu2 %3743  ;;  %v9012_v15 = vmax.f32 %v6081_v17, 0.0  ;;  %v9013_v22 = vmax.f32 %v6124_v2, 0.0 }
 0x1d4   : > { %4380 = vst [vmem:[%s5676_s19 + $0x698] sm:$0xff] %v4124_v16  ;;  %v3272_v6 = vmax.f32 %v3270_v8, %v3271_v49  ;;  %v3275_v16 = vsel %vm2248_vm2, %v8676_v7, -inf  ;;  %3627 = vrot.lane.b32.xlu1 %v2698_v55, %s4894_s8  ;;  %v6891_v18 = vadd.f32 %v6737_v9, %v1719_v4  ;;  %v2701_v61 = vmax.f32 %v2699_v45, %v2700_v33  ;;  %v290_v7 = vld [vmem:[%s4975_s5 + $0x3b0] sm:$0xff] }
 0x1d5   : > { %v6894_v8 = vadd.f32 %v6737_v9, %v1911_v24  ;;  %v2985_v20 = vrot.slane %v2984_v38, 1  ;;  %v2414_v49 = vrot.slane %v2413_v10, 4  ;;  %v9010_v55 = vmax.f32 %v5935_v1, 0.0  ;;  %v1338_v24 = vpop.f32.mrf.mxu0  ;;  %4566 = vmatmul.msk.f32.gmra.mxu0 %vm434_vm1, %v226_v63  ;;  %4630 = vmatmul.msk.f32.gmra.mxu1 %vm434_vm1, %v290_v7 }
 0x1d6   : > { %v3273_v29 = vrot.slane %v3272_v6, 1  ;;  %v9011_v45 = vmax.f32 %v5977_v12, 0.0  ;;  %v2702_v25 = vrot.slane %v2701_v61, 4  ;;  %v4127_v39 = vsel %vm2248_vm2, %v9012_v15, %v3744_v26  ;;  %v1530_v30 = vpop.f32.mrf.mxu1  ;;  %v354_v12 = vld [vmem:[%s4975_s5 + $0x5b0] sm:$0xff] }
 0x1d7   : > { %v3933_v4 = vsel %vm2248_vm2, %v9010_v55, %v3550_v14  ;;  %v4128_v1 = vsel %vm2248_vm2, %v9013_v22, %v3744_v26  ;;  %v3614_v55 = vpop.permute.xlu0 %3613  ;;  %v9014_v51 = vmax.f32 %v6891_v18, 0.0  ;;  %4383 = vst [vmem:[%s5676_s19 + $0x6b0] sm:$0xff] %v4127_v39  ;;  %v9015_v17 = vmax.f32 %v5942_v44, 0.0  ;;  %4694 = vmatmul.msk.f32.gmra.mxu2 %vm434_vm1, %v354_v12 }
 0x1d8   : > { %v3934_v33 = vsel %vm2248_vm2, %v9011_v45, %v3550_v14  ;;  %4189 = vst [vmem:[%s5676_s19 + $0xa0] sm:$0xff] %v3933_v4  ;;  %v418_v14 = vld [vmem:[%s4975_s5 + $0x7b0] sm:$0xff]  ;;  %v2415_v45 = vmax.f32 %v2413_v10, %v2414_v49  ;;  %v9016_v2 = vmax.f32 %v5980_v53, 0.0  ;;  %v2703_v26 = vmax.f32 %v2701_v61, %v2702_v25 }
 0x1d9   : > { %v2988_v36 = vsel %vm2248_vm2, %v9014_v51, -inf  ;;  %v3997_v15 = vsel %vm2248_vm2, %v9015_v17, %v3614_v55  ;;  %v9017_v10 = vmax.f32 %v6894_v8, 0.0  ;;  %4384 = vst [vmem:[%s5676_s19 + $0x6b8] sm:$0xff] %v4128_v1  ;;  %v6931_v39 = vadd.f32 %v6737_v9, %v1338_v24  ;;  %4758 = vmatmul.msk.f32.gmra.mxu3 %vm434_vm1, %v418_v14  ;;  %v1914_v7 = vpop.f32.mrf.mxu3  ;;  %v291_v17 = vld [vmem:[%s4975_s5 + $0x3b8] sm:$0xff] }
 0x1da   : > { %v3998_v22 = vsel %vm2248_vm2, %v9016_v2, %v3614_v55  ;;  %v2989_v4 = vmax.f32 %v2987_v19, %v2988_v36  ;;  %4190 = vst [vmem:[%s5676_s19 + $0xa8] sm:$0xff] %v3934_v33  ;;  %v6936_v53 = vadd.f32 %v6737_v9, %v1530_v30  ;;  %v2986_v51 = vmax.f32 %v2984_v38, %v2985_v20  ;;  %v227_v20 = vld [vmem:[%s4975_s5 + $0x1b8] sm:$0xff] }
 0x1db   : > { %v3276_v49 = vsel %vm2248_vm2, %v9017_v10, -inf  ;;  %4253 = vst [vmem:[%s5676_s19 + $0x2a0] sm:$0xff] %v3997_v15  ;;  %v3274_v36 = vmax.f32 %v3272_v6, %v3273_v29  ;;  %v1722_v19 = vpop.f32.mrf.mxu2  ;;  %v2704_v61 = vrot.slane %v2703_v26, 2  ;;  %v8689_v30 = vmax.f32 %v6931_v39, 0.0  ;;  %v3618_v2 = vpop.permute.xlu2 %3617 }
 0x1dc   : > { %v3277_v44 = vmax.f32 %v3275_v16, %v3276_v49  ;;  %v2990_v25 = vrot.slane %v2989_v4, 4  ;;  %4254 = vst [vmem:[%s5676_s19 + $0x2a8] sm:$0xff] %v3998_v22  ;;  %3691 = vrot.lane.b32.xlu0 %v2986_v51, %s4894_s8  ;;  %v8686_v38 = vmax.f32 %v6936_v53, 0.0  ;;  %v3742_v16 = vpop.permute.xlu1 %3741  ;;  %v2416_v29 = vrot.slane %v2415_v45, 2  ;;  %v419_v49 = vld [vmem:[%s4975_s5 + $0x7b8] sm:$0xff] }
 0x1dd   : > { %3755 = vrot.lane.b32.xlu2 %v3274_v36, %s4894_s8  ;;  %v2705_v6 = vmax.f32 %v2703_v26, %v2704_v61  ;;  %v6948_v1 = vadd.f32 %v6737_v9, %v1722_v19  ;;  %v9018_v55 = vmax.f32 %v5987_v58, 0.0  ;;  %v1341_v14 = vpop.f32.mrf.mxu0  ;;  %v6955_v15 = vadd.f32 %v6737_v9, %v1914_v7  ;;  %v355_v58 = vld [vmem:[%s4975_s5 + $0x5b8] sm:$0xff]  ;;  %4567 = vmatmul.msk.f32.gmra.mxu0 %vm434_vm1, %v227_v20 }
 0x1de   : > { %v3278_v63 = vrot.slane %v3277_v44, 4  ;;  %v2991_v33 = vmax.f32 %v2989_v4, %v2990_v25  ;;  %v9019_v22 = vmax.f32 %v6014_v56, 0.0  ;;  %v6962_v4 = vadd.f32 %v6737_v9, %v1341_v14  ;;  %v1533_v10 = vpop.f32.mrf.mxu1  ;;  %4631 = vmatmul.msk.f32.gmra.mxu1 %vm434_vm1, %v291_v17 }
 0x1df   : > { %v4125_v12 = vsel %vm2248_vm2, %v9018_v55, %v3742_v16  ;;  %v9020_v51 = vmax.f32 %v6150_v40, 0.0  ;;  %v9021_v36 = vmax.f32 %v6214_v48, 0.0  ;;  %v6974_v56 = vadd.f32 %v6737_v9, %v1533_v10  ;;  %4695 = vmatmul.msk.f32.gmra.mxu2 %vm434_vm1, %v355_v58 }
 0x1e0   : > { %v3279_v24 = vmax.f32 %v3277_v44, %v3278_v63  ;;  %v4126_v26 = vsel %vm2248_vm2, %v9019_v22, %v3742_v16  ;;  %4381 = vst [vmem:[%s5676_s19 + $0x6a0] sm:$0xff] %v4125_v12  ;;  %v2706_v44 = vrot.slane %v2705_v6, 1  ;;  %v2420_v61 = vsel %vm2248_vm2, %v8689_v30, -inf }
 0x1e1   : > { %v4001_v25 = vsel %vm2248_vm2, %v9020_v51, %v3618_v2  ;;  %v4002_v19 = vsel %vm2248_vm2, %v9021_v36, %v3618_v2  ;;  %4382 = vst [vmem:[%s5676_s19 + $0x6a8] sm:$0xff] %v4126_v26  ;;  %v8687_v63 = vmax.f32 %v6962_v4, 0.0  ;;  %v2417_v7 = vmax.f32 %v2415_v45, %v2416_v29  ;;  %4759 = vmatmul.msk.f32.gmra.mxu3 %vm434_vm1, %v419_v49  ;;  %v1917_v26 = vpop.f32.mrf.mxu3 }
 0x1e2   : > { %4257 = vst [vmem:[%s5676_s19 + $0x2c0] sm:$0xff] %v4001_v25  ;;  %v2707_v40 = vmax.f32 %v2705_v6, %v2706_v44  ;;  %v2708_v48 = vsel %vm2248_vm2, %v8686_v38, -inf  ;;  %v8683_v16 = vmax.f32 %v6974_v56, 0.0  ;;  %v2992_v20 = vrot.slane %v2991_v33, 2  ;;  %v228_v25 = vld [vmem:[%s4975_s5 + $0x1c0] sm:$0xff] }
 0x1e3   : > { %4258 = vst [vmem:[%s5676_s19 + $0x2c8] sm:$0xff] %v4002_v19  ;;  %v3280_v55 = vrot.slane %v3279_v24, 2  ;;  %v8694_v12 = vmax.f32 %v6948_v1, 0.0  ;;  %v8684_v14 = vmax.f32 %v6955_v15, 0.0  ;;  %v2421_v45 = vsel %vm2248_vm2, %v8687_v63, -inf  ;;  %v1725_v29 = vpop.f32.mrf.mxu2 }
 0x1e4   : > { %v2418_v6 = vrot.slane %v2417_v7, 1  ;;  %v2422_v17 = vmax.f32 %v2420_v61, %v2421_v45  ;;  %v2709_v2 = vsel %vm2248_vm2, %v8683_v16, -inf  ;;  %v6999_v22 = vadd.f32 %v6737_v9, %v1725_v29  ;;  %v3616_v51 = vpop.permute.xlu1 %3615 }
 0x1e5   : > { %v2993_v10 = vmax.f32 %v2991_v33, %v2992_v20  ;;  %v2710_v58 = vmax.f32 %v2708_v48, %v2709_v2  ;;  %3629 = vrot.lane.b32.xlu2 %v2707_v40, %s4894_s8  ;;  %v7003_v44 = vadd.f32 %v6737_v9, %v1917_v26  ;;  %v3281_v36 = vmax.f32 %v3279_v24, %v3280_v55  ;;  %v292_v48 = vld [vmem:[%s4975_s5 + $0x3c0] sm:$0xff] }
 0x1e6   : > { %v2419_v49 = vmax.f32 %v2417_v7, %v2418_v6  ;;  %v2423_v19 = vrot.slane %v2422_v17, 4  ;;  %v8693_v61 = vmax.f32 %v6999_v22, 0.0  ;;  %v9022_v45 = vmax.f32 %v6048_v34, 0.0  ;;  %v1344_v7 = vpop.f32.mrf.mxu0  ;;  %v356_v20 = vld [vmem:[%s4975_s5 + $0x5c0] sm:$0xff]  ;;  %v1536_v34 = vpop.f32.mrf.mxu1  ;;  %4568 = vmatmul.msk.f32.gmra.mxu0 %vm434_vm1, %v228_v25  ;;  %4632 = vmatmul.msk.f32.gmra.mxu1 %vm434_vm1, %v292_v48 }
 0x1e7   : > { %v9023_v33 = vmax.f32 %v6093_v21, 0.0  ;;  %v2996_v6 = vsel %vm2248_vm2, %v8694_v12, -inf  ;;  %v2711_v24 = vrot.slane %v2710_v58, 4  ;;  %v8685_v55 = vmax.f32 %v7003_v44, 0.0  ;;  %v420_v26 = vld [vmem:[%s4975_s5 + $0x7c0] sm:$0xff]  ;;  %4696 = vmatmul.msk.f32.gmra.mxu2 %vm434_vm1, %v356_v20 }
 0x1e8   : > { %v3999_v29 = vsel %vm2248_vm2, %v9022_v45, %v3616_v51  ;;  %3565 = vrot.lane.b32.xlu0 %v2419_v49, %s4894_s8  ;;  %v2994_v2 = vrot.slane %v2993_v10, 1  ;;  %v3284_v21 = vsel %vm2248_vm2, %v8684_v14, -inf  ;;  %v2997_v45 = vsel %vm2248_vm2, %v8693_v61, -inf }
 0x1e9   : > { %v4000_v40 = vsel %vm2248_vm2, %v9023_v33, %v3616_v51  ;;  %4255 = vst [vmem:[%s5676_s19 + $0x2b0] sm:$0xff] %v3999_v29  ;;  %v2424_v51 = vmax.f32 %v2422_v17, %v2423_v19  ;;  %v7030_v33 = vadd.f32 %v6737_v9, %v1344_v7  ;;  %v2712_v49 = vmax.f32 %v2710_v58, %v2711_v24 }
 0x1ea   : > { %4256 = vst [vmem:[%s5676_s19 + $0x2b8] sm:$0xff] %v4000_v40  ;;  %v2998_v29 = vmax.f32 %v2996_v6, %v2997_v45  ;;  %v3285_v16 = vsel %vm2248_vm2, %v8685_v55, -inf  ;;  %v3282_v14 = vrot.slane %v3281_v36, 1  ;;  %v7038_v19 = vadd.f32 %v6737_v9, %v1536_v34  ;;  %4760 = vmatmul.msk.f32.gmra.mxu3 %vm434_vm1, %v420_v26  ;;  %v1920_v34 = vpop.f32.mrf.mxu3  ;;  %v3680_v55 = vpop.permute.xlu0 %3679 }
 0x1eb   : > { %v3286_v17 = vmax.f32 %v3284_v21, %v3285_v16  ;;  %v2995_v40 = vmax.f32 %v2993_v10, %v2994_v2  ;;  %v2425_v58 = vrot.slane %v2424_v51, 2  ;;  %v2713_v7 = vrot.slane %v2712_v49, 2  ;;  %v1728_v48 = vpop.f32.mrf.mxu2  ;;  %v229_v10 = vld [vmem:[%s4975_s5 + $0x1c8] sm:$0xff] }
 0x1ec   : > { %9024 = vst [vmem:[#allocation29_spill] sm:$0xff] %v7038_v19  ;;  %v2999_v25 = vrot.slane %v2998_v29, 4  ;;  %v8690_v24 = vmax.f32 %v7030_v33, 0.0  ;;  %v3283_v16 = vmax.f32 %v3281_v36, %v3282_v14  ;;  %v8688_v21 = vmax.f32 %v7038_v19, 0.0 }
 0x1ed   : > { %v3287_v6 = vrot.slane %v3286_v17, 4  ;;  %3693 = vrot.lane.b32.xlu1 %v2995_v40, %s4894_s8  ;;  %v2426_v2 = vmax.f32 %v2424_v51, %v2425_v58  ;;  %v2714_v20 = vmax.f32 %v2712_v49, %v2713_v7  ;;  %v7047_v38 = vadd.f32 %v6737_v9, %v1728_v48  ;;  %v293_v40 = vld [vmem:[%s4975_s5 + $0x3c8] sm:$0xff] }
 0x1ee   : > { %v3000_v45 = vmax.f32 %v2998_v29, %v2999_v25  ;;  %v1347_v63 = vpop.f32.mrf.mxu0  ;;  %v9026_v14 = vmax.f32 %v6065_v0, 0.0  ;;  %v9027_v51 = vmax.f32 %v6121_v27, 0.0  ;;  %v357_v25 = vld [vmem:[%s4975_s5 + $0x5c8] sm:$0xff]  ;;  %v2429_v7 = vsel %vm2248_vm2, %v8690_v24, -inf  ;;  %4569 = vmatmul.msk.f32.gmra.mxu0 %vm434_vm1, %v229_v10  ;;  %4633 = vmatmul.msk.f32.gmra.mxu1 %vm434_vm1, %v293_v40 }
 0x1ef   : > { %v3288_v26 = vmax.f32 %v3286_v17, %v3287_v6  ;;  %9025 = vst [vmem:[#allocation31_spill] sm:$0xff] %v7047_v38  ;;  %v7058_v29 = vadd.f32 %v6737_v9, %v1347_v63  ;;  %v1539_v17 = vpop.f32.mrf.mxu1  ;;  %v421_v58 = vld [vmem:[%s4975_s5 + $0x7c8] sm:$0xff]  ;;  %v2427_v0 = vrot.slane %v2426_v2, 1  ;;  %v2715_v27 = vrot.slane %v2714_v20, 1  ;;  %4697 = vmatmul.msk.f32.gmra.mxu2 %vm434_vm1, %v357_v25 }
 0x1f0   : > { %3757 = vrot.lane.b32.xlu0 %v3283_v16, %s4894_s8  ;;  %v4063_v36 = vsel %vm2248_vm2, %v9026_v14, %v3680_v55  ;;  %v4064_v49 = vsel %vm2248_vm2, %v9027_v51, %v3680_v55  ;;  %v7067_v6 = vadd.f32 %v6737_v9, %v1539_v17  ;;  %v7072_v55 = vadd.f32 %v6737_v9, %v1920_v34  ;;  %v3684_v51 = vpop.permute.xlu2 %3683 }
 0x1f1   : > { %4319 = vst [vmem:[%s5676_s19 + $0x4b0] sm:$0xff] %v4063_v36  ;;  %v8692_v63 = vmax.f32 %v7058_v29, 0.0  ;;  %v3001_v48 = vrot.slane %v3000_v45, 2  ;;  %v3289_v16 = vrot.slane %v3288_v26, 2  ;;  %v2717_v14 = vsel %vm2248_vm2, %v8688_v21, -inf }
 0x1f2   : > { %9028 = vst [vmem:[#allocation33_spill] sm:$0xff] %v7067_v6  ;;  %v8695_v36 = vmax.f32 %v7047_v38, 0.0  ;;  %v8691_v10 = vmax.f32 %v7067_v6, 0.0  ;;  %4761 = vmatmul.msk.f32.gmra.mxu3 %vm434_vm1, %v421_v58  ;;  %v2428_v34 = vmax.f32 %v2426_v2, %v2427_v0  ;;  %v9029_v25 = vmax.f32 %v6302_v52, 0.0 }
 0x1f3   : > { %4320 = vst [vmem:[%s5676_s19 + $0x4b8] sm:$0xff] %v4064_v49  ;;  %v2430_v40 = vsel %vm2248_vm2, %v8692_v63, -inf  ;;  %v2716_v49 = vmax.f32 %v2714_v20, %v2715_v27  ;;  %v3002_v17 = vmax.f32 %v3000_v45, %v3001_v48  ;;  %v3290_v21 = vmax.f32 %v3288_v26, %v3289_v16  ;;  %v1731_v20 = vpop.f32.mrf.mxu2  ;;  %v1923_v27 = vpop.f32.mrf.mxu3  ;;  %v230_v48 = vld [vmem:[%s4975_s5 + $0x1d0] sm:$0xff] }
 0x1f4   : > { %v2431_v30 = vmax.f32 %v2429_v7, %v2430_v40  ;;  %v2718_v24 = vsel %vm2248_vm2, %v8691_v10, -inf  ;;  %v4067_v2 = vsel %vm2248_vm2, %v9029_v25, %v3684_v51  ;;  %v9030_v58 = vmax.f32 %v6346_v23, 0.0 }
 0x1f5   : > { %3567 = vrot.lane.b32.xlu1 %v2428_v34, %s4894_s8  ;;  %v2719_v26 = vmax.f32 %v2717_v14, %v2718_v24  ;;  %4323 = vst [vmem:[%s5676_s19 + $0x4d0] sm:$0xff] %v4067_v2  ;;  %v7099_v7 = vadd.f32 %v6737_v9, %v1731_v20  ;;  %v3003_v52 = vrot.slane %v3002_v17, 1  ;;  %v7104_v23 = vadd.f32 %v6737_v9, %v1923_v27  ;;  %v294_v34 = vld [vmem:[%s4975_s5 + $0x3d0] sm:$0xff]  ;;  %v3554_v2 = vpop.permute.xlu0 %3553 }
 0x1f6   : > { %v4068_v0 = vsel %vm2248_vm2, %v9030_v58, %v3684_v51  ;;  %v2432_v16 = vrot.slane %v2431_v30, 4  ;;  %v1350_v40 = vpop.f32.mrf.mxu0  ;;  %v3291_v51 = vrot.slane %v3290_v21, 1  ;;  %v3005_v24 = vsel %vm2248_vm2, %v8695_v36, -inf  ;;  %v422_v27 = vld [vmem:[%s4975_s5 + $0x7d0] sm:$0xff]  ;;  %v9033_v36 = vld [vmem:[#allocation13_spill] sm:$0xff]  ;;  %4570 = vmatmul.msk.f32.gmra.mxu0 %vm434_vm1, %v230_v48  ;;  %4634 = vmatmul.msk.f32.gmra.mxu1 %vm434_vm1, %v294_v34 }
 0x1f7   : > { %9031 = vst [vmem:[#allocation32_spill] sm:$0xff] %v7099_v7  ;;  %v2720_v14 = vrot.slane %v2719_v26, 4  ;;  %v8697_v25 = vmax.f32 %v7099_v7, 0.0  ;;  %v1542_v58 = vpop.f32.mrf.mxu1  ;;  %v3004_v20 = vmax.f32 %v3002_v17, %v3003_v52  ;;  %v8698_v63 = vmax.f32 %v7104_v23, 0.0 }
 0x1f8   : > { %4324 = vst [vmem:[%s5676_s19 + $0x4d8] sm:$0xff] %v4068_v0  ;;  %3631 = vrot.lane.b32.xlu0 %v2716_v49, %s4894_s8  ;;  %v358_v0 = vld [vmem:[%s4975_s5 + $0x5d0] sm:$0xff]  ;;  %v2433_v10 = vmax.f32 %v2431_v30, %v2432_v16  ;;  %v9032_v61 = vmax.f32 %v6147_v59, 0.0  ;;  %v9034_v45 = vmax.f32 %v9033_v36, 0.0  ;;  %v9035_v49 = vmax.f32 %v7072_v55, 0.0  ;;  %v3682_v16 = vpop.permute.xlu1 %3681 }
 0x1f9   : > { %v2721_v52 = vmax.f32 %v2719_v26, %v2720_v14  ;;  %v3006_v30 = vsel %vm2248_vm2, %v8697_v25, -inf  ;;  %v7130_v59 = vadd.f32 %v6737_v9, %v1350_v40  ;;  %3695 = vrot.lane.b32.xlu2 %v3004_v20, %s4894_s8  ;;  %v3294_v36 = vsel %vm2248_vm2, %v8698_v63, -inf  ;;  %4698 = vmatmul.msk.f32.gmra.mxu2 %vm434_vm1, %v358_v0  ;;  %v295_v25 = vld [vmem:[%s4975_s5 + $0x3d8] sm:$0xff] }
 0x1fa   : > { %v3937_v12 = vsel %vm2248_vm2, %v9032_v61, %v3554_v2  ;;  %v3938_v38 = vsel %vm2248_vm2, %v9034_v45, %v3554_v2  ;;  %v3293_v17 = vsel %vm2248_vm2, %v9035_v49, -inf  ;;  %v3007_v61 = vmax.f32 %v3005_v24, %v3006_v30  ;;  %4762 = vmatmul.msk.f32.gmra.mxu3 %vm434_vm1, %v422_v27  ;;  %v9038_v24 = vld [vmem:[#allocation34_spill] sm:$0xff]  ;;  %v9040_v2 = vld [vmem:[#allocation5_spill] sm:$0xff]  ;;  %v3558_v30 = vpop.permute.xlu2 %3557 }
 0x1fb   : > { %4193 = vst [vmem:[%s5676_s19 + $0xc0] sm:$0xff] %v3937_v12  ;;  %v3292_v45 = vmax.f32 %v3290_v21, %v3291_v51  ;;  %v2434_v12 = vrot.slane %v2433_v10, 2  ;;  %v3295_v26 = vmax.f32 %v3293_v17, %v3294_v36  ;;  %v7141_v48 = vadd.f32 %v6737_v9, %v1542_v58  ;;  %v1734_v51 = vpop.f32.mrf.mxu2  ;;  %v1926_v17 = vpop.f32.mrf.mxu3  ;;  %v231_v36 = vld [vmem:[%s4975_s5 + $0x1d8] sm:$0xff] }
 0x1fc   : > { %9036 = vst [vmem:[#allocation13_spill] sm:$0xff] %v7130_v59  ;;  %v2722_v40 = vrot.slane %v2721_v52, 2  ;;  %v3008_v34 = vrot.slane %v3007_v61, 4  ;;  %v9041_v20 = vmax.f32 %v9040_v2, 0.0  ;;  %v7153_v49 = vadd.f32 %v6737_v9, %v1734_v51 }
 0x1fd   : > { %4194 = vst [vmem:[%s5676_s19 + $0xc8] sm:$0xff] %v3938_v38  ;;  %3759 = vrot.lane.b32.xlu1 %v3292_v45, %s4894_s8  ;;  %v9039_v38 = vmax.f32 %v9038_v24, 0.0  ;;  %v2435_v0 = vmax.f32 %v2433_v10, %v2434_v12  ;;  %v3296_v27 = vrot.slane %v3295_v26, 4  ;;  %v9044_v10 = vld [vmem:[#allocation21_spill] sm:$0xff] }
 0x1fe   : > { %9037 = vst [vmem:[#allocation39_spill] sm:$0xff] %v7141_v48  ;;  %v4066_v21 = vsel %vm2248_vm2, %v9041_v20, %v3682_v16  ;;  %v2723_v45 = vmax.f32 %v2721_v52, %v2722_v40  ;;  %v3009_v24 = vmax.f32 %v3007_v61, %v3008_v34  ;;  %v9045_v12 = vmax.f32 %v9044_v10, 0.0  ;;  %v1353_v51 = vpop.f32.mrf.mxu0  ;;  %v3746_v61 = vpop.permute.xlu0 %3745  ;;  %4571 = vmatmul.msk.f32.gmra.mxu0 %vm434_vm1, %v231_v36 }
 0x1ff   : > { %v4065_v14 = vsel %vm2248_vm2, %v9039_v38, %v3682_v16  ;;  %9042 = vst [vmem:[#allocation34_spill] sm:$0xff] %v7153_v49  ;;  %v7158_v16 = vadd.f32 %v6737_v9, %v1926_v17  ;;  %v3297_v63 = vmax.f32 %v3295_v26, %v3296_v27  ;;  %v7170_v40 = vadd.f32 %v6737_v9, %v1353_v51  ;;  %v1545_v34 = vpop.f32.mrf.mxu1  ;;  %v423_v17 = vld [vmem:[%s4975_s5 + $0x7d8] sm:$0xff]  ;;  %v9051_v27 = vld [vmem:[#allocation6_spill] sm:$0xff] }
 0x200   : > { %4321 = vst [vmem:[%s5676_s19 + $0x4c0] sm:$0xff] %v4065_v14  ;;  %v3941_v38 = vsel %vm2248_vm2, %v9045_v12, %v3558_v30  ;;  %v9046_v14 = vld [vmem:[#allocation15_spill] sm:$0xff]  ;;  %v2436_v10 = vrot.slane %v2435_v0, 1  ;;  %v7183_v52 = vadd.f32 %v6737_v9, %v1545_v34  ;;  %4635 = vmatmul.msk.f32.gmra.mxu1 %vm434_vm1, %v295_v25  ;;  %v9054_v36 = vmax.f32 %v7130_v59, 0.0  ;;  %v9058_v12 = vld [vmem:[#allocation9_spill] sm:$0xff]  ;;  %v9066_v59 = vld [vmem:[#allocation38_spill] sm:$0xff] }
 0x201   : > { %4322 = vst [vmem:[%s5676_s19 + $0x4c8] sm:$0xff] %v4066_v21  ;;  %v9047_v2 = vmax.f32 %v9046_v14, 0.0  ;;  %v359_v21 = vld [vmem:[%s4975_s5 + $0x5d8] sm:$0xff]  ;;  %v8700_v58 = vmax.f32 %v7170_v40, 0.0  ;;  %v3298_v34 = vrot.slane %v3297_v63, 2  ;;  %v9067_v7 = vmax.f32 %v9066_v59, 0.0 }
 0x202   : > { %9043 = vst [vmem:[#allocation5_spill] sm:$0xff] %v7158_v16  ;;  %4699 = vmatmul.msk.f32.gmra.mxu2 %vm434_vm1, %v359_v21  ;;  %4763 = vmatmul.msk.f32.gmra.mxu3 %vm434_vm1, %v423_v17  ;;  %v3556_v21 = vpop.permute.xlu1 %3555 }
 0x203   : > { %v3942_v20 = vsel %vm2248_vm2, %v9047_v2, %v3558_v30  ;;  %4197 = vst [vmem:[%s5676_s19 + $0xe0] sm:$0xff] %v3941_v38  ;;  %v9049_v30 = vld [vmem:[#allocation35_spill] sm:$0xff]  ;;  %v9052_v2 = vmax.f32 %v9051_v27, 0.0  ;;  %v2438_v27 = vsel %vm2248_vm2, %v9054_v36, -inf  ;;  %v2439_v25 = vsel %vm2248_vm2, %v8700_v58, -inf  ;;  %v9056_v36 = vld [vmem:[#allocation16_spill] sm:$0xff] }
 0x204   : > { %9048 = vst [vmem:[#allocation21_spill] sm:$0xff] %v7170_v40  ;;  %v9050_v14 = vmax.f32 %v9049_v30, 0.0  ;;  %v2724_v30 = vrot.slane %v2723_v45, 1  ;;  %v2440_v17 = vmax.f32 %v2438_v27, %v2439_v25  ;;  %v9057_v51 = vmax.f32 %v9056_v36, 0.0 }
 0x205   : > { %4198 = vst [vmem:[%s5676_s19 + $0xe8] sm:$0xff] %v3942_v20  ;;  %v4130_v38 = vsel %vm2248_vm2, %v9052_v2, %v3746_v61  ;;  %v2437_v20 = vmax.f32 %v2435_v0, %v2436_v10  ;;  %v9059_v40 = vmax.f32 %v9058_v12, 0.0  ;;  %v232_v12 = vld [vmem:[%s4975_s5 + $0x1e0] sm:$0xff] }
 0x206   : > { %v4129_v26 = vsel %vm2248_vm2, %v9050_v14, %v3746_v61  ;;  %9053 = vst [vmem:[#allocation15_spill] sm:$0xff] %v7183_v52  ;;  %v8701_v14 = vmax.f32 %v7183_v52, 0.0  ;;  %v3010_v61 = vrot.slane %v3009_v24, 2  ;;  %v2725_v0 = vmax.f32 %v2723_v45, %v2724_v30  ;;  %v3620_v6 = vpop.permute.xlu0 %3619  ;;  %v360_v52 = vld [vmem:[%s4975_s5 + $0x5e0] sm:$0xff]  ;;  %4572 = vmatmul.msk.f32.gmra.mxu0 %vm434_vm1, %v232_v12 }
 0x207   : > { %4385 = vst [vmem:[%s5676_s19 + $0x6c0] sm:$0xff] %v4129_v26  ;;  %v9055_v26 = vmax.f32 %v7141_v48, 0.0  ;;  %3569 = vrot.lane.b32.xlu2 %v2437_v20, %s4894_s8  ;;  %v3940_v58 = vsel %vm2248_vm2, %v9059_v40, %v3556_v21  ;;  %v9060_v20 = vmax.f32 %v7153_v49, 0.0  ;;  %v9061_v30 = vmax.f32 %v7158_v16, 0.0  ;;  %v9064_v16 = vld [vmem:[#allocation12_spill] sm:$0xff]  ;;  %v1548_v19 = vpop.f32.mrf.mxu1 }
 0x208   : > { %4386 = vst [vmem:[%s5676_s19 + $0x6c8] sm:$0xff] %v4130_v38  ;;  %v2727_v10 = vsel %vm2248_vm2, %v8701_v14, -inf  ;;  %v1737_v38 = vpop.f32.mrf.mxu2  ;;  %3633 = vrot.lane.b32.xlu1 %v2725_v0, %s4894_s8  ;;  %v2441_v40 = vrot.slane %v2440_v17, 4  ;;  %v1356_v14 = vpop.f32.mrf.mxu0 }
 0x209   : > { %v2726_v2 = vsel %vm2248_vm2, %v9055_v26, -inf  ;;  %v3939_v26 = vsel %vm2248_vm2, %v9057_v51, %v3556_v21  ;;  %v3014_v45 = vsel %vm2248_vm2, %v9060_v20, -inf  ;;  %v3302_v27 = vsel %vm2248_vm2, %v9061_v30, -inf  ;;  %v1929_v51 = vpop.f32.mrf.mxu3  ;;  %v3750_v20 = vpop.permute.xlu2 %3749  ;;  %4196 = vst [vmem:[%s5676_s19 + $0xd8] sm:$0xff] %v3940_v58  ;;  %v424_v58 = vld [vmem:[%s4975_s5 + $0x7e0] sm:$0xff] }
 0x20a   : > { %v2728_v25 = vmax.f32 %v2726_v2, %v2727_v10  ;;  %v7221_v36 = vadd.f32 %v6737_v9, %v1737_v38  ;;  %4195 = vst [vmem:[%s5676_s19 + $0xd0] sm:$0xff] %v3939_v26  ;;  %v7226_v21 = vadd.f32 %v6737_v9, %v1929_v51  ;;  %v3011_v30 = vmax.f32 %v3009_v24, %v3010_v61  ;;  %v296_v2 = vld [vmem:[%s4975_s5 + $0x3e0] sm:$0xff]  ;;  %v9068_v61 = vld [vmem:[#allocation7_spill] sm:$0xff] }
 0x20b   : > { %v3299_v10 = vmax.f32 %v3297_v63, %v3298_v34  ;;  %v9065_v26 = vmax.f32 %v9064_v16, 0.0  ;;  %v4134_v51 = vsel %vm2248_vm2, %v9067_v7, %v3750_v20  ;;  %v2442_v24 = vmax.f32 %v2440_v17, %v2441_v40  ;;  %v9070_v16 = vld [vmem:[#allocation10_spill] sm:$0xff]  ;;  %4636 = vmatmul.msk.f32.gmra.mxu1 %vm434_vm1, %v296_v2  ;;  %4700 = vmatmul.msk.f32.gmra.mxu2 %vm434_vm1, %v360_v52 }
 0x20c   : > { %9062 = vst [vmem:[#allocation35_spill] sm:$0xff] %v7221_v36  ;;  %v2729_v0 = vrot.slane %v2728_v25, 4  ;;  %v8710_v63 = vmax.f32 %v7226_v21, 0.0  ;;  %v9069_v34 = vmax.f32 %v9068_v61, 0.0  ;;  %v9071_v48 = vmax.f32 %v9070_v16, 0.0  ;;  %4764 = vmatmul.msk.f32.gmra.mxu3 %vm434_vm1, %v424_v58  ;;  %v233_v16 = vld [vmem:[%s4975_s5 + $0x1e8] sm:$0xff] }
 0x20d   : > { %9063 = vst [vmem:[#allocation6_spill] sm:$0xff] %v7226_v21  ;;  %v4133_v49 = vsel %vm2248_vm2, %v9065_v26, %v3750_v20  ;;  %v9072_v59 = vmax.f32 %v7221_v36, 0.0  ;;  %v7253_v17 = vadd.f32 %v6737_v9, %v1356_v14  ;;  %v9075_v58 = vld [vmem:[#allocation8_spill] sm:$0xff]  ;;  %v361_v61 = vld [vmem:[%s4975_s5 + $0x5e8] sm:$0xff] }
 0x20e   : > { %4389 = vst [vmem:[%s5676_s19 + $0x6e0] sm:$0xff] %v4133_v49  ;;  %v4003_v38 = vsel %vm2248_vm2, %v9069_v34, %v3620_v6  ;;  %v4004_v26 = vsel %vm2248_vm2, %v9071_v48, %v3620_v6  ;;  %v2730_v7 = vmax.f32 %v2728_v25, %v2729_v0  ;;  %v7256_v49 = vadd.f32 %v6737_v9, %v1548_v19  ;;  %v9082_v21 = vld [vmem:[#allocation18_spill] sm:$0xff] }
 0x20f   : > { %v3015_v20 = vsel %vm2248_vm2, %v9072_v59, -inf  ;;  %4390 = vst [vmem:[%s5676_s19 + $0x6e8] sm:$0xff] %v4134_v51  ;;  %v3303_v6 = vsel %vm2248_vm2, %v8710_v63, -inf  ;;  %v3012_v48 = vrot.slane %v3011_v30, 1  ;;  %v3300_v25 = vrot.slane %v3299_v10, 1  ;;  %4573 = vmatmul.msk.f32.gmra.mxu0 %vm434_vm1, %v233_v16 }
 0x210   : > { %9073 = vst [vmem:[#allocation16_spill] sm:$0xff] %v7253_v17  ;;  %v3016_v40 = vmax.f32 %v3014_v45, %v3015_v20  ;;  %v3304_v14 = vmax.f32 %v3302_v27, %v3303_v6  ;;  %v1740_v51 = vpop.f32.mrf.mxu2  ;;  %v3748_v45 = vpop.permute.xlu1 %3747  ;;  %v2443_v59 = vrot.slane %v2442_v24, 2  ;;  %v9083_v36 = vmax.f32 %v9082_v21, 0.0 }
 0x211   : > { %9074 = vst [vmem:[#allocation9_spill] sm:$0xff] %v7256_v49  ;;  %v3013_v19 = vmax.f32 %v3011_v30, %v3012_v48  ;;  %v3301_v0 = vmax.f32 %v3299_v10, %v3300_v25  ;;  %v1932_v34 = vpop.f32.mrf.mxu3  ;;  %v7272_v30 = vadd.f32 %v6737_v9, %v1740_v51  ;;  %v3624_v10 = vpop.permute.xlu2 %3623  ;;  %v297_v48 = vld [vmem:[%s4975_s5 + $0x3e8] sm:$0xff] }
 0x212   : > { %4259 = vst [vmem:[%s5676_s19 + $0x2d0] sm:$0xff] %v4003_v38  ;;  %v3017_v12 = vrot.slane %v3016_v40, 4  ;;  %v3305_v2 = vrot.slane %v3304_v14, 4  ;;  %v2731_v38 = vrot.slane %v2730_v7, 2  ;;  %v1359_v6 = vpop.f32.mrf.mxu0  ;;  %v7279_v25 = vadd.f32 %v6737_v9, %v1932_v34 }
 0x213   : > { %4260 = vst [vmem:[%s5676_s19 + $0x2d8] sm:$0xff] %v4004_v26  ;;  %3697 = vrot.lane.b32.xlu0 %v3013_v19, %s4894_s8  ;;  %3761 = vrot.lane.b32.xlu2 %v3301_v0, %s4894_s8  ;;  %v9076_v26 = vmax.f32 %v9075_v58, 0.0  ;;  %v9080_v0 = vld [vmem:[#allocation23_spill] sm:$0xff]  ;;  %v1551_v58 = vpop.f32.mrf.mxu1 }
 0x214   : > { %v3018_v52 = vmax.f32 %v3016_v40, %v3017_v12  ;;  %v3306_v40 = vmax.f32 %v3304_v14, %v3305_v2  ;;  %9077 = vst [vmem:[#allocation12_spill] sm:$0xff] %v7279_v25  ;;  %v9078_v12 = vld [vmem:[#allocation20_spill] sm:$0xff]  ;;  %v9081_v27 = vmax.f32 %v9080_v0, 0.0  ;;  %v4132_v14 = vsel %vm2248_vm2, %v9083_v36, %v3748_v45  ;;  %4637 = vmatmul.msk.f32.gmra.mxu1 %vm434_vm1, %v297_v48 }
 0x215   : > { %v4131_v20 = vsel %vm2248_vm2, %v9076_v26, %v3748_v45  ;;  %v9079_v63 = vmax.f32 %v9078_v12, 0.0  ;;  %v425_v26 = vld [vmem:[%s4975_s5 + $0x7e8] sm:$0xff]  ;;  %v7295_v2 = vadd.f32 %v6737_v9, %v1359_v6  ;;  %v7298_v34 = vadd.f32 %v6737_v9, %v1551_v58  ;;  %4388 = vst [vmem:[%s5676_s19 + $0x6d8] sm:$0xff] %v4132_v14  ;;  %4701 = vmatmul.msk.f32.gmra.mxu2 %vm434_vm1, %v361_v61 }
 0x216   : > { %v4008_v51 = vsel %vm2248_vm2, %v9081_v27, %v3624_v10  ;;  %4387 = vst [vmem:[%s5676_s19 + $0x6d0] sm:$0xff] %v4131_v20  ;;  %v2444_v20 = vmax.f32 %v2442_v24, %v2443_v59  ;;  %v3019_v21 = vrot.slane %v3018_v52, 2  ;;  %v9087_v36 = vmax.f32 %v7256_v49, 0.0  ;;  %4765 = vmatmul.msk.f32.gmra.mxu3 %vm434_vm1, %v425_v26 }
 0x217   : > { %v4007_v19 = vsel %vm2248_vm2, %v9079_v63, %v3624_v10  ;;  %9084 = vst [vmem:[#allocation38_spill] sm:$0xff] %v7295_v2  ;;  %v9086_v63 = vmax.f32 %v7253_v17, 0.0  ;;  %v2732_v10 = vmax.f32 %v2730_v7, %v2731_v38  ;;  %v8714_v9 = vmax.f32 %v7295_v2, 0.0  ;;  %v299_v2 = vld [vmem:[%s4975_s5 + $0x3f8] sm:$0xff] }
 0x218   : > { %4263 = vst [vmem:[%s5676_s19 + $0x2f0] sm:$0xff] %v4007_v19  ;;  %v2735_v45 = vsel %vm2248_vm2, %v9087_v36, -inf  ;;  %v8713_v6 = vmax.f32 %v7298_v34, 0.0  ;;  %v3307_v16 = vrot.slane %v3306_v40, 2  ;;  %v8717_v48 = vmax.f32 %v7272_v30, 0.0  ;;  %v1743_v61 = vpop.f32.mrf.mxu2 }
 0x219   : > { %9085 = vst [vmem:[#allocation7_spill] sm:$0xff] %v7298_v34  ;;  %v2447_v27 = vsel %vm2248_vm2, %v9086_v63, -inf  ;;  %v2733_v7 = vrot.slane %v2732_v10, 1  ;;  %v2445_v24 = vrot.slane %v2444_v20, 1  ;;  %v3020_v38 = vmax.f32 %v3018_v52, %v3019_v21  ;;  %v1935_v52 = vpop.f32.mrf.mxu3  ;;  %v3622_v63 = vpop.permute.xlu1 %3621  ;;  %v234_v21 = vld [vmem:[%s4975_s5 + $0x1f0] sm:$0xff] }
 0x21a   : > { %4264 = vst [vmem:[%s5676_s19 + $0x2f8] sm:$0xff] %v4008_v51  ;;  %v2448_v12 = vsel %vm2248_vm2, %v8714_v9, -inf  ;;  %v2736_v19 = vsel %vm2248_vm2, %v8713_v6, -inf  ;;  %v3308_v0 = vmax.f32 %v3306_v40, %v3307_v16  ;;  %v7326_v36 = vld [vmem:[%s8510_s2] ss:$0 sm:$0xff]  ;;  %v9090_v40 = vld [vmem:[#allocation11_spill] sm:$0xff]  ;;  %4574 = vmatmul.msk.f32.gmra.mxu0 %vm434_vm1, %v234_v21 }
 0x21b   : > { %v2449_v51 = vmax.f32 %v2447_v27, %v2448_v12  ;;  %v2737_v58 = vmax.f32 %v2735_v45, %v2736_v19  ;;  %v2734_v26 = vmax.f32 %v2732_v10, %v2733_v7  ;;  %v2446_v14 = vmax.f32 %v2444_v20, %v2445_v24  ;;  %v9092_v20 = vld [vmem:[#allocation36_spill] sm:$0xff]  ;;  %v1362_v7 = vpop.f32.mrf.mxu0  ;;  %v298_v24 = vld [vmem:[%s4975_s5 + $0x3f0] sm:$0xff] }
 0x21c   : > { %v7329_v6 = vadd.f32 %v7326_v36, %v1743_v61  ;;  %v7332_v9 = vadd.f32 %v7326_v36, %v1935_v52  ;;  %v9091_v27 = vmax.f32 %v9090_v40, 0.0  ;;  %v9093_v45 = vmax.f32 %v9092_v20, 0.0  ;;  %v362_v12 = vld [vmem:[%s4975_s5 + $0x5f0] sm:$0xff]  ;;  %v1554_v52 = vpop.f32.mrf.mxu1  ;;  %4638 = vmatmul.msk.f32.gmra.mxu1 %vm434_vm1, %v298_v24 }
 0x21d   : > { %v2450_v19 = vrot.slane %v2449_v51, 4  ;;  %v2738_v59 = vrot.slane %v2737_v58, 4  ;;  %3635 = vrot.lane.b32.xlu2 %v2734_v26, %s4894_s8  ;;  %3571 = vrot.lane.b32.xlu0 %v2446_v14, %s4894_s8  ;;  %v7346_v61 = vadd.f32 %v7326_v36, %v1362_v7  ;;  %v3021_v40 = vrot.slane %v3020_v38, 1 }
 0x21e   : > { %9088 = vst [vmem:[#allocation10_spill] sm:$0xff] %v7329_v6  ;;  %v4005_v10 = vsel %vm2248_vm2, %v9091_v27, %v3622_v63  ;;  %v4006_v16 = vsel %vm2248_vm2, %v9093_v45, %v3622_v63  ;;  %v426_v27 = vld [vmem:[%s4975_s5 + $0x7f0] sm:$0xff]  ;;  %v3023_v63 = vsel %vm2248_vm2, %v8717_v48, -inf  ;;  %v8719_v20 = vmax.f32 %v7329_v6, 0.0  ;;  %4702 = vmatmul.msk.f32.gmra.mxu2 %vm434_vm1, %v362_v12  ;;  %v235_v12 = vld [vmem:[%s4975_s5 + $0x1f8] sm:$0xff] }
 0x21f   : > { %9089 = vst [vmem:[#allocation8_spill] sm:$0xff] %v7332_v9  ;;  %v8718_v45 = vmax.f32 %v7332_v9, 0.0  ;;  %v2451_v26 = vmax.f32 %v2449_v51, %v2450_v19  ;;  %v2739_v14 = vmax.f32 %v2737_v58, %v2738_v59  ;;  %v3309_v7 = vrot.slane %v3308_v0, 1  ;;  %4766 = vmatmul.msk.f32.gmra.mxu3 %vm434_vm1, %v426_v27 }
 0x220   : > { %4261 = vst [vmem:[%s5676_s19 + $0x2e0] sm:$0xff] %v4005_v10  ;;  %v3022_v10 = vmax.f32 %v3020_v38, %v3021_v40  ;;  %v9094_v34 = vmax.f32 %v7279_v25, 0.0  ;;  %v3024_v48 = vsel %vm2248_vm2, %v8719_v20, -inf  ;;  %v7367_v51 = vadd.f32 %v7326_v36, %v1554_v52  ;;  %v1746_v21 = vpop.f32.mrf.mxu2  ;;  %v3686_v52 = vpop.permute.xlu0 %3685 }
 0x221   : > { %4262 = vst [vmem:[%s5676_s19 + $0x2e8] sm:$0xff] %v4006_v16  ;;  %v3312_v16 = vsel %vm2248_vm2, %v8718_v45, -inf  ;;  %v3025_v38 = vmax.f32 %v3023_v63, %v3024_v48  ;;  %v2452_v58 = vrot.slane %v2451_v26, 2  ;;  %v2740_v24 = vrot.slane %v2739_v14, 2  ;;  %v1938_v20 = vpop.f32.mrf.mxu3  ;;  %v9095_v48 = vld [vmem:[#allocation14_spill] sm:$0xff] }
 0x222   : > { %v3311_v49 = vsel %vm2248_vm2, %v9094_v34, -inf  ;;  %3699 = vrot.lane.b32.xlu1 %v3022_v10, %s4894_s8  ;;  %v3310_v45 = vmax.f32 %v3308_v0, %v3309_v7  ;;  %v9096_v63 = vmax.f32 %v9095_v48, 0.0  ;;  %v9099_v6 = vmax.f32 %v7346_v61, 0.0  ;;  %4575 = vmatmul.msk.f32.gmra.mxu0 %vm434_vm1, %v235_v12 }
 0x223   : > { %v3313_v59 = vmax.f32 %v3311_v49, %v3312_v16  ;;  %v3026_v19 = vrot.slane %v3025_v38, 4  ;;  %v2453_v27 = vmax.f32 %v2451_v26, %v2452_v58  ;;  %v8725_v49 = vmax.f32 %v7367_v51, 0.0  ;;  %v9097_v16 = vld [vmem:[#allocation37_spill] sm:$0xff]  ;;  %v1365_v25 = vpop.f32.mrf.mxu0 }
 0x224   : > { %v4069_v10 = vsel %vm2248_vm2, %v9096_v63, %v3686_v52  ;;  %v9098_v34 = vmax.f32 %v9097_v16, 0.0  ;;  %v2741_v0 = vmax.f32 %v2739_v14, %v2740_v24  ;;  %v2456_v26 = vsel %vm2248_vm2, %v9099_v6, -inf  ;;  %v1557_v48 = vpop.f32.mrf.mxu1  ;;  %v363_v63 = vld [vmem:[%s4975_s5 + $0x5f8] sm:$0xff]  ;;  %4639 = vmatmul.msk.f32.gmra.mxu1 %vm434_vm1, %v299_v2 }
 0x225   : > { %v3314_v40 = vrot.slane %v3313_v59, 4  ;;  %v3027_v7 = vmax.f32 %v3025_v38, %v3026_v19  ;;  %3763 = vrot.lane.b32.xlu0 %v3310_v45, %s4894_s8  ;;  %4325 = vst [vmem:[%s5676_s19 + $0x4e0] sm:$0xff] %v4069_v10  ;;  %v7388_v58 = vadd.f32 %v7326_v36, %v1365_v25  ;;  %v427_v16 = vld [vmem:[%s4975_s5 + $0x7f8] sm:$0xff]  ;;  %v7397_v14 = vadd.f32 %v7326_v36, %v1557_v48 }
 0x226   : > { %v4070_v9 = vsel %vm2248_vm2, %v9098_v34, %v3686_v52  ;;  %v7394_v34 = vadd.f32 %v7326_v36, %v1746_v21  ;;  %v2454_v6 = vrot.slane %v2453_v27, 1  ;;  %v2742_v38 = vrot.slane %v2741_v0, 1  ;;  %4703 = vmatmul.msk.f32.gmra.mxu2 %vm434_vm1, %v363_v63 }
 0x227   : > { %v3315_v17 = vmax.f32 %v3313_v59, %v3314_v40  ;;  %4326 = vst [vmem:[%s5676_s19 + $0x4e8] sm:$0xff] %v4070_v9  ;;  %v7401_v45 = vadd.f32 %v7326_v36, %v1938_v20  ;;  %v8726_v25 = vmax.f32 %v7388_v58, 0.0  ;;  %v3690_v59 = vpop.permute.xlu2 %3689  ;;  %v3028_v9 = vrot.slane %v3027_v7, 2  ;;  %4767 = vmatmul.msk.f32.gmra.mxu3 %vm434_vm1, %v427_v16 }
 0x228   : > { %v2744_v24 = vsel %vm2248_vm2, %v8725_v49, -inf  ;;  %v9100_v20 = vmax.f32 %v6617_v32, 0.0  ;;  %v9101_v2 = vmax.f32 %v6671_v43, 0.0  ;;  %v2455_v10 = vmax.f32 %v2453_v27, %v2454_v6 }
 0x229   : > { %v3316_v21 = vrot.slane %v3315_v17, 2  ;;  %v2457_v12 = vsel %vm2248_vm2, %v8726_v25, -inf  ;;  %v2743_v48 = vmax.f32 %v2741_v0, %v2742_v38  ;;  %v3029_v49 = vmax.f32 %v3027_v7, %v3028_v9  ;;  %v1941_v27 = vpop.f32.mrf.mxu3  ;;  %v3560_v9 = vpop.permute.xlu0 %3559 }
 0x22a   : > { %v4073_v40 = vsel %vm2248_vm2, %v9100_v20, %v3690_v59  ;;  %v4074_v52 = vsel %vm2248_vm2, %v9101_v2, %v3690_v59  ;;  %v8727_v63 = vmax.f32 %v7394_v34, 0.0  ;;  %v2458_v19 = vmax.f32 %v2456_v26, %v2457_v12  ;;  %v1749_v20 = vpop.f32.mrf.mxu2  ;;  %3573 = vrot.lane.b32.xlu1 %v2455_v10, %s4894_s8 }
 0x22b   : > { %4329 = vst [vmem:[%s5676_s19 + $0x500] sm:$0xff] %v4073_v40  ;;  %v9102_v16 = vmax.f32 %v7397_v14, 0.0  ;;  %v3317_v43 = vmax.f32 %v3315_v17, %v3316_v21  ;;  %v7429_v40 = vadd.f32 %v7326_v36, %v1749_v20  ;;  %v3030_v0 = vrot.slane %v3029_v49, 1  ;;  %v1368_v6 = vpop.f32.mrf.mxu0 }
 0x22c   : > { %4330 = vst [vmem:[%s5676_s19 + $0x508] sm:$0xff] %v4074_v52  ;;  %v2459_v7 = vrot.slane %v2458_v19, 4  ;;  %v7432_v26 = vadd.f32 %v7326_v36, %v1941_v27  ;;  %v1560_v21 = vpop.f32.mrf.mxu1  ;;  %v9106_v27 = vld [vmem:[#allocation22_spill] sm:$0xff]  ;;  %v9108_v17 = vmax.f32 %v7401_v45, 0.0 }
 0x22d   : > { %v2745_v32 = vsel %vm2248_vm2, %v9102_v16, -inf  ;;  %9103 = vst [vmem:[#allocation20_spill] sm:$0xff] %v7429_v40  ;;  %3637 = vrot.lane.b32.xlu0 %v2743_v48, %s4894_s8  ;;  %v3318_v52 = vrot.slane %v3317_v43, 1  ;;  %v9104_v16 = vld [vmem:[#allocation17_spill] sm:$0xff]  ;;  %v9107_v25 = vmax.f32 %v9106_v27, 0.0  ;;  %v3032_v48 = vsel %vm2248_vm2, %v8727_v63, -inf }
 0x22e   : > { %v2746_v2 = vmax.f32 %v2744_v24, %v2745_v32  ;;  %v3031_v24 = vmax.f32 %v3029_v49, %v3030_v0  ;;  %v2460_v12 = vmax.f32 %v2458_v19, %v2459_v7  ;;  %v8728_v10 = vmax.f32 %v7432_v26, 0.0 }
 0x22f   : > { %v9105_v32 = vmax.f32 %v9104_v16, 0.0  ;;  %v3944_v59 = vsel %vm2248_vm2, %v9107_v25, %v3560_v9  ;;  %v3320_v49 = vsel %vm2248_vm2, %v9108_v17, -inf  ;;  %v9109_v19 = vmax.f32 %v7429_v40, 0.0 }
 0x230   : > { %v2747_v38 = vrot.slane %v2746_v2, 4  ;;  %3701 = vrot.lane.b32.xlu2 %v3031_v24, %s4894_s8  ;;  %v3321_v25 = vsel %vm2248_vm2, %v8728_v10, -inf  ;;  %4200 = vst [vmem:[%s5676_s19 + $0xf8] sm:$0xff] %v3944_v59  ;;  %v9112_v63 = vmax.f32 %v6559_v62, 0.0 }
 0x231   : > { %v3943_v20 = vsel %vm2248_vm2, %v9105_v32, %v3560_v9  ;;  %v3033_v7 = vsel %vm2248_vm2, %v9109_v19, -inf  ;;  %v7459_v9 = vadd.f32 %v7326_v36, %v1368_v6  ;;  %v2461_v32 = vrot.slane %v2460_v12, 2 }
 0x232   : > { %v2748_v0 = vmax.f32 %v2746_v2, %v2747_v38  ;;  %4199 = vst [vmem:[%s5676_s19 + $0xf0] sm:$0xff] %v3943_v20  ;;  %v3034_v16 = vmax.f32 %v3032_v48, %v3033_v7  ;;  %v3322_v17 = vmax.f32 %v3320_v49, %v3321_v25  ;;  %v7462_v2 = vadd.f32 %v7326_v36, %v1560_v21  ;;  %v3688_v20 = vpop.permute.xlu1 %3687  ;;  %v9110_v48 = vld [vmem:[#allocation19_spill] sm:$0xff]  ;;  %v1752_v6 = vpop.f32.mrf.mxu2 }
 0x233   : > { %v3319_v38 = vmax.f32 %v3317_v43, %v3318_v52  ;;  %v9111_v19 = vmax.f32 %v9110_v48, 0.0  ;;  %v4072_v59 = vsel %vm2248_vm2, %v9112_v63, %v3688_v20  ;;  %v2462_v10 = vmax.f32 %v2460_v12, %v2461_v32  ;;  %v1944_v21 = vpop.f32.mrf.mxu3  ;;  %v3564_v63 = vpop.permute.xlu2 %3563 }
 0x234   : > { %v2749_v27 = vrot.slane %v2748_v0, 2  ;;  %v3035_v24 = vrot.slane %v3034_v16, 4  ;;  %v3323_v40 = vrot.slane %v3322_v17, 4  ;;  %v7473_v43 = vadd.f32 %v7326_v36, %v1752_v6  ;;  %4328 = vst [vmem:[%s5676_s19 + $0x4f8] sm:$0xff] %v4072_v59  ;;  %v1371_v12 = vpop.f32.mrf.mxu0  ;;  %v9117_v59 = vld [vmem:[#allocation30_spill] sm:$0xff] }
 0x235   : > { %v4071_v7 = vsel %vm2248_vm2, %v9111_v19, %v3688_v20  ;;  %3765 = vrot.lane.b32.xlu1 %v3319_v38, %s4894_s8  ;;  %v8730_v25 = vmax.f32 %v7459_v9, 0.0  ;;  %v7478_v62 = vadd.f32 %v7326_v36, %v1944_v21  ;;  %v2463_v32 = vrot.slane %v2462_v10, 1 }
 0x236   : > { %4327 = vst [vmem:[%s5676_s19 + $0x4f0] sm:$0xff] %v4071_v7  ;;  %v2750_v52 = vmax.f32 %v2748_v0, %v2749_v27  ;;  %v3036_v49 = vmax.f32 %v3034_v16, %v3035_v24  ;;  %v3324_v20 = vmax.f32 %v3322_v17, %v3323_v40  ;;  %v8735_v38 = vmax.f32 %v7462_v2, 0.0  ;;  %v3752_v27 = vpop.permute.xlu0 %3751  ;;  %v1563_v24 = vpop.f32.mrf.mxu1 }
 0x237   : > { %9113 = vst [vmem:[#allocation23_spill] sm:$0xff] %v7473_v43  ;;  %v9115_v48 = vmax.f32 %v6697_v50, 0.0  ;;  %v9116_v0 = vmax.f32 %v6731_v5, 0.0  ;;  %v8731_v7 = vmax.f32 %v7473_v43, 0.0  ;;  %v9118_v6 = vmax.f32 %v9117_v59, 0.0  ;;  %v9126_v43 = vld [vmem:[#allocation24_spill] sm:$0xff] }
 0x238   : > { %9114 = vst [vmem:[#allocation18_spill] sm:$0xff] %v7478_v62  ;;  %v9119_v17 = vmax.f32 %v6562_v37, 0.0  ;;  %v7496_v21 = vadd.f32 %v7326_v36, %v1371_v12  ;;  %v7500_v5 = vadd.f32 %v7326_v36, %v1563_v24  ;;  %v3037_v59 = vrot.slane %v3036_v49, 2 }
 0x239   : > { %v3947_v19 = vsel %vm2248_vm2, %v9115_v48, %v3564_v63  ;;  %v3948_v16 = vsel %vm2248_vm2, %v9116_v0, %v3564_v63  ;;  %v4135_v40 = vsel %vm2248_vm2, %v9118_v6, %v3752_v27  ;;  %v2464_v63 = vmax.f32 %v2462_v10, %v2463_v32 }
 0x23a   : > { %4203 = vst [vmem:[%s5676_s19 + $0x110] sm:$0xff] %v3947_v19  ;;  %v4136_v50 = vsel %vm2248_vm2, %v9119_v17, %v3752_v27  ;;  %v2751_v48 = vrot.slane %v2750_v52, 1  ;;  %v8734_v0 = vmax.f32 %v7478_v62, 0.0  ;;  %v8732_v19 = vmax.f32 %v7496_v21, 0.0  ;;  %v1755_v24 = vpop.f32.mrf.mxu2 }
 0x23b   : > { %9120 = vst [vmem:[#allocation11_spill] sm:$0xff] %v7496_v21  ;;  %v3325_v6 = vrot.slane %v3324_v20, 2  ;;  %v2465_v37 = vsel %vm2248_vm2, %v8730_v25, -inf  ;;  %v2753_v12 = vsel %vm2248_vm2, %v8735_v38, -inf  ;;  %3575 = vrot.lane.b32.xlu2 %v2464_v63, %s4894_s8  ;;  %v3041_v32 = vsel %vm2248_vm2, %v8731_v7, -inf }
 0x23c   : > { %4204 = vst [vmem:[%s5676_s19 + $0x118] sm:$0xff] %v3948_v16  ;;  %v8733_v16 = vmax.f32 %v7500_v5, 0.0  ;;  %v2752_v10 = vmax.f32 %v2750_v52, %v2751_v48  ;;  %v2466_v27 = vsel %vm2248_vm2, %v8732_v19, -inf  ;;  %v3038_v17 = vmax.f32 %v3036_v49, %v3037_v59  ;;  %v1947_v48 = vpop.f32.mrf.mxu3 }
 0x23d   : > { %4391 = vst [vmem:[%s5676_s19 + $0x6f0] sm:$0xff] %v4135_v40  ;;  %v3562_v40 = vpop.permute.xlu1 %3561  ;;  %v3326_v25 = vmax.f32 %v3324_v20, %v3325_v6  ;;  %v7525_v52 = vadd.f32 %v7326_v36, %v1755_v24  ;;  %v9121_v7 = vmax.f32 %v6601_v41, 0.0  ;;  %v3329_v49 = vsel %vm2248_vm2, %v8734_v0, -inf  ;;  %v3756_v24 = vpop.permute.xlu2 %3755 }
 0x23e   : > { %4392 = vst [vmem:[%s5676_s19 + $0x6f8] sm:$0xff] %v4136_v50  ;;  %v2467_v50 = vmax.f32 %v2465_v37, %v2466_v27  ;;  %v2754_v63 = vsel %vm2248_vm2, %v8733_v16, -inf  ;;  %3639 = vrot.lane.b32.xlu1 %v2752_v10, %s4894_s8  ;;  %v7534_v59 = vadd.f32 %v7326_v36, %v1947_v48  ;;  %v9122_v6 = vmax.f32 %v6641_v11, 0.0  ;;  %v1374_v10 = vpop.f32.mrf.mxu0 }
 0x23f   : > { %v3945_v19 = vsel %vm2248_vm2, %v9121_v7, %v3562_v40  ;;  %v2755_v20 = vmax.f32 %v2753_v12, %v2754_v63  ;;  %v8743_v41 = vmax.f32 %v7525_v52, 0.0  ;;  %v3626_v7 = vpop.permute.xlu0 %3625  ;;  %v3039_v16 = vrot.slane %v3038_v17, 1 }
 0x240   : > { %v3946_v37 = vsel %vm2248_vm2, %v9122_v6, %v3562_v40  ;;  %4201 = vst [vmem:[%s5676_s19 + $0x100] sm:$0xff] %v3945_v19  ;;  %v2468_v27 = vrot.slane %v2467_v50, 4  ;;  %v3327_v0 = vrot.slane %v3326_v25, 1  ;;  %v9123_v11 = vmax.f32 %v6750_v46, 0.0  ;;  %v1566_v6 = vpop.f32.mrf.mxu1 }
 0x241   : > { %4202 = vst [vmem:[%s5676_s19 + $0x108] sm:$0xff] %v3946_v37  ;;  %v2756_v12 = vrot.slane %v2755_v20, 4  ;;  %v9124_v19 = vmax.f32 %v6779_v13, 0.0  ;;  %v3042_v37 = vsel %vm2248_vm2, %v8743_v41, -inf  ;;  %v9125_v62 = vmax.f32 %v6609_v54, 0.0 }
 0x242   : > { %v4139_v40 = vsel %vm2248_vm2, %v9123_v11, %v3756_v24  ;;  %v2469_v38 = vmax.f32 %v2467_v50, %v2468_v27  ;;  %v9127_v46 = vmax.f32 %v9126_v43, 0.0  ;;  %v3043_v13 = vmax.f32 %v3041_v32, %v3042_v37 }
 0x243   : > { %v4140_v48 = vsel %vm2248_vm2, %v9124_v19, %v3756_v24  ;;  %4395 = vst [vmem:[%s5676_s19 + $0x710] sm:$0xff] %v4139_v40  ;;  %v4009_v63 = vsel %vm2248_vm2, %v9125_v62, %v3626_v7  ;;  %v2757_v21 = vmax.f32 %v2755_v20, %v2756_v12  ;;  %v9128_v24 = vmax.f32 %v7534_v59, 0.0  ;;  %v1758_v20 = vpop.f32.mrf.mxu2 }
 0x244   : > { %v4010_v11 = vsel %vm2248_vm2, %v9127_v46, %v3626_v7  ;;  %4396 = vst [vmem:[%s5676_s19 + $0x718] sm:$0xff] %v4140_v48  ;;  %v7564_v27 = vadd.f32 %v7326_v36, %v1374_v10  ;;  %v7568_v54 = vadd.f32 %v7326_v36, %v1566_v6  ;;  %v3040_v62 = vmax.f32 %v3038_v17, %v3039_v16  ;;  %v1950_v10 = vpop.f32.mrf.mxu3 }
 0x245   : > { %v3330_v50 = vsel %vm2248_vm2, %v9128_v24, -inf  ;;  %4265 = vst [vmem:[%s5676_s19 + $0x300] sm:$0xff] %v4009_v63  ;;  %v3328_v40 = vmax.f32 %v3326_v25, %v3327_v0  ;;  %v3044_v43 = vrot.slane %v3043_v13, 4  ;;  %v3754_v32 = vpop.permute.xlu1 %3753  ;;  %v2758_v7 = vrot.slane %v2757_v21, 2 }
 0x246   : > { %v3331_v19 = vmax.f32 %v3329_v49, %v3330_v50  ;;  %4266 = vst [vmem:[%s5676_s19 + $0x308] sm:$0xff] %v4010_v11  ;;  %3703 = vrot.lane.b32.xlu0 %v3040_v62, %s4894_s8  ;;  %v7574_v49 = vadd.f32 %v7326_v36, %v1758_v20  ;;  %v9129_v63 = vmax.f32 %v6629_v60, 0.0  ;;  %v2470_v0 = vrot.slane %v2469_v38, 2  ;;  %v1377_v37 = vpop.f32.mrf.mxu0  ;;  %v3630_v50 = vpop.permute.xlu2 %3629 }
 0x247   : > { %3767 = vrot.lane.b32.xlu2 %v3328_v40, %s4894_s8  ;;  %v3045_v16 = vmax.f32 %v3043_v13, %v3044_v43  ;;  %v8741_v17 = vmax.f32 %v7564_v27, 0.0  ;;  %v9130_v48 = vmax.f32 %v6674_v3, 0.0  ;;  %v2759_v46 = vmax.f32 %v2757_v21, %v2758_v7 }
 0x248   : > { %v3332_v12 = vrot.slane %v3331_v19, 4  ;;  %v4137_v25 = vsel %vm2248_vm2, %v9129_v63, %v3754_v32  ;;  %v8739_v24 = vmax.f32 %v7568_v54, 0.0  ;;  %v7586_v60 = vadd.f32 %v7326_v36, %v1950_v10  ;;  %v1569_v43 = vpop.f32.mrf.mxu1 }
 0x249   : > { %v4138_v6 = vsel %vm2248_vm2, %v9130_v48, %v3754_v32  ;;  %4393 = vst [vmem:[%s5676_s19 + $0x700] sm:$0xff] %v4137_v25  ;;  %v7590_v13 = vadd.f32 %v7326_v36, %v1377_v37  ;;  %v8747_v3 = vmax.f32 %v7574_v49, 0.0  ;;  %v9131_v62 = vmax.f32 %v6816_v28, 0.0 }
 0x24a   : > { %v3333_v11 = vmax.f32 %v3331_v19, %v3332_v12  ;;  %4394 = vst [vmem:[%s5676_s19 + $0x708] sm:$0xff] %v4138_v6  ;;  %v9132_v21 = vmax.f32 %v6860_v47, 0.0  ;;  %v2760_v20 = vrot.slane %v2759_v46, 1  ;;  %v7602_v7 = vadd.f32 %v7326_v36, %v1569_v43 }
 0x24b   : > { %v4013_v40 = vsel %vm2248_vm2, %v9131_v62, %v3630_v50  ;;  %v8740_v32 = vmax.f32 %v7590_v13, 0.0  ;;  %v2471_v12 = vmax.f32 %v2469_v38, %v2470_v0  ;;  %v2474_v10 = vsel %vm2248_vm2, %v8741_v17, -inf }
 0x24c   : > { %v4014_v19 = vsel %vm2248_vm2, %v9132_v21, %v3630_v50  ;;  %4269 = vst [vmem:[%s5676_s19 + $0x320] sm:$0xff] %v4013_v40  ;;  %v2761_v28 = vmax.f32 %v2759_v46, %v2760_v20  ;;  %v3046_v63 = vrot.slane %v3045_v16, 2  ;;  %v3334_v25 = vrot.slane %v3333_v11, 2  ;;  %v1761_v50 = vpop.f32.mrf.mxu2  ;;  %v1953_v43 = vpop.f32.mrf.mxu3 }
 0x24d   : > { %4270 = vst [vmem:[%s5676_s19 + $0x328] sm:$0xff] %v4014_v19  ;;  %v8744_v47 = vmax.f32 %v7586_v60, 0.0  ;;  %v2475_v48 = vsel %vm2248_vm2, %v8740_v32, -inf  ;;  %v8742_v6 = vmax.f32 %v7602_v7, 0.0  ;;  %v2472_v37 = vrot.slane %v2471_v12, 1 }
 0x24e   : > { %v2762_v38 = vsel %vm2248_vm2, %v8739_v24, -inf  ;;  %v3050_v0 = vsel %vm2248_vm2, %v8747_v3, -inf  ;;  %v2476_v46 = vmax.f32 %v2474_v10, %v2475_v48  ;;  %v3047_v62 = vmax.f32 %v3045_v16, %v3046_v63  ;;  %v3628_v16 = vpop.permute.xlu1 %3627  ;;  %v1380_v10 = vpop.f32.mrf.mxu0 }
 0x24f   : > { %v2763_v40 = vsel %vm2248_vm2, %v8742_v6, -inf  ;;  %3641 = vrot.lane.b32.xlu2 %v2761_v28, %s4894_s8  ;;  %v2473_v21 = vmax.f32 %v2471_v12, %v2472_v37  ;;  %v7624_v19 = vadd.f32 %v7326_v36, %v1761_v50  ;;  %v3335_v20 = vmax.f32 %v3333_v11, %v3334_v25  ;;  %v9134_v25 = vld [vmem:[#allocation27_spill] sm:$0xff] }
 0x250   : > { %v2477_v24 = vrot.slane %v2476_v46, 4  ;;  %v2764_v32 = vmax.f32 %v2762_v38, %v2763_v40  ;;  %v7627_v17 = vadd.f32 %v7326_v36, %v1953_v43  ;;  %v3048_v63 = vrot.slane %v3047_v62, 1  ;;  %v1572_v6 = vpop.f32.mrf.mxu1 }
 0x251   : > { %v3338_v28 = vsel %vm2248_vm2, %v8744_v47, -inf  ;;  %3577 = vrot.lane.b32.xlu0 %v2473_v21, %s4894_s8  ;;  %v8745_v12 = vmax.f32 %v7624_v19, 0.0  ;;  %v9133_v48 = vmax.f32 %v6709_v42, 0.0  ;;  %v9135_v37 = vmax.f32 %v9134_v25, 0.0 }
 0x252   : > { %v2478_v50 = vmax.f32 %v2476_v46, %v2477_v24  ;;  %v2765_v40 = vrot.slane %v2764_v32, 4  ;;  %v8746_v43 = vmax.f32 %v7627_v17, 0.0  ;;  %v3049_v41 = vmax.f32 %v3047_v62, %v3048_v63 }
 0x253   : > { %v4011_v11 = vsel %vm2248_vm2, %v9133_v48, %v3628_v16  ;;  %v4012_v38 = vsel %vm2248_vm2, %v9135_v37, %v3628_v16  ;;  %v3051_v21 = vsel %vm2248_vm2, %v8745_v12, -inf  ;;  %v7647_v42 = vadd.f32 %v7326_v36, %v1380_v10 }
 0x254   : > { %4267 = vst [vmem:[%s5676_s19 + $0x310] sm:$0xff] %v4011_v11  ;;  %v7650_v48 = vadd.f32 %v7326_v36, %v1572_v6  ;;  %v3336_v25 = vrot.slane %v3335_v20, 1  ;;  %v2766_v16 = vmax.f32 %v2764_v32, %v2765_v40  ;;  %v3052_v24 = vmax.f32 %v3050_v0, %v3051_v21  ;;  %3705 = vrot.lane.b32.xlu1 %v3049_v41, %s4894_s8  ;;  %v1764_v37 = vpop.f32.mrf.mxu2  ;;  %v1956_v0 = vpop.f32.mrf.mxu3 }
 0x255   : > { %4268 = vst [vmem:[%s5676_s19 + $0x318] sm:$0xff] %v4012_v38  ;;  %v3339_v46 = vsel %vm2248_vm2, %v8746_v43, -inf  ;;  %v2479_v62 = vrot.slane %v2478_v50, 2  ;;  %v8748_v6 = vmax.f32 %v7647_v42, 0.0  ;;  %v3692_v21 = vpop.permute.xlu0 %3691  ;;  %v7659_v43 = vadd.f32 %v7326_v36, %v1764_v37 }
 0x256   : > { %v3340_v63 = vmax.f32 %v3338_v28, %v3339_v46  ;;  %v3053_v11 = vrot.slane %v3052_v24, 4  ;;  %v2767_v47 = vrot.slane %v2766_v16, 2  ;;  %v3337_v32 = vmax.f32 %v3335_v20, %v3336_v25  ;;  %v1383_v41 = vpop.f32.mrf.mxu0 }
 0x257   : > { %v2480_v38 = vmax.f32 %v2478_v50, %v2479_v62  ;;  %9136 = vst [vmem:[#allocation36_spill] sm:$0xff] %v7659_v43  ;;  %v9137_v50 = vmax.f32 %v6728_v57, 0.0  ;;  %v9138_v12 = vmax.f32 %v6773_v31, 0.0  ;;  %v7670_v25 = vadd.f32 %v7326_v36, %v1956_v0 }
 0x258   : > { %v3341_v10 = vrot.slane %v3340_v63, 4  ;;  %v3054_v40 = vmax.f32 %v3052_v24, %v3053_v11  ;;  %v2768_v46 = vmax.f32 %v2766_v16, %v2767_v47  ;;  %v7673_v24 = vadd.f32 %v7326_v36, %v1383_v41  ;;  %v1575_v11 = vpop.f32.mrf.mxu1 }
 0x259   : > { %v2481_v28 = vrot.slane %v2480_v38, 1  ;;  %3769 = vrot.lane.b32.xlu0 %v3337_v32, %s4894_s8  ;;  %v4075_v62 = vsel %vm2248_vm2, %v9137_v50, %v3692_v21  ;;  %v4076_v20 = vsel %vm2248_vm2, %v9138_v12, %v3692_v21  ;;  %v2483_v31 = vsel %vm2248_vm2, %v8748_v6, -inf  ;;  %v3696_v21 = vpop.permute.xlu2 %3695 }
 0x25a   : > { %v3342_v3 = vmax.f32 %v3340_v63, %v3341_v10  ;;  %4331 = vst [vmem:[%s5676_s19 + $0x510] sm:$0xff] %v4075_v62  ;;  %v2769_v16 = vrot.slane %v2768_v46, 1  ;;  %v7677_v63 = vadd.f32 %v7326_v36, %v1575_v11  ;;  %v3055_v57 = vrot.slane %v3054_v40, 2 }
 0x25b   : > { %v2482_v47 = vmax.f32 %v2480_v38, %v2481_v28  ;;  %4332 = vst [vmem:[%s5676_s19 + $0x518] sm:$0xff] %v4076_v20  ;;  %v9139_v12 = vmax.f32 %v7650_v48, 0.0  ;;  %v8749_v38 = vmax.f32 %v7673_v24, 0.0  ;;  %v8750_v62 = vmax.f32 %v7670_v25, 0.0 }
 0x25c   : > { %v3343_v37 = vrot.slane %v3342_v3, 2  ;;  %v2770_v41 = vmax.f32 %v2768_v46, %v2769_v16  ;;  %v3056_v28 = vmax.f32 %v3054_v40, %v3055_v57  ;;  %v9140_v11 = vmax.f32 %v6948_v1, 0.0  ;;  %v1767_v32 = vpop.f32.mrf.mxu2  ;;  %v1959_v16 = vpop.f32.mrf.mxu3 }
 0x25d   : > { %v2771_v10 = vsel %vm2248_vm2, %v9139_v12, -inf  ;;  %3579 = vrot.lane.b32.xlu1 %v2482_v47, %s4894_s8  ;;  %v2484_v20 = vsel %vm2248_vm2, %v8749_v38, -inf  ;;  %v9141_v6 = vmax.f32 %v6999_v22, 0.0  ;;  %v9142_v46 = vmax.f32 %v7677_v63, 0.0 }
 0x25e   : > { %v3344_v50 = vmax.f32 %v3342_v3, %v3343_v37  ;;  %v4079_v12 = vsel %vm2248_vm2, %v9140_v11, %v3696_v21  ;;  %v2485_v0 = vmax.f32 %v2483_v31, %v2484_v20  ;;  %v7704_v40 = vadd.f32 %v7326_v36, %v1767_v32  ;;  %v1386_v22 = vpop.f32.mrf.mxu0 }
 0x25f   : > { %v4080_v47 = vsel %vm2248_vm2, %v9141_v6, %v3696_v21  ;;  %v2772_v3 = vsel %vm2248_vm2, %v9142_v46, -inf  ;;  %4335 = vst [vmem:[%s5676_s19 + $0x530] sm:$0xff] %v4079_v12  ;;  %v3057_v57 = vrot.slane %v3056_v28, 1  ;;  %v7708_v1 = vadd.f32 %v7326_v36, %v1959_v16 }
 0x260   : > { %9143 = vst [vmem:[#allocation14_spill] sm:$0xff] %v7704_v40  ;;  %v2773_v37 = vmax.f32 %v2771_v10, %v2772_v3  ;;  %v3345_v11 = vrot.slane %v3344_v50, 1  ;;  %v9144_v6 = vmax.f32 %v7659_v43, 0.0  ;;  %v2486_v21 = vrot.slane %v2485_v0, 4  ;;  %v1578_v46 = vpop.f32.mrf.mxu1 }
 0x261   : > { %4336 = vst [vmem:[%s5676_s19 + $0x538] sm:$0xff] %v4080_v47  ;;  %3643 = vrot.lane.b32.xlu0 %v2770_v41, %s4894_s8  ;;  %v8751_v20 = vmax.f32 %v7704_v40, 0.0  ;;  %v3058_v32 = vmax.f32 %v3056_v28, %v3057_v57  ;;  %v3347_v10 = vsel %vm2248_vm2, %v8750_v62, -inf  ;;  %v8753_v47 = vmax.f32 %v7708_v1, 0.0  ;;  %v3566_v41 = vpop.permute.xlu0 %3565 }
 0x262   : > { %v3059_v31 = vsel %vm2248_vm2, %v9144_v6, -inf  ;;  %v2774_v12 = vrot.slane %v2773_v37, 4  ;;  %v3346_v3 = vmax.f32 %v3344_v50, %v3345_v11  ;;  %v2487_v16 = vmax.f32 %v2485_v0, %v2486_v21 }
 0x263   : > { %v3060_v6 = vsel %vm2248_vm2, %v8751_v20, -inf  ;;  %v7723_v38 = vadd.f32 %v7326_v36, %v1386_v22  ;;  %v7726_v28 = vadd.f32 %v7326_v36, %v1578_v46  ;;  %3707 = vrot.lane.b32.xlu2 %v3058_v32, %s4894_s8  ;;  %v3348_v50 = vsel %vm2248_vm2, %v8753_v47, -inf  ;;  %v9146_v22 = vld [vmem:[#allocation26_spill] sm:$0xff] }
 0x264   : > { %v2775_v57 = vmax.f32 %v2773_v37, %v2774_v12  ;;  %v3061_v62 = vmax.f32 %v3059_v31, %v3060_v6  ;;  %v9145_v0 = vmax.f32 %v6812_v35, 0.0  ;;  %v3349_v21 = vmax.f32 %v3347_v10, %v3348_v50  ;;  %v1770_v12 = vpop.f32.mrf.mxu2  ;;  %v1962_v6 = vpop.f32.mrf.mxu3  ;;  %v9149_v50 = vld [vmem:[#allocation25_spill] sm:$0xff] }
 0x265   : > { %3771 = vrot.lane.b32.xlu1 %v3346_v3, %s4894_s8  ;;  %v9147_v20 = vmax.f32 %v9146_v22, 0.0  ;;  %v2488_v37 = vrot.slane %v2487_v16, 2  ;;  %v3694_v10 = vpop.permute.xlu1 %3693  ;;  %v7744_v3 = vadd.f32 %v7326_v36, %v1770_v12  ;;  %v7753_v43 = vadd.f32 %v7326_v36, %v1962_v6 }
 0x266   : > { %v3949_v11 = vsel %vm2248_vm2, %v9145_v0, %v3566_v41  ;;  %v3062_v40 = vrot.slane %v3061_v62, 4  ;;  %v3350_v31 = vrot.slane %v3349_v21, 4  ;;  %v2776_v35 = vrot.slane %v2775_v57, 2  ;;  %v1389_v12 = vpop.f32.mrf.mxu0 }
 0x267   : > { %v3950_v46 = vsel %vm2248_vm2, %v9147_v20, %v3566_v41  ;;  %4205 = vst [vmem:[%s5676_s19 + $0x120] sm:$0xff] %v3949_v11  ;;  %v3570_v20 = vpop.permute.xlu2 %3569  ;;  %v2489_v41 = vmax.f32 %v2487_v16, %v2488_v37  ;;  %v9150_v11 = vmax.f32 %v9149_v50, 0.0  ;;  %v9154_v37 = vmax.f32 %v7058_v29, 0.0 }
 0x268   : > { %4206 = vst [vmem:[%s5676_s19 + $0x128] sm:$0xff] %v3950_v46  ;;  %v3063_v47 = vmax.f32 %v3061_v62, %v3062_v40  ;;  %v9151_v46 = vmax.f32 %v6891_v18, 0.0  ;;  %v9153_v62 = vmax.f32 %v7030_v33, 0.0  ;;  %v3351_v0 = vmax.f32 %v3349_v21, %v3350_v31  ;;  %v1581_v6 = vpop.f32.mrf.mxu1 }
 0x269   : > { %9148 = vst [vmem:[#allocation37_spill] sm:$0xff] %v7744_v3  ;;  %v4077_v22 = vsel %vm2248_vm2, %v9150_v11, %v3694_v10  ;;  %v3954_v18 = vsel %vm2248_vm2, %v9154_v37, %v3570_v20  ;;  %v3758_v50 = vpop.permute.xlu0 %3757  ;;  %v7768_v33 = vadd.f32 %v7326_v36, %v1581_v6  ;;  %v2490_v11 = vrot.slane %v2489_v41, 1 }
 0x26a   : > { %v4078_v32 = vsel %vm2248_vm2, %v9151_v46, %v3694_v10  ;;  %9152 = vst [vmem:[#allocation17_spill] sm:$0xff] %v7753_v43  ;;  %v3953_v40 = vsel %vm2248_vm2, %v9153_v62, %v3570_v20  ;;  %v7764_v10 = vadd.f32 %v7326_v36, %v1389_v12  ;;  %v2777_v21 = vmax.f32 %v2775_v57, %v2776_v35  ;;  %v9156_v20 = vld [vmem:[#allocation28_spill] sm:$0xff] }
 0x26b   : > { %4333 = vst [vmem:[%s5676_s19 + $0x520] sm:$0xff] %v4077_v22  ;;  %v3064_v31 = vrot.slane %v3063_v47, 2  ;;  %v9155_v22 = vmax.f32 %v7723_v38, 0.0  ;;  %v9157_v46 = vmax.f32 %v9156_v20, 0.0  ;;  %v8756_v57 = vmax.f32 %v7768_v33, 0.0 }
 0x26c   : > { %4334 = vst [vmem:[%s5676_s19 + $0x528] sm:$0xff] %v4078_v32  ;;  %v9158_v32 = vmax.f32 %v6894_v8, 0.0  ;;  %v8755_v37 = vmax.f32 %v7764_v10, 0.0  ;;  %v2491_v35 = vmax.f32 %v2489_v41, %v2490_v11  ;;  %v2778_v6 = vrot.slane %v2777_v21, 1  ;;  %v1773_v11 = vpop.f32.mrf.mxu2 }
 0x26d   : > { %v2492_v29 = vsel %vm2248_vm2, %v9155_v22, -inf  ;;  %4209 = vst [vmem:[%s5676_s19 + $0x140] sm:$0xff] %v3953_v40  ;;  %v4141_v62 = vsel %vm2248_vm2, %v9157_v46, %v3758_v50  ;;  %v9159_v16 = vmax.f32 %v7726_v28, 0.0  ;;  %v8758_v40 = vmax.f32 %v7753_v43, 0.0 }
 0x26e   : > { %v4142_v12 = vsel %vm2248_vm2, %v9158_v32, %v3758_v50  ;;  %4210 = vst [vmem:[%s5676_s19 + $0x148] sm:$0xff] %v3954_v18  ;;  %v3065_v20 = vmax.f32 %v3063_v47, %v3064_v31  ;;  %v3352_v46 = vrot.slane %v3351_v0, 2  ;;  %v9160_v8 = vmax.f32 %v7744_v3, 0.0  ;;  %3581 = vrot.lane.b32.xlu2 %v2491_v35, %s4894_s8 }
 0x26f   : > { %v2780_v22 = vsel %vm2248_vm2, %v9159_v16, -inf  ;;  %4397 = vst [vmem:[%s5676_s19 + $0x720] sm:$0xff] %v4141_v62  ;;  %v2493_v18 = vsel %vm2248_vm2, %v8755_v37, -inf  ;;  %v2781_v41 = vsel %vm2248_vm2, %v8756_v57, -inf  ;;  %v2779_v16 = vmax.f32 %v2777_v21, %v2778_v6  ;;  %v1965_v62 = vpop.f32.mrf.mxu3  ;;  %v1392_v6 = vpop.f32.mrf.mxu0 }
 0x270   : > { %v3068_v50 = vsel %vm2248_vm2, %v9160_v8, -inf  ;;  %4398 = vst [vmem:[%s5676_s19 + $0x728] sm:$0xff] %v4142_v12  ;;  %v2494_v47 = vmax.f32 %v2492_v29, %v2493_v18  ;;  %v2782_v31 = vmax.f32 %v2780_v22, %v2781_v41  ;;  %v7800_v32 = vadd.f32 %v7326_v36, %v1773_v11  ;;  %v3568_v8 = vpop.permute.xlu1 %3567 }
 0x271   : > { %v7803_v12 = vadd.f32 %v7326_v36, %v1965_v62  ;;  %3645 = vrot.lane.b32.xlu1 %v2779_v16, %s4894_s8  ;;  %v9162_v37 = vmax.f32 %v6931_v39, 0.0  ;;  %v9163_v21 = vmax.f32 %v6962_v4, 0.0  ;;  %v3066_v22 = vrot.slane %v3065_v20, 1  ;;  %v3762_v16 = vpop.permute.xlu2 %3761  ;;  %v1584_v39 = vpop.f32.mrf.mxu1 }
 0x272   : > { %v3353_v18 = vmax.f32 %v3351_v0, %v3352_v46  ;;  %v2495_v41 = vrot.slane %v2494_v47, 4  ;;  %v2783_v11 = vrot.slane %v2782_v31, 4  ;;  %v3356_v4 = vsel %vm2248_vm2, %v8758_v40, -inf }
 0x273   : > { %9161 = vst [vmem:[#allocation22_spill] sm:$0xff] %v7803_v12  ;;  %v3951_v35 = vsel %vm2248_vm2, %v9162_v37, %v3568_v8  ;;  %v3952_v29 = vsel %vm2248_vm2, %v9163_v21, %v3568_v8  ;;  %v9164_v37 = vmax.f32 %v7072_v55, 0.0  ;;  %v9165_v46 = vmax.f32 %v7104_v23, 0.0  ;;  %v3632_v21 = vpop.permute.xlu0 %3631 }
 0x274   : > { %4207 = vst [vmem:[%s5676_s19 + $0x130] sm:$0xff] %v3951_v35  ;;  %v7826_v57 = vadd.f32 %v7326_v36, %v1392_v6  ;;  %v2496_v35 = vmax.f32 %v2494_v47, %v2495_v41  ;;  %v2784_v62 = vmax.f32 %v2782_v31, %v2783_v11  ;;  %v9167_v43 = vmax.f32 %v7800_v32, 0.0 }
 0x275   : > { %v4145_v0 = vsel %vm2248_vm2, %v9164_v37, %v3762_v16  ;;  %v4146_v8 = vsel %vm2248_vm2, %v9165_v46, %v3762_v16  ;;  %4208 = vst [vmem:[%s5676_s19 + $0x138] sm:$0xff] %v3952_v29  ;;  %v9168_v55 = vmax.f32 %v7803_v12, 0.0  ;;  %v9169_v29 = vmax.f32 %v6936_v53, 0.0 }
 0x276   : > { %9166 = vst [vmem:[#allocation19_spill] sm:$0xff] %v7826_v57  ;;  %v3069_v40 = vsel %vm2248_vm2, %v9167_v43, -inf  ;;  %v9170_v47 = vmax.f32 %v6974_v56, 0.0  ;;  %v8760_v41 = vmax.f32 %v7826_v57, 0.0  ;;  %v7845_v43 = vadd.f32 %v7326_v36, %v1584_v39 }
 0x277   : > { %v3357_v37 = vsel %vm2248_vm2, %v9168_v55, -inf  ;;  %4401 = vst [vmem:[%s5676_s19 + $0x740] sm:$0xff] %v4145_v0  ;;  %v3070_v23 = vmax.f32 %v3068_v50, %v3069_v40  ;;  %v4015_v6 = vsel %vm2248_vm2, %v9169_v29, %v3632_v21  ;;  %v3067_v11 = vmax.f32 %v3065_v20, %v3066_v22  ;;  %v1776_v50 = vpop.f32.mrf.mxu2  ;;  %v1968_v53 = vpop.f32.mrf.mxu3 }
 0x278   : > { %v3358_v3 = vmax.f32 %v3356_v4, %v3357_v37  ;;  %4402 = vst [vmem:[%s5676_s19 + $0x748] sm:$0xff] %v4146_v8  ;;  %v4016_v31 = vsel %vm2248_vm2, %v9170_v47, %v3632_v21  ;;  %v3354_v16 = vrot.slane %v3353_v18, 1  ;;  %v2785_v4 = vrot.slane %v2784_v62, 2  ;;  %v3760_v21 = vpop.permute.xlu1 %3759  ;;  %v1395_v29 = vpop.f32.mrf.mxu0 }
 0x279   : > { %4271 = vst [vmem:[%s5676_s19 + $0x330] sm:$0xff] %v4015_v6  ;;  %v3071_v0 = vrot.slane %v3070_v23, 4  ;;  %v2497_v46 = vrot.slane %v2496_v35, 2  ;;  %3709 = vrot.lane.b32.xlu0 %v3067_v11, %s4894_s8  ;;  %v7850_v8 = vadd.f32 %v7326_v36, %v1776_v50  ;;  %v7853_v20 = vadd.f32 %v7326_v36, %v1968_v53  ;;  %v3636_v11 = vpop.permute.xlu2 %3635  ;;  %v9177_v50 = vld [vmem:[#allocation39_spill] sm:$0xff] }
 0x27a   : > { %9171 = vst [vmem:[#allocation30_spill] sm:$0xff] %v7845_v43  ;;  %v3359_v40 = vrot.slane %v3358_v3, 4  ;;  %v3355_v56 = vmax.f32 %v3353_v18, %v3354_v16  ;;  %v9173_v22 = vmax.f32 %v6955_v15, 0.0  ;;  %v8761_v6 = vmax.f32 %v7845_v43, 0.0 }
 0x27b   : > { %4272 = vst [vmem:[%s5676_s19 + $0x338] sm:$0xff] %v4016_v31  ;;  %v3072_v39 = vmax.f32 %v3070_v23, %v3071_v0  ;;  %v9174_v18 = vmax.f32 %v7003_v44, 0.0  ;;  %v1587_v23 = vpop.f32.mrf.mxu1  ;;  %v2786_v31 = vmax.f32 %v2784_v62, %v2785_v4  ;;  %v2501_v15 = vsel %vm2248_vm2, %v8760_v41, -inf }
 0x27c   : > { %v3360_v55 = vmax.f32 %v3358_v3, %v3359_v40  ;;  %9172 = vst [vmem:[#allocation24_spill] sm:$0xff] %v7853_v20  ;;  %v4143_v37 = vsel %vm2248_vm2, %v9173_v22, %v3760_v21  ;;  %3773 = vrot.lane.b32.xlu2 %v3355_v56, %s4894_s8  ;;  %v7865_v3 = vadd.f32 %v7326_v36, %v1395_v29  ;;  %v8764_v40 = vmax.f32 %v7850_v8, 0.0 }
 0x27d   : > { %v4144_v47 = vsel %vm2248_vm2, %v9174_v18, %v3760_v21  ;;  %4399 = vst [vmem:[%s5676_s19 + $0x730] sm:$0xff] %v4143_v37  ;;  %v7872_v16 = vadd.f32 %v7326_v36, %v1587_v23  ;;  %v2498_v44 = vmax.f32 %v2496_v35, %v2497_v46  ;;  %v3073_v0 = vrot.slane %v3072_v39, 2  ;;  %v9179_v21 = vld [vmem:[#allocation15_spill] sm:$0xff] }
 0x27e   : > { %9175 = vst [vmem:[#allocation27_spill] sm:$0xff] %v7865_v3  ;;  %v9178_v53 = vmax.f32 %v9177_v50, 0.0  ;;  %v9180_v62 = vmax.f32 %v9179_v21, 0.0  ;;  %v8763_v22 = vmax.f32 %v7865_v3, 0.0  ;;  %v8765_v37 = vmax.f32 %v7853_v20, 0.0  ;;  %v9184_v20 = vld [vmem:[#allocation33_spill] sm:$0xff] }
 0x27f   : > { %4400 = vst [vmem:[%s5676_s19 + $0x738] sm:$0xff] %v4144_v47  ;;  %v8762_v36 = vmax.f32 %v7872_v16, 0.0  ;;  %v2787_v29 = vrot.slane %v2786_v31, 1  ;;  %v2499_v35 = vrot.slane %v2498_v44, 1  ;;  %v2789_v46 = vsel %vm2248_vm2, %v8761_v6, -inf  ;;  %v1779_v21 = vpop.f32.mrf.mxu2 }
 0x280   : > { %9176 = vst [vmem:[#allocation26_spill] sm:$0xff] %v7872_v16  ;;  %v4019_v56 = vsel %vm2248_vm2, %v9178_v53, %v3636_v11  ;;  %v4020_v4 = vsel %vm2248_vm2, %v9180_v62, %v3636_v11  ;;  %v2502_v18 = vsel %vm2248_vm2, %v8763_v22, -inf  ;;  %v3074_v47 = vmax.f32 %v3072_v39, %v3073_v0  ;;  %v1971_v62 = vpop.f32.mrf.mxu3 }
 0x281   : > { %4275 = vst [vmem:[%s5676_s19 + $0x350] sm:$0xff] %v4019_v56  ;;  %v3361_v23 = vrot.slane %v3360_v55, 2  ;;  %v2503_v11 = vmax.f32 %v2501_v15, %v2502_v18  ;;  %v2790_v50 = vsel %vm2248_vm2, %v8762_v36, -inf  ;;  %v2788_v53 = vmax.f32 %v2786_v31, %v2787_v29  ;;  %v3634_v29 = vpop.permute.xlu1 %3633 }
 0x282   : > { %4276 = vst [vmem:[%s5676_s19 + $0x358] sm:$0xff] %v4020_v4  ;;  %v2500_v56 = vmax.f32 %v2498_v44, %v2499_v35  ;;  %v2791_v41 = vmax.f32 %v2789_v46, %v2790_v50  ;;  %v7898_v4 = vld [vmem:[%s8510_s2] ss:$0 sm:$0xff]  ;;  %v3075_v15 = vrot.slane %v3074_v47, 1  ;;  %v3077_v31 = vsel %vm2248_vm2, %v8764_v40, -inf  ;;  %v1398_v35 = vpop.f32.mrf.mxu0 }
 0x283   : > { %v7901_v6 = vadd.f32 %v7898_v4, %v1779_v21  ;;  %v7904_v39 = vadd.f32 %v7898_v4, %v1971_v62  ;;  %v3365_v44 = vsel %vm2248_vm2, %v8765_v37, -inf  ;;  %v2504_v0 = vrot.slane %v2503_v11, 4  ;;  %v9182_v62 = vld [vmem:[#allocation29_spill] sm:$0xff]  ;;  %v1590_v40 = vpop.f32.mrf.mxu1 }
 0x284   : > { %3583 = vrot.lane.b32.xlu0 %v2500_v56, %s4894_s8  ;;  %v3362_v46 = vmax.f32 %v3360_v55, %v3361_v23  ;;  %v2792_v18 = vrot.slane %v2791_v41, 4  ;;  %3647 = vrot.lane.b32.xlu2 %v2788_v53, %s4894_s8  ;;  %v9183_v36 = vmax.f32 %v9182_v62, 0.0  ;;  %v9185_v16 = vmax.f32 %v9184_v20, 0.0 }
 0x285   : > { %9181 = vst [vmem:[#allocation25_spill] sm:$0xff] %v7904_v39  ;;  %v8768_v50 = vmax.f32 %v7901_v6, 0.0  ;;  %v8771_v21 = vmax.f32 %v7904_v39, 0.0  ;;  %v2505_v37 = vmax.f32 %v2503_v11, %v2504_v0  ;;  %v7924_v55 = vadd.f32 %v7898_v4, %v1398_v35  ;;  %v9189_v39 = vld [vmem:[#allocation31_spill] sm:$0xff] }
 0x286   : > { %v4017_v22 = vsel %vm2248_vm2, %v9183_v36, %v3634_v29  ;;  %v4018_v56 = vsel %vm2248_vm2, %v9185_v16, %v3634_v29  ;;  %v7927_v23 = vadd.f32 %v7898_v4, %v1590_v40  ;;  %v2793_v53 = vmax.f32 %v2791_v41, %v2792_v18 }
 0x287   : > { %4273 = vst [vmem:[%s5676_s19 + $0x340] sm:$0xff] %v4017_v22  ;;  %v3078_v62 = vsel %vm2248_vm2, %v8768_v50, -inf  ;;  %v3366_v36 = vsel %vm2248_vm2, %v8771_v21, -inf  ;;  %v3076_v20 = vmax.f32 %v3074_v47, %v3075_v15  ;;  %v3363_v22 = vrot.slane %v3362_v46, 1  ;;  %v1782_v41 = vpop.f32.mrf.mxu2 }
 0x288   : > { %9186 = vst [vmem:[#allocation28_spill] sm:$0xff] %v7927_v23  ;;  %v3079_v11 = vmax.f32 %v3077_v31, %v3078_v62  ;;  %v3367_v16 = vmax.f32 %v3365_v44, %v3366_v36  ;;  %v2506_v0 = vrot.slane %v2505_v37, 2  ;;  %v2794_v29 = vrot.slane %v2793_v53, 2  ;;  %v7937_v18 = vpop.f32.mrf.mxu3  ;;  %v3698_v62 = vpop.permute.xlu0 %3697 }
 0x289   : > { %4274 = vst [vmem:[%s5676_s19 + $0x348] sm:$0xff] %v4018_v56  ;;  %3711 = vrot.lane.b32.xlu1 %v3076_v20, %s4894_s8  ;;  %v3364_v43 = vmax.f32 %v3362_v46, %v3363_v22  ;;  %v7942_v15 = vadd.f32 %v7898_v4, %v1782_v41  ;;  %v9190_v46 = vmax.f32 %v9189_v39, 0.0 }
 0x28a   : > { %v3080_v40 = vrot.slane %v3079_v11, 4  ;;  %v3368_v35 = vrot.slane %v3367_v16, 4  ;;  %v2507_v21 = vmax.f32 %v2505_v37, %v2506_v0  ;;  %v1401_v31 = vpop.f32.mrf.mxu0  ;;  %v2795_v44 = vmax.f32 %v2793_v53, %v2794_v29 }
 0x28b   : > { %9187 = vst [vmem:[#allocation39_spill] sm:$0xff] %v7942_v15  ;;  %v7946_v36 = vadd.f32 %v7898_v4, %v1401_v31  ;;  %v1593_v20 = vpop.f32.mrf.mxu1  ;;  %v4081_v37 = vsel %vm2248_vm2, %v9190_v46, %v3698_v62 }
 0x28c   : > { %v3081_v56 = vmax.f32 %v3079_v11, %v3080_v40  ;;  %v3369_v47 = vmax.f32 %v3367_v16, %v3368_v35  ;;  %3775 = vrot.lane.b32.xlu0 %v3364_v43, %s4894_s8  ;;  %v2508_v50 = vrot.slane %v2507_v21, 1  ;;  %v9191_v11 = vld [vmem:[#allocation32_spill] sm:$0xff]  ;;  %v7955_v0 = vadd.f32 %v7898_v4, %v1593_v20  ;;  %4337 = vst [vmem:[%s5676_s19 + $0x540] sm:$0xff] %v4081_v37  ;;  %v3702_v20 = vpop.permute.xlu2 %3701 }
 0x28d   : > { %9188 = vst [vmem:[#allocation15_spill] sm:$0xff] %v7946_v36  ;;  %v9192_v16 = vmax.f32 %v9191_v11, 0.0  ;;  %v2796_v53 = vrot.slane %v2795_v44, 1  ;;  %v9194_v43 = vmax.f32 %v7924_v55, 0.0  ;;  %v9195_v40 = vmax.f32 %v7927_v23, 0.0 }
 0x28e   : > { %9193 = vst [vmem:[#allocation29_spill] sm:$0xff] %v7955_v0  ;;  %v8775_v39 = vmax.f32 %v7946_v36, 0.0  ;;  %v2509_v41 = vmax.f32 %v2507_v21, %v2508_v50  ;;  %v3082_v46 = vrot.slane %v3081_v56, 2  ;;  %v3370_v11 = vrot.slane %v3369_v47, 2 }
 0x28f   : > { %v4082_v22 = vsel %vm2248_vm2, %v9192_v16, %v3698_v62  ;;  %v2510_v29 = vsel %vm2248_vm2, %v9194_v43, -inf  ;;  %v2798_v35 = vsel %vm2248_vm2, %v9195_v40, -inf  ;;  %v8777_v62 = vmax.f32 %v7955_v0, 0.0  ;;  %v9197_v40 = vld [vmem:[#allocation10_spill] sm:$0xff]  ;;  %v1785_v3 = vpop.f32.mrf.mxu2  ;;  %v9202_v0 = vld [vmem:[#allocation21_spill] sm:$0xff] }
 0x290   : > { %4338 = vst [vmem:[%s5676_s19 + $0x548] sm:$0xff] %v4082_v22  ;;  %v2511_v16 = vsel %vm2248_vm2, %v8775_v39, -inf  ;;  %v9196_v43 = vmax.f32 %v7272_v30, 0.0  ;;  %v9198_v23 = vmax.f32 %v9197_v40, 0.0  ;;  %v2797_v21 = vmax.f32 %v2795_v44, %v2796_v53  ;;  %v7982_v57 = vpop.f32.mrf.mxu3 }
 0x291   : > { %3585 = vrot.lane.b32.xlu1 %v2509_v41, %s4894_s8  ;;  %v2512_v22 = vmax.f32 %v2510_v29, %v2511_v16  ;;  %v2799_v31 = vsel %vm2248_vm2, %v8777_v62, -inf  ;;  %v3083_v39 = vmax.f32 %v3081_v56, %v3082_v46  ;;  %v3371_v30 = vmax.f32 %v3369_v47, %v3370_v11 }
 0x292   : > { %v4085_v37 = vsel %vm2248_vm2, %v9196_v43, %v3702_v20  ;;  %v4086_v50 = vsel %vm2248_vm2, %v9198_v23, %v3702_v20  ;;  %v2800_v12 = vmax.f32 %v2798_v35, %v2799_v31  ;;  %v7986_v43 = vadd.f32 %v7898_v4, %v1785_v3  ;;  %v1404_v20 = vpop.f32.mrf.mxu0  ;;  %v3572_v31 = vpop.permute.xlu0 %3571 }
 0x293   : > { %4341 = vst [vmem:[%s5676_s19 + $0x560] sm:$0xff] %v4085_v37  ;;  %v2513_v23 = vrot.slane %v2512_v22, 4  ;;  %v3084_v41 = vrot.slane %v3083_v39, 1  ;;  %v3372_v44 = vrot.slane %v3371_v30, 1  ;;  %v1596_v16 = vpop.f32.mrf.mxu1  ;;  %v9199_v56 = vmax.f32 %v7942_v15, 0.0  ;;  %v9200_v37 = vld [vmem:[#allocation13_spill] sm:$0xff] }
 0x294   : > { %4342 = vst [vmem:[%s5676_s19 + $0x568] sm:$0xff] %v4086_v50  ;;  %v2801_v53 = vrot.slane %v2800_v12, 4  ;;  %3649 = vrot.lane.b32.xlu0 %v2797_v21, %s4894_s8  ;;  %v8782_v29 = vmax.f32 %v7986_v43, 0.0  ;;  %v9201_v40 = vmax.f32 %v9200_v37, 0.0  ;;  %v9203_v36 = vmax.f32 %v9202_v0, 0.0 }
 0x295   : > { %v3086_v47 = vsel %vm2248_vm2, %v9199_v56, -inf  ;;  %v2514_v35 = vmax.f32 %v2512_v22, %v2513_v23  ;;  %v3085_v3 = vmax.f32 %v3083_v39, %v3084_v41  ;;  %v3373_v21 = vmax.f32 %v3371_v30, %v3372_v44  ;;  %v3700_v23 = vpop.permute.xlu1 %3699 }
 0x296   : > { %v2802_v46 = vmax.f32 %v2800_v12, %v2801_v53  ;;  %v3087_v11 = vsel %vm2248_vm2, %v8782_v29, -inf  ;;  %v3955_v50 = vsel %vm2248_vm2, %v9201_v40, %v3572_v31  ;;  %v3956_v15 = vsel %vm2248_vm2, %v9203_v36, %v3572_v31  ;;  %v9204_v36 = vld [vmem:[#allocation34_spill] sm:$0xff]  ;;  %v9206_v53 = vld [vmem:[#allocation35_spill] sm:$0xff] }
 0x297   : > { %v3088_v62 = vmax.f32 %v3086_v47, %v3087_v11  ;;  %4211 = vst [vmem:[%s5676_s19 + $0x150] sm:$0xff] %v3955_v50  ;;  %v8004_v22 = vadd.f32 %v7898_v4, %v1404_v20  ;;  %3713 = vrot.lane.b32.xlu2 %v3085_v3, %s4894_s8  ;;  %v8009_v12 = vadd.f32 %v7898_v4, %v1596_v16  ;;  %v2515_v39 = vrot.slane %v2514_v35, 2  ;;  %v1788_v0 = vpop.f32.mrf.mxu2  ;;  %v3576_v16 = vpop.permute.xlu2 %3575  ;;  %v9222_v29 = vld [vmem:[#allocation38_spill] sm:$0xff] }
 0x298   : > { %4212 = vst [vmem:[%s5676_s19 + $0x158] sm:$0xff] %v3956_v15  ;;  %v2803_v41 = vrot.slane %v2802_v46, 2  ;;  %v9205_v44 = vmax.f32 %v9204_v36, 0.0  ;;  %v9207_v56 = vmax.f32 %v9206_v53, 0.0  ;;  %v1980_v47 = vpop.f32.mrf.mxu3  ;;  %v8020_v31 = vadd.f32 %v7898_v4, %v7937_v18 }
 0x299   : > { %3777 = vrot.lane.b32.xlu1 %v3373_v21, %s4894_s8  ;;  %v3089_v30 = vrot.slane %v3088_v62, 4  ;;  %v8781_v11 = vmax.f32 %v8004_v22, 0.0  ;;  %v9208_v37 = vmax.f32 %v7346_v61, 0.0  ;;  %v8783_v21 = vmax.f32 %v8009_v12, 0.0 }
 0x29a   : > { %v4083_v20 = vsel %vm2248_vm2, %v9205_v44, %v3700_v23  ;;  %v4084_v15 = vsel %vm2248_vm2, %v9207_v56, %v3700_v23  ;;  %v1407_v50 = vpop.f32.mrf.mxu0  ;;  %v9209_v23 = vmax.f32 %v7388_v58, 0.0  ;;  %v3764_v44 = vpop.permute.xlu0 %3763  ;;  %v8040_v56 = vadd.f32 %v7898_v4, %v1788_v0  ;;  %v9211_v58 = vld [vmem:[#allocation5_spill] sm:$0xff] }
 0x29b   : > { %v3090_v3 = vmax.f32 %v3088_v62, %v3089_v30  ;;  %4339 = vst [vmem:[%s5676_s19 + $0x550] sm:$0xff] %v4083_v20  ;;  %v3959_v40 = vsel %vm2248_vm2, %v9208_v37, %v3576_v16  ;;  %v8033_v18 = vadd.f32 %v7898_v4, %v1407_v50  ;;  %v1599_v62 = vpop.f32.mrf.mxu1  ;;  %v2516_v30 = vmax.f32 %v2514_v35, %v2515_v39  ;;  %v9213_v37 = vld [vmem:[#allocation6_spill] sm:$0xff] }
 0x29c   : > { %4340 = vst [vmem:[%s5676_s19 + $0x558] sm:$0xff] %v4084_v15  ;;  %v3960_v36 = vsel %vm2248_vm2, %v9209_v23, %v3576_v16  ;;  %v8037_v61 = vadd.f32 %v7898_v4, %v1599_v62  ;;  %v2804_v20 = vmax.f32 %v2802_v46, %v2803_v41  ;;  %v9212_v15 = vmax.f32 %v9211_v58, 0.0 }
 0x29d   : > { %9210 = vst [vmem:[#allocation33_spill] sm:$0xff] %v8033_v18  ;;  %v3091_v53 = vrot.slane %v3090_v3, 2  ;;  %v9214_v50 = vmax.f32 %v9213_v37, 0.0  ;;  %v8784_v39 = vmax.f32 %v8033_v18, 0.0  ;;  %v2517_v41 = vrot.slane %v2516_v30, 1 }
 0x29e   : > { %4215 = vst [vmem:[%s5676_s19 + $0x170] sm:$0xff] %v3959_v40  ;;  %v4147_v16 = vsel %vm2248_vm2, %v9212_v15, %v3764_v44  ;;  %v8785_v46 = vmax.f32 %v8037_v61, 0.0  ;;  %v2805_v23 = vrot.slane %v2804_v20, 1  ;;  %v2519_v0 = vsel %vm2248_vm2, %v8781_v11, -inf }
 0x29f   : > { %4216 = vst [vmem:[%s5676_s19 + $0x178] sm:$0xff] %v3960_v36  ;;  %v4148_v35 = vsel %vm2248_vm2, %v9214_v50, %v3764_v44  ;;  %v2807_v36 = vsel %vm2248_vm2, %v8783_v21, -inf  ;;  %v2520_v62 = vsel %vm2248_vm2, %v8784_v39, -inf  ;;  %v3092_v44 = vmax.f32 %v3090_v3, %v3091_v53  ;;  %v1791_v50 = vpop.f32.mrf.mxu2 }
 0x2a0   : > { %4403 = vst [vmem:[%s5676_s19 + $0x750] sm:$0xff] %v4147_v16  ;;  %v2521_v58 = vmax.f32 %v2519_v0, %v2520_v62  ;;  %v2808_v15 = vsel %vm2248_vm2, %v8785_v46, -inf  ;;  %v2518_v16 = vmax.f32 %v2516_v30, %v2517_v41  ;;  %v2806_v37 = vmax.f32 %v2804_v20, %v2805_v23  ;;  %v1983_v39 = vpop.f32.mrf.mxu3  ;;  %v3574_v20 = vpop.permute.xlu1 %3573  ;;  %v9220_v46 = vld [vmem:[#allocation16_spill] sm:$0xff] }
 0x2a1   : > { %4404 = vst [vmem:[%s5676_s19 + $0x758] sm:$0xff] %v4148_v35  ;;  %v8068_v11 = vadd.f32 %v7898_v4, %v7982_v57  ;;  %v2809_v35 = vmax.f32 %v2807_v36, %v2808_v15  ;;  %v8072_v21 = vadd.f32 %v7898_v4, %v1791_v50  ;;  %v8075_v3 = vadd.f32 %v7898_v4, %v1980_v47  ;;  %v3768_v57 = vpop.permute.xlu2 %3767  ;;  %v9228_v50 = vld [vmem:[#allocation7_spill] sm:$0xff] }
 0x2a2   : > { %v2522_v53 = vrot.slane %v2521_v58, 4  ;;  %3587 = vrot.lane.b32.xlu2 %v2518_v16, %s4894_s8  ;;  %3651 = vrot.lane.b32.xlu1 %v2806_v37, %s4894_s8  ;;  %v8080_v30 = vadd.f32 %v7898_v4, %v1983_v39  ;;  %v3093_v41 = vrot.slane %v3092_v44, 1  ;;  %v9218_v36 = vmax.f32 %v7401_v45, 0.0  ;;  %v1410_v16 = vpop.f32.mrf.mxu0  ;;  %v3638_v18 = vpop.permute.xlu0 %3637 }
 0x2a3   : > { %9215 = vst [vmem:[#allocation31_spill] sm:$0xff] %v8072_v21  ;;  %v2810_v23 = vrot.slane %v2809_v35, 4  ;;  %v9219_v62 = vmax.f32 %v7432_v26, 0.0  ;;  %v1602_v37 = vpop.f32.mrf.mxu1  ;;  %v9221_v40 = vmax.f32 %v9220_v46, 0.0  ;;  %v9223_v45 = vmax.f32 %v9222_v29, 0.0 }
 0x2a4   : > { %9216 = vst [vmem:[#allocation32_spill] sm:$0xff] %v8075_v3  ;;  %v4151_v47 = vsel %vm2248_vm2, %v9218_v36, %v3768_v57  ;;  %v2523_v39 = vmax.f32 %v2521_v58, %v2522_v53  ;;  %v9224_v26 = vmax.f32 %v8040_v56, 0.0  ;;  %v9225_v58 = vmax.f32 %v8072_v21, 0.0 }
 0x2a5   : > { %9217 = vst [vmem:[#allocation10_spill] sm:$0xff] %v8080_v30  ;;  %v4152_v15 = vsel %vm2248_vm2, %v9219_v62, %v3768_v57  ;;  %v3957_v0 = vsel %vm2248_vm2, %v9221_v40, %v3574_v20  ;;  %v3958_v36 = vsel %vm2248_vm2, %v9223_v45, %v3574_v20  ;;  %v2811_v62 = vmax.f32 %v2809_v35, %v2810_v23 }
 0x2a6   : > { %4407 = vst [vmem:[%s5676_s19 + $0x770] sm:$0xff] %v4151_v47  ;;  %v3095_v57 = vsel %vm2248_vm2, %v9224_v26, -inf  ;;  %v3096_v53 = vsel %vm2248_vm2, %v9225_v58, -inf  ;;  %v9226_v47 = vld [vmem:[#allocation9_spill] sm:$0xff]  ;;  %v8788_v20 = vmax.f32 %v8075_v3, 0.0  ;;  %v9229_v26 = vmax.f32 %v9228_v50, 0.0 }
 0x2a7   : > { %4408 = vst [vmem:[%s5676_s19 + $0x778] sm:$0xff] %v4152_v15  ;;  %v9227_v46 = vmax.f32 %v9226_v47, 0.0  ;;  %v3097_v45 = vmax.f32 %v3095_v57, %v3096_v53  ;;  %v8115_v23 = vadd.f32 %v7898_v4, %v1410_v16  ;;  %v3094_v15 = vmax.f32 %v3092_v44, %v3093_v41 }
 0x2a8   : > { %4213 = vst [vmem:[%s5676_s19 + $0x160] sm:$0xff] %v3957_v0  ;;  %v4022_v35 = vsel %vm2248_vm2, %v9229_v26, %v3638_v18  ;;  %v2812_v58 = vrot.slane %v2811_v62, 2  ;;  %v2524_v47 = vrot.slane %v2523_v39, 2  ;;  %v8122_v57 = vadd.f32 %v7898_v4, %v1602_v37  ;;  %v1794_v0 = vpop.f32.mrf.mxu2  ;;  %v1986_v44 = vpop.f32.mrf.mxu3 }
 0x2a9   : > { %v4021_v40 = vsel %vm2248_vm2, %v9227_v46, %v3638_v18  ;;  %4214 = vst [vmem:[%s5676_s19 + $0x168] sm:$0xff] %v3958_v36  ;;  %v3098_v21 = vrot.slane %v3097_v45, 4  ;;  %v9230_v46 = vmax.f32 %v8080_v30, 0.0  ;;  %v9232_v50 = vmax.f32 %v8020_v31, 0.0  ;;  %3715 = vrot.lane.b32.xlu0 %v3094_v15, %s4894_s8 }
 0x2aa   : > { %4277 = vst [vmem:[%s5676_s19 + $0x360] sm:$0xff] %v4021_v40  ;;  %v2813_v41 = vmax.f32 %v2811_v62, %v2812_v58  ;;  %v2525_v16 = vmax.f32 %v2523_v39, %v2524_v47  ;;  %v9233_v36 = vmax.f32 %v8068_v11, 0.0  ;;  %v3383_v37 = vsel %vm2248_vm2, %v8788_v20, -inf }
 0x2ab   : > { %v3384_v29 = vsel %vm2248_vm2, %v9230_v46, -inf  ;;  %9231 = vst [vmem:[#allocation13_spill] sm:$0xff] %v8122_v57  ;;  %v3374_v18 = vsel %vm2248_vm2, %v9232_v50, -inf  ;;  %v3099_v40 = vmax.f32 %v3097_v45, %v3098_v21  ;;  %v8136_v26 = vadd.f32 %v7898_v4, %v1794_v0  ;;  %v3766_v46 = vpop.permute.xlu1 %3765  ;;  %v1605_v21 = vpop.f32.mrf.mxu1  ;;  %v9236_v0 = vld [vmem:[#allocation12_spill] sm:$0xff] }
 0x2ac   : > { %4278 = vst [vmem:[%s5676_s19 + $0x368] sm:$0xff] %v4022_v35  ;;  %v3375_v53 = vsel %vm2248_vm2, %v9233_v36, -inf  ;;  %v3642_v35 = vpop.permute.xlu2 %3641  ;;  %v3385_v15 = vmax.f32 %v3383_v37, %v3384_v29  ;;  %v9234_v39 = vmax.f32 %v7462_v2, 0.0  ;;  %v9235_v58 = vmax.f32 %v7500_v5, 0.0  ;;  %v1413_v36 = vpop.f32.mrf.mxu0  ;;  %v9238_v37 = vld [vmem:[#allocation8_spill] sm:$0xff] }
 0x2ad   : > { %v9237_v20 = vmax.f32 %v9236_v0, 0.0  ;;  %v9239_v50 = vmax.f32 %v9238_v37, 0.0  ;;  %v8157_v5 = vadd.f32 %v7898_v4, %v1986_v44  ;;  %v3376_v45 = vmax.f32 %v3374_v18, %v3375_v53 }
 0x2ae   : > { %v4025_v62 = vsel %vm2248_vm2, %v9234_v39, %v3642_v35  ;;  %v4026_v47 = vsel %vm2248_vm2, %v9235_v58, %v3642_v35  ;;  %v8154_v39 = vadd.f32 %v7898_v4, %v1413_v36  ;;  %v8161_v35 = vadd.f32 %v7898_v4, %v1605_v21 }
 0x2af   : > { %4281 = vst [vmem:[%s5676_s19 + $0x380] sm:$0xff] %v4025_v62  ;;  %v4149_v29 = vsel %vm2248_vm2, %v9237_v20, %v3766_v46  ;;  %v4150_v2 = vsel %vm2248_vm2, %v9239_v50, %v3766_v46  ;;  %v2814_v58 = vrot.slane %v2813_v41, 1  ;;  %v2526_v62 = vrot.slane %v2525_v16, 1 }
 0x2b0   : > { %4282 = vst [vmem:[%s5676_s19 + $0x388] sm:$0xff] %v4026_v47  ;;  %v8792_v20 = vmax.f32 %v8154_v39, 0.0  ;;  %v3100_v37 = vrot.slane %v3099_v40, 2  ;;  %v3386_v46 = vrot.slane %v3385_v15, 4  ;;  %v8791_v50 = vmax.f32 %v8161_v35, 0.0 }
 0x2b1   : > { %9240 = vst [vmem:[#allocation21_spill] sm:$0xff] %v8161_v35  ;;  %v2815_v36 = vmax.f32 %v2813_v41, %v2814_v58  ;;  %v2527_v44 = vmax.f32 %v2525_v16, %v2526_v62  ;;  %v9241_v47 = vmax.f32 %v8115_v23, 0.0  ;;  %v9242_v30 = vmax.f32 %v8122_v57, 0.0  ;;  %v1989_v16 = vpop.f32.mrf.mxu3 }
 0x2b2   : > { %4405 = vst [vmem:[%s5676_s19 + $0x760] sm:$0xff] %v4149_v29  ;;  %v2529_v53 = vsel %vm2248_vm2, %v8792_v20, -inf  ;;  %v1797_v29 = vpop.f32.mrf.mxu2  ;;  %v3101_v0 = vmax.f32 %v3099_v40, %v3100_v37  ;;  %v2817_v41 = vsel %vm2248_vm2, %v8791_v50, -inf  ;;  %v9243_v58 = vmax.f32 %v8136_v26, 0.0 }
 0x2b3   : > { %4406 = vst [vmem:[%s5676_s19 + $0x768] sm:$0xff] %v4150_v2  ;;  %v2528_v21 = vsel %vm2248_vm2, %v9241_v47, -inf  ;;  %v2816_v18 = vsel %vm2248_vm2, %v9242_v30, -inf  ;;  %3653 = vrot.lane.b32.xlu2 %v2815_v36, %s4894_s8  ;;  %3589 = vrot.lane.b32.xlu0 %v2527_v44, %s4894_s8  ;;  %v8184_v30 = vadd.f32 %v7898_v4, %v1797_v29  ;;  %v8190_v37 = vadd.f32 %v7898_v4, %v1989_v16  ;;  %v3640_v47 = vpop.permute.xlu1 %3639 }
 0x2b4   : > { %v2530_v3 = vmax.f32 %v2528_v21, %v2529_v53  ;;  %v3104_v40 = vsel %vm2248_vm2, %v9243_v58, -inf  ;;  %v2818_v62 = vmax.f32 %v2816_v18, %v2817_v41  ;;  %v3102_v21 = vrot.slane %v3101_v0, 1 }
 0x2b5   : > { %9244 = vst [vmem:[#allocation34_spill] sm:$0xff] %v8190_v37  ;;  %v8796_v36 = vmax.f32 %v8184_v30, 0.0  ;;  %v9245_v44 = vmax.f32 %v7367_v51, 0.0  ;;  %v9246_v50 = vmax.f32 %v7397_v14, 0.0  ;;  %v8795_v18 = vmax.f32 %v8190_v37, 0.0 }
 0x2b6   : > { %v2531_v53 = vrot.slane %v2530_v3, 4  ;;  %v2819_v2 = vrot.slane %v2818_v62, 4  ;;  %v3103_v41 = vmax.f32 %v3101_v0, %v3102_v21  ;;  %v3377_v4 = vrot.slane %v3376_v45, 4 }
 0x2b7   : > { %v4023_v29 = vsel %vm2248_vm2, %v9245_v44, %v3640_v47  ;;  %v4024_v20 = vsel %vm2248_vm2, %v9246_v50, %v3640_v47  ;;  %v3387_v16 = vmax.f32 %v3385_v15, %v3386_v46  ;;  %v3105_v35 = vsel %vm2248_vm2, %v8796_v36, -inf }
 0x2b8   : > { %4279 = vst [vmem:[%s5676_s19 + $0x370] sm:$0xff] %v4023_v29  ;;  %v2532_v58 = vmax.f32 %v2530_v3, %v2531_v53  ;;  %v9247_v51 = vmax.f32 %v8157_v5, 0.0  ;;  %v2820_v14 = vmax.f32 %v2818_v62, %v2819_v2  ;;  %v3106_v57 = vmax.f32 %v3104_v40, %v3105_v35  ;;  %3717 = vrot.lane.b32.xlu1 %v3103_v41, %s4894_s8  ;;  %v3704_v29 = vpop.permute.xlu0 %3703 }
 0x2b9   : > { %4280 = vst [vmem:[%s5676_s19 + $0x378] sm:$0xff] %v4024_v20  ;;  %v3393_v50 = vsel %vm2248_vm2, %v8795_v18, -inf  ;;  %v3378_v21 = vmax.f32 %v3376_v45, %v3377_v4  ;;  %v3388_v2 = vrot.slane %v3387_v16, 2  ;;  %v9248_v40 = vmax.f32 %v7394_v34, 0.0  ;;  %v9249_v18 = vld [vmem:[#allocation20_spill] sm:$0xff] }
 0x2ba   : > { %v3392_v44 = vsel %vm2248_vm2, %v9247_v51, -inf  ;;  %v2533_v3 = vrot.slane %v2532_v58, 2  ;;  %v3107_v0 = vrot.slane %v3106_v57, 4  ;;  %v2821_v46 = vrot.slane %v2820_v14, 2 }
 0x2bb   : > { %v3394_v15 = vmax.f32 %v3392_v44, %v3393_v50  ;;  %v4087_v62 = vsel %vm2248_vm2, %v9248_v40, %v3704_v29  ;;  %v9250_v41 = vmax.f32 %v9249_v18, 0.0  ;;  %v3379_v34 = vrot.slane %v3378_v21, 2 }
 0x2bc   : > { %v2534_v20 = vmax.f32 %v2532_v58, %v2533_v3  ;;  %v3108_v53 = vmax.f32 %v3106_v57, %v3107_v0  ;;  %v2822_v51 = vmax.f32 %v2820_v14, %v2821_v46  ;;  %4343 = vst [vmem:[%s5676_s19 + $0x570] sm:$0xff] %v4087_v62  ;;  %v9251_v3 = vmax.f32 %v7574_v49, 0.0 }
 0x2bd   : > { %v3395_v47 = vrot.slane %v3394_v15, 4  ;;  %v4088_v44 = vsel %vm2248_vm2, %v9250_v41, %v3704_v29  ;;  %v3708_v4 = vpop.permute.xlu2 %3707  ;;  %v9252_v0 = vmax.f32 %v7624_v19, 0.0  ;;  %v3380_v49 = vmax.f32 %v3378_v21, %v3379_v34 }
 0x2be   : > { %v2535_v50 = vrot.slane %v2534_v20, 1  ;;  %v2823_v36 = vrot.slane %v2822_v51, 1  ;;  %v3109_v37 = vrot.slane %v3108_v53, 2  ;;  %4344 = vst [vmem:[%s5676_s19 + $0x578] sm:$0xff] %v4088_v44  ;;  %v4091_v18 = vsel %vm2248_vm2, %v9251_v3, %v3708_v4  ;;  %v9256_v44 = vld [vmem:[#allocation23_spill] sm:$0xff] }
 0x2bf   : > { %v3396_v35 = vmax.f32 %v3394_v15, %v3395_v47  ;;  %v3389_v15 = vmax.f32 %v3387_v16, %v3388_v2  ;;  %v4092_v46 = vsel %vm2248_vm2, %v9252_v0, %v3708_v4  ;;  %4347 = vst [vmem:[%s5676_s19 + $0x590] sm:$0xff] %v4091_v18  ;;  %v9253_v19 = vmax.f32 %v7459_v9, 0.0  ;;  %v9261_v18 = vld [vmem:[#allocation18_spill] sm:$0xff] }
 0x2c0   : > { %v2536_v57 = vmax.f32 %v2534_v20, %v2535_v50  ;;  %v2824_v58 = vmax.f32 %v2822_v51, %v2823_v36  ;;  %v3110_v14 = vmax.f32 %v3108_v53, %v3109_v37  ;;  %4348 = vst [vmem:[%s5676_s19 + $0x598] sm:$0xff] %v4092_v46  ;;  %v9254_v51 = vld [vmem:[#allocation11_spill] sm:$0xff]  ;;  %v3381_v41 = vrot.slane %v3380_v49, 1 }
 0x2c1   : > { %v3397_v45 = vrot.slane %v3396_v35, 2  ;;  %v3390_v20 = vrot.slane %v3389_v15, 1  ;;  %v9255_v2 = vmax.f32 %v9254_v51, 0.0  ;;  %v9257_v50 = vmax.f32 %v9256_v44, 0.0 }
 0x2c2   : > { %3591 = vrot.lane.b32.xlu1 %v2536_v57, %s4894_s8  ;;  %3655 = vrot.lane.b32.xlu0 %v2824_v58, %s4894_s8  ;;  %v3111_v36 = vrot.slane %v3110_v14, 1  ;;  %v9258_v57 = vmax.f32 %v7525_v52, 0.0  ;;  %v3382_v58 = vmax.f32 %v3380_v49, %v3381_v41  ;;  %v9260_v34 = vmax.f32 %v7673_v24, 0.0 }
 0x2c3   : > { %v3398_v47 = vmax.f32 %v3396_v35, %v3397_v45  ;;  %v3578_v53 = vpop.permute.xlu0 %3577  ;;  %v3391_v62 = vmax.f32 %v3389_v15, %v3390_v20  ;;  %v9262_v0 = vmax.f32 %v9261_v18, 0.0  ;;  %v9272_v41 = vmax.f32 %v7726_v28, 0.0 }
 0x2c4   : > { %v3112_v16 = vmax.f32 %v3110_v14, %v3111_v36  ;;  %v3961_v29 = vsel %vm2248_vm2, %v9253_v19, %v3578_v53  ;;  %v3962_v35 = vsel %vm2248_vm2, %v9255_v2, %v3578_v53  ;;  %v9259_v14 = vmax.f32 %v7647_v42, 0.0 }
 0x2c5   : > { %v3399_v37 = vrot.slane %v3398_v47, 1  ;;  %4217 = vst [vmem:[%s5676_s19 + $0x180] sm:$0xff] %v3961_v29  ;;  %v9264_v36 = vmax.f32 %v7564_v27, 0.0  ;;  %v9266_v53 = vmax.f32 %v7568_v54, 0.0  ;;  %v9267_v29 = vmax.f32 %v7670_v25, 0.0 }
 0x2c6   : > { %3719 = vrot.lane.b32.xlu2 %v3112_v16, %s4894_s8  ;;  %4218 = vst [vmem:[%s5676_s19 + $0x188] sm:$0xff] %v3962_v35  ;;  %v3706_v21 = vpop.permute.xlu1 %3705  ;;  %v9265_v16 = vmax.f32 %v7590_v13, 0.0  ;;  %v9268_v13 = vmax.f32 %v7708_v1, 0.0  ;;  %v9269_v2 = vmax.f32 %v7602_v7, 0.0  ;;  %v9270_v25 = vmax.f32 %v7586_v60, 0.0 }
 0x2c7   : > { %v3400_v40 = vmax.f32 %v3398_v47, %v3399_v37  ;;  %v4089_v9 = vsel %vm2248_vm2, %v9257_v50, %v3706_v21  ;;  %v4090_v45 = vsel %vm2248_vm2, %v9258_v57, %v3706_v21  ;;  %v9263_v47 = vmax.f32 %v7534_v59, 0.0 }
 0x2c8   : > { %4345 = vst [vmem:[%s5676_s19 + $0x580] sm:$0xff] %v4089_v9  ;;  %v3582_v4 = vpop.permute.xlu2 %3581  ;;  %v9273_v44 = vmax.f32 %v7768_v33, 0.0  ;;  %v9274_v50 = vmax.f32 %v7650_v48, 0.0  ;;  %v9275_v57 = vmax.f32 %v7677_v63, 0.0  ;;  %v9276_v33 = vld [vmem:[#allocation36_spill] sm:$0xff]  ;;  %v9280_v63 = vmax.f32 %v7850_v8, 0.0 }
 0x2c9   : > { %4346 = vst [vmem:[%s5676_s19 + $0x588] sm:$0xff] %v4090_v45  ;;  %v3965_v15 = vsel %vm2248_vm2, %v9259_v14, %v3582_v4  ;;  %v3966_v3 = vsel %vm2248_vm2, %v9260_v34, %v3582_v4  ;;  %v9277_v4 = vmax.f32 %v9276_v33, 0.0  ;;  %v9278_v14 = vld [vmem:[#allocation14_spill] sm:$0xff] }
 0x2ca   : > { %3783 = vrot.lane.b32.xlu1 %v3400_v40, %s4894_s8  ;;  %3781 = vrot.lane.b32.xlu0 %v3391_v62, %s4894_s8  ;;  %4221 = vst [vmem:[%s5676_s19 + $0x1a0] sm:$0xff] %v3965_v15  ;;  %v9271_v62 = vmax.f32 %v7627_v17, 0.0  ;;  %v9279_v15 = vmax.f32 %v9278_v14, 0.0 }
 0x2cb   : > { %v3770_v52 = vpop.permute.xlu0 %3769  ;;  %4222 = vst [vmem:[%s5676_s19 + $0x1a8] sm:$0xff] %v3966_v3 }
 0x2cc   : > { %v4153_v46 = vsel %vm2248_vm2, %v9262_v0, %v3770_v52  ;;  %v4154_v42 = vsel %vm2248_vm2, %v9263_v47, %v3770_v52  ;;  %v9281_v52 = vmax.f32 %v7901_v6, 0.0  ;;  %v9284_v6 = vld [vmem:[#allocation37_spill] sm:$0xff] }
 0x2cd   : > { %4409 = vst [vmem:[%s5676_s19 + $0x780] sm:$0xff] %v4153_v46  ;;  %v9282_v46 = vmax.f32 %v7723_v38, 0.0 }
 0x2ce   : > { %3779 = vrot.lane.b32.xlu2 %v3382_v58, %s4894_s8  ;;  %4410 = vst [vmem:[%s5676_s19 + $0x788] sm:$0xff] %v4154_v42  ;;  %v9283_v42 = vmax.f32 %v7764_v10, 0.0  ;;  %s4441_s8 = sshll.u32 %s4438_s7, 4  ;;  %s4442_s8 = int_to_ptr.hbm [resolvable:$true] %s4441_s8 }
 0x2cf   : > { %v3580_v24 = vpop.permute.xlu1 %3579  ;;  %s4844_s10 = sshra.s32 %s4442_s8, 4  ;;  %s4845_s10 = int_to_ptr.hbm [resolvable:$true] %s4844_s10 }
 0x2d0   : > { %v3963_v37 = vsel %vm2248_vm2, %v9264_v36, %v3580_v24  ;;  %v3964_v20 = vsel %vm2248_vm2, %v9265_v16, %v3580_v24  ;;  %v9285_v36 = vmax.f32 %v9284_v6, 0.0  ;;  %v9286_v16 = vmax.f32 %v7800_v32, 0.0  ;;  %v9290_v32 = vld [vmem:[#allocation17_spill] sm:$0xff]  ;;  %s4846_s17 = scalar_lea.hbm %s4845_s10, 2048  ;;  %p4851_p0 = scmp.lt.s32.totalorder %s4845_s10, %s8511_s3 }
 0x2d1   : > { %4219 = vst [vmem:[%s5676_s19 + $0x190] sm:$0xff] %v3963_v37  ;;  %p4847_p11 = scmp.ne.s32.totalorder %s4845_s10, %s4846_s17  ;;  %p4852_p1 = scmp.lt.s32.totalorder %s4850_s25, %s4846_s17 }
 0x2d2   : > { %4220 = vst [vmem:[%s5676_s19 + $0x198] sm:$0xff] %v3964_v20  ;;  %v9287_v20 = vmax.f32 %v7924_v55, 0.0 }
 0x2d3   : > { %v3644_v59 = vpop.permute.xlu0 %3643  ;;  %p4848_p12 = pnand %p4847_p11, %p4955_p5  ;;  %p4853_p2 = por %p4852_p1, %p4851_p0 }
 0x2d4   : > { %v4027_v19 = vsel %vm2248_vm2, %v9266_v53, %v3644_v59  ;;  %v4028_v35 = vsel %vm2248_vm2, %v9269_v2, %v3644_v59 }
 0x2d5   : > { %4283 = vst [vmem:[%s5676_s19 + $0x390] sm:$0xff] %v4027_v19  ;;  %p4849_p13 = pneg %p4848_p12 }
 0x2d6   : > { %v3774_v49 = vpop.permute.xlu2 %3773  ;;  %4284 = vst [vmem:[%s5676_s19 + $0x398] sm:$0xff] %v4028_v35 }
 0x2d7   : > { %v4157_v27 = vsel %vm2248_vm2, %v9267_v29, %v3774_v49  ;;  %v4158_v51 = vsel %vm2248_vm2, %v9268_v13, %v3774_v49  ;;  %v3772_v54 = vpop.permute.xlu1 %3771  ;;  %v9288_v49 = vld [vmem:[#allocation15_spill] sm:$0xff]  ;;  %p4854_p3 = pnand %p4853_p2, %p4849_p13 }
 0x2d8   : > { %4413 = vst [vmem:[%s5676_s19 + $0x7a0] sm:$0xff] %v4157_v27  ;;  %v4155_v40 = vsel %vm2248_vm2, %v9270_v25, %v3772_v54  ;;  %v4156_v1 = vsel %vm2248_vm2, %v9271_v62, %v3772_v54  ;;  %v9289_v53 = vmax.f32 %v9288_v49, 0.0  ;;  %v9291_v27 = vmax.f32 %v9290_v32, 0.0  ;;  %v9294_v54 = vld [vmem:[#allocation19_spill] sm:$0xff] }
 0x2d9   : > { %4414 = vst [vmem:[%s5676_s19 + $0x7a8] sm:$0xff] %v4158_v51  ;;  %v9292_v51 = vld [vmem:[#allocation22_spill] sm:$0xff]  ;;  %v9295_v25 = vmax.f32 %v9294_v54, 0.0  ;;  %v9296_v62 = vld [vmem:[#allocation27_spill] sm:$0xff]  ;;  %v9317_v49 = vmax.f32 %v8004_v22, 0.0 }
 0x2da   : > { %4411 = vst [vmem:[%s5676_s19 + $0x790] sm:$0xff] %v4155_v40  ;;  %v9293_v2 = vmax.f32 %v9292_v51, 0.0 }
 0x2db   : > { %4412 = vst [vmem:[%s5676_s19 + $0x798] sm:$0xff] %v4156_v1  ;;  %v9297_v1 = vmax.f32 %v9296_v62, 0.0  ;;  %v9326_v62 = vmax.f32 %v8154_v39, 0.0  ;;  %v9331_v39 = vmax.f32 %v8157_v5, 0.0 }
 0x2de   : > { %v3648_v7 = vpop.permute.xlu2 %3647 }
 0x2df   : > { %v4031_v21 = vsel %vm2248_vm2, %v9272_v41, %v3648_v7  ;;  %v4032_v60 = vsel %vm2248_vm2, %v9273_v44, %v3648_v7 }
 0x2e0   : > { %4287 = vst [vmem:[%s5676_s19 + $0x3b0] sm:$0xff] %v4031_v21  ;;  %v9298_v21 = vld [vmem:[#allocation30_spill] sm:$0xff] }
 0x2e1   : > { %4288 = vst [vmem:[%s5676_s19 + $0x3b8] sm:$0xff] %v4032_v60  ;;  %v9299_v44 = vmax.f32 %v9298_v21, 0.0 }
 0x2e3   : > { %v3646_v17 = vpop.permute.xlu1 %3645 }
 0x2e4   : > { %v4029_v9 = vsel %vm2248_vm2, %v9274_v50, %v3646_v17  ;;  %v4030_v45 = vsel %vm2248_vm2, %v9275_v57, %v3646_v17  ;;  %v9300_v17 = vld [vmem:[#allocation26_spill] sm:$0xff] }
 0x2e5   : > { %4285 = vst [vmem:[%s5676_s19 + $0x3a0] sm:$0xff] %v4029_v9  ;;  %v9301_v50 = vmax.f32 %v9300_v17, 0.0 }
 0x2e6   : > { %4286 = vst [vmem:[%s5676_s19 + $0x3a8] sm:$0xff] %v4030_v45  ;;  %v9302_v45 = vld [vmem:[#allocation24_spill] sm:$0xff] }
 0x2eb   : > { %v3710_v28 = vpop.permute.xlu0 %3709 }
 0x2ec   : > { %v4093_v58 = vsel %vm2248_vm2, %v9277_v4, %v3710_v28  ;;  %v4094_v34 = vsel %vm2248_vm2, %v9279_v15, %v3710_v28  ;;  %v9303_v28 = vmax.f32 %v9302_v45, 0.0  ;;  %v9304_v4 = vld [vmem:[#allocation25_spill] sm:$0xff] }
 0x2ed   : > { %4349 = vst [vmem:[%s5676_s19 + $0x5a0] sm:$0xff] %v4093_v58  ;;  %v9305_v58 = vmax.f32 %v9304_v4, 0.0 }
 0x2ee   : > { %4350 = vst [vmem:[%s5676_s19 + $0x5a8] sm:$0xff] %v4094_v34  ;;  %v9306_v34 = vmax.f32 %v8009_v12, 0.0 }
 0x2f1   : > { %v3714_v48 = vpop.permute.xlu2 %3713 }
 0x2f2   : > { %v4097_v3 = vsel %vm2248_vm2, %v9280_v63, %v3714_v48  ;;  %v4098_v18 = vsel %vm2248_vm2, %v9281_v52, %v3714_v48  ;;  %v9307_v63 = vmax.f32 %v8037_v61, 0.0 }
 0x2f3   : > { %4353 = vst [vmem:[%s5676_s19 + $0x5c0] sm:$0xff] %v4097_v3 }
 0x2f4   : > { %4354 = vst [vmem:[%s5676_s19 + $0x5c8] sm:$0xff] %v4098_v18  ;;  %v9308_v18 = vld [vmem:[#allocation28_spill] sm:$0xff] }
 0x2f6   : > { %v3584_v0 = vpop.permute.xlu0 %3583 }
 0x2f7   : > { %v3967_v47 = vsel %vm2248_vm2, %v9282_v46, %v3584_v0  ;;  %v3968_v24 = vsel %vm2248_vm2, %v9283_v42, %v3584_v0  ;;  %v9309_v0 = vmax.f32 %v9308_v18, 0.0 }
 0x2f8   : > { %4223 = vst [vmem:[%s5676_s19 + $0x1b0] sm:$0xff] %v3967_v47  ;;  %v9310_v47 = vld [vmem:[#allocation29_spill] sm:$0xff] }
 0x2f9   : > { %4224 = vst [vmem:[%s5676_s19 + $0x1b8] sm:$0xff] %v3968_v24  ;;  %v9311_v42 = vmax.f32 %v9310_v47, 0.0  ;;  %v9312_v24 = vld [vmem:[#allocation39_spill] sm:$0xff] }
 0x2fb   : > { %v3712_v8 = vpop.permute.xlu1 %3711 }
 0x2fc   : > { %v4095_v37 = vsel %vm2248_vm2, %v9285_v36, %v3712_v8  ;;  %v4096_v38 = vsel %vm2248_vm2, %v9286_v16, %v3712_v8  ;;  %v3588_v10 = vpop.permute.xlu2 %3587  ;;  %v9313_v8 = vmax.f32 %v9312_v24, 0.0  ;;  %v9314_v36 = vmax.f32 %v7986_v43, 0.0 }
 0x2fd   : > { %4351 = vst [vmem:[%s5676_s19 + $0x5b0] sm:$0xff] %v4095_v37  ;;  %v3971_v59 = vsel %vm2248_vm2, %v9287_v20, %v3588_v10  ;;  %v3972_v19 = vsel %vm2248_vm2, %v9289_v53, %v3588_v10  ;;  %v9316_v20 = vmax.f32 %v8184_v30, 0.0  ;;  %v9320_v30 = vmax.f32 %v8020_v31, 0.0 }
 0x2fe   : > { %4352 = vst [vmem:[%s5676_s19 + $0x5b8] sm:$0xff] %v4096_v38  ;;  %v3776_v29 = vpop.permute.xlu0 %3775  ;;  %v9315_v38 = vmax.f32 %v8136_v26, 0.0 }
 0x2ff   : > { %4227 = vst [vmem:[%s5676_s19 + $0x1d0] sm:$0xff] %v3971_v59  ;;  %v4159_v13 = vsel %vm2248_vm2, %v9291_v27, %v3776_v29  ;;  %v4160_v35 = vsel %vm2248_vm2, %v9293_v2, %v3776_v29  ;;  %v9322_v2 = vmax.f32 %v8040_v56, 0.0 }
 0x300   : > { %4228 = vst [vmem:[%s5676_s19 + $0x1d8] sm:$0xff] %v3972_v19  ;;  %v9318_v19 = vld [vmem:[#allocation33_spill] sm:$0xff] }
 0x301   : > { %4415 = vst [vmem:[%s5676_s19 + $0x7b0] sm:$0xff] %v4159_v13  ;;  %v9319_v29 = vmax.f32 %v9318_v19, 0.0  ;;  %v9321_v13 = vmax.f32 %v8068_v11, 0.0 }
 0x302   : > { %4416 = vst [vmem:[%s5676_s19 + $0x7b8] sm:$0xff] %v4160_v35 }
 0x303   : > { %v3586_v55 = vpop.permute.xlu1 %3585 }
 0x304   : > { %v3969_v40 = vsel %vm2248_vm2, %v9295_v25, %v3586_v55  ;;  %v3970_v7 = vsel %vm2248_vm2, %v9297_v1, %v3586_v55  ;;  %v9323_v55 = vld [vmem:[#allocation31_spill] sm:$0xff]  ;;  %v9325_v25 = vmax.f32 %v8115_v23, 0.0 }
 0x305   : > { %4225 = vst [vmem:[%s5676_s19 + $0x1c0] sm:$0xff] %v3969_v40  ;;  %v9324_v54 = vmax.f32 %v9323_v55, 0.0 }
 0x306   : > { %4226 = vst [vmem:[%s5676_s19 + $0x1c8] sm:$0xff] %v3970_v7  ;;  %v3650_v41 = vpop.permute.xlu0 %3649  ;;  %v9327_v7 = vld [vmem:[#allocation13_spill] sm:$0xff] }
 0x307   : > { %v4033_v60 = vsel %vm2248_vm2, %v9299_v44, %v3650_v41  ;;  %v4034_v9 = vsel %vm2248_vm2, %v9301_v50, %v3650_v41  ;;  %v9328_v41 = vmax.f32 %v9327_v7, 0.0  ;;  %v9329_v44 = vld [vmem:[#allocation21_spill] sm:$0xff] }
 0x308   : > { %4289 = vst [vmem:[%s5676_s19 + $0x3c0] sm:$0xff] %v4033_v60  ;;  %v9330_v60 = vmax.f32 %v9329_v44, 0.0 }
 0x309   : > { %4290 = vst [vmem:[%s5676_s19 + $0x3c8] sm:$0xff] %v4034_v9  ;;  %v9332_v9 = vld [vmem:[#allocation34_spill] sm:$0xff] }
 0x30b   : > { %v3778_v57 = vpop.permute.xlu1 %3777 }
 0x30c   : > { %v4161_v33 = vsel %vm2248_vm2, %v9303_v28, %v3778_v57  ;;  %v4162_v14 = vsel %vm2248_vm2, %v9305_v58, %v3778_v57  ;;  %v9333_v57 = vmax.f32 %v9332_v9, 0.0 }
 0x30d   : > { %v3654_v15 = vpop.permute.xlu2 %3653  ;;  %4417 = vst [vmem:[%s5676_s19 + $0x7c0] sm:$0xff] %v4161_v33  ;;  %v9334_v33 = vld [vmem:[#allocation32_spill] sm:$0xff] }
 0x30e   : > { %v4037_v48 = vsel %vm2248_vm2, %v9306_v34, %v3654_v15  ;;  %v4038_v3 = vsel %vm2248_vm2, %v9307_v63, %v3654_v15  ;;  %4418 = vst [vmem:[%s5676_s19 + $0x7c8] sm:$0xff] %v4162_v14  ;;  %v9335_v4 = vmax.f32 %v9334_v33, 0.0  ;;  %v9336_v14 = vld [vmem:[#allocation10_spill] sm:$0xff] }
 0x30f   : > { %4293 = vst [vmem:[%s5676_s19 + $0x3e0] sm:$0xff] %v4037_v48  ;;  %v9337_v15 = vmax.f32 %v9336_v14, 0.0 }
 0x310   : > { %4294 = vst [vmem:[%s5676_s19 + $0x3e8] sm:$0xff] %v4038_v3 }
 0x314   : > { %v3652_v52 = vpop.permute.xlu1 %3651 }
 0x315   : > { %v4035_v46 = vsel %vm2248_vm2, %v9309_v0, %v3652_v52  ;;  %v4036_v12 = vsel %vm2248_vm2, %v9311_v42, %v3652_v52 }
 0x316   : > { %4291 = vst [vmem:[%s5676_s19 + $0x3d0] sm:$0xff] %v4035_v46 }
 0x317   : > { %4292 = vst [vmem:[%s5676_s19 + $0x3d8] sm:$0xff] %v4036_v12 }
 0x31b   : > { %v3716_v61 = vpop.permute.xlu0 %3715 }
 0x31c   : > { %v4099_v6 = vsel %vm2248_vm2, %v9313_v8, %v3716_v61  ;;  %v4100_v37 = vsel %vm2248_vm2, %v9314_v36, %v3716_v61 }
 0x31d   : > { %4355 = vst [vmem:[%s5676_s19 + $0x5d0] sm:$0xff] %v4099_v6 }
 0x31e   : > { %4356 = vst [vmem:[%s5676_s19 + $0x5d8] sm:$0xff] %v4100_v37 }
 0x320   : > { %v3720_v16 = vpop.permute.xlu2 %3719 }
 0x321   : > { %v4103_v10 = vsel %vm2248_vm2, %v9315_v38, %v3720_v16  ;;  %v4104_v59 = vsel %vm2248_vm2, %v9316_v20, %v3720_v16 }
 0x322   : > { %4359 = vst [vmem:[%s5676_s19 + $0x5f0] sm:$0xff] %v4103_v10 }
 0x323   : > { %4360 = vst [vmem:[%s5676_s19 + $0x5f8] sm:$0xff] %v4104_v59 }
 0x325   : > { %v3590_v43 = vpop.permute.xlu0 %3589 }
 0x326   : > { %v3973_v53 = vsel %vm2248_vm2, %v9317_v49, %v3590_v43  ;;  %v3974_v32 = vsel %vm2248_vm2, %v9319_v29, %v3590_v43 }
 0x327   : > { %4229 = vst [vmem:[%s5676_s19 + $0x1e0] sm:$0xff] %v3973_v53 }
 0x328   : > { %4230 = vst [vmem:[%s5676_s19 + $0x1e8] sm:$0xff] %v3974_v32  ;;  %v3780_v26 = vpop.permute.xlu2 %3779 }
 0x329   : > { %v4163_v27 = vsel %vm2248_vm2, %v9320_v30, %v3780_v26  ;;  %v4164_v51 = vsel %vm2248_vm2, %v9321_v13, %v3780_v26 }
 0x32a   : > { %4419 = vst [vmem:[%s5676_s19 + $0x7d0] sm:$0xff] %v4163_v27  ;;  %v3718_v22 = vpop.permute.xlu1 %3717 }
 0x32b   : > { %4420 = vst [vmem:[%s5676_s19 + $0x7d8] sm:$0xff] %v4164_v51  ;;  %v4101_v35 = vsel %vm2248_vm2, %v9322_v2, %v3718_v22  ;;  %v4102_v31 = vsel %vm2248_vm2, %v9324_v54, %v3718_v22 }
 0x32c   : > { %4357 = vst [vmem:[%s5676_s19 + $0x5e0] sm:$0xff] %v4101_v35 }
 0x32d   : > { %4358 = vst [vmem:[%s5676_s19 + $0x5e8] sm:$0xff] %v4102_v31 }
 0x334   : > { %v3592_v11 = vpop.permute.xlu1 %3591  ;;  %v3656_v56 = vpop.permute.xlu0 %3655 }
 0x335   : > { %v3975_v40 = vsel %vm2248_vm2, %v9325_v25, %v3592_v11  ;;  %v3976_v1 = vsel %vm2248_vm2, %v9326_v62, %v3592_v11  ;;  %v4039_v21 = vsel %vm2248_vm2, %v9328_v41, %v3656_v56  ;;  %v4040_v17 = vsel %vm2248_vm2, %v9330_v60, %v3656_v56 }
 0x336   : > { %4231 = vst [vmem:[%s5676_s19 + $0x1f0] sm:$0xff] %v3975_v40 }
 0x337   : > { %4232 = vst [vmem:[%s5676_s19 + $0x1f8] sm:$0xff] %v3976_v1 }
 0x338   : > { %4295 = vst [vmem:[%s5676_s19 + $0x3f0] sm:$0xff] %v4039_v21 }
 0x339   : > { %4296 = vst [vmem:[%s5676_s19 + $0x3f8] sm:$0xff] %v4040_v17 }
 0x33c   : > { %v3784_v23 = vpop.permute.xlu1 %3783  ;;  %v3782_v28 = vpop.permute.xlu0 %3781 }
 0x33d   : > { %v4167_v50 = vsel %vm2248_vm2, %v9331_v39, %v3784_v23  ;;  %v4168_v45 = vsel %vm2248_vm2, %v9333_v57, %v3784_v23  ;;  %v4165_v58 = vsel %vm2248_vm2, %v9335_v4, %v3782_v28  ;;  %v4166_v34 = vsel %vm2248_vm2, %v9337_v15, %v3782_v28 }
 0x33e   : > { %4423 = vst [vmem:[%s5676_s19 + $0x7f0] sm:$0xff] %v4167_v50 }
 0x33f   : > { %4424 = vst [vmem:[%s5676_s19 + $0x7f8] sm:$0xff] %v4168_v45 }
 0x340   : > { %4421 = vst [vmem:[%s5676_s19 + $0x7e0] sm:$0xff] %v4165_v58 }
 0x341   : > { %4422 = vst [vmem:[%s5676_s19 + $0x7e8] sm:$0xff] %v4166_v34 }
 0x342   : > { %4857 = shalt.err (!%p4854_p3)
}
 0x343   : > { %s4895_s11 = smov 128   ;;  %s4896_s19 = smov 8  }
 0x344   : > { %4782 = dma.vmem_to_hbm [thread:$0]  (%p4955_p5), %s4440_s16, 32768, %s4442_s8, %s4426_s9, %s4895_s11, %s4895_s11, %s4896_s19  }
 0x345 PF: > { %p4788_p4 = scmp.ge.s32.totalorder %s4892_s15, 2  ;;  %s4456_s28 = sand.u32 1, %s4880_s12  }
 0x346   : > { %s4457_s29 = scalar_lea.sflag [#allocation3], %s4456_s28 }
 0x347   : > { %p4785_p7 = pnand %p4788_p4, %p4959_p6 }
 0x349   : > { %p4786_p8 = pneg %p4785_p7 }
 0x34b   : > { %4875 = dma.done.wait (%p4786_p8), %s4457_s29, 32768  }
 0x34c   : > { %4877 = vsyncadd (%p4786_p8), %s4457_s29, 4294934528  ;;  %p13_p9 = scmp.ge.s32.totalorder %s4942_s18, 4   ;;  %s9338_s12 = smov %s4884_s13 }
 0x34d   : > { %s9339_s13 = smov %s4888_s14  ;;  %s9340_s14 = smov %s4953_s21 }
 0x34e   : > { %s9341_s15 = smov %s4942_s18  ;;  %15 = sbr.rel (!%p13_p9) target bundleno = 3 (0x3), region = 67 }
 0x353   :  { %4463 = vsyncpa [#allocation3], 1 }
 0x354   :  { %4465 = vsyncpa [#allocation3 + $0x1], 1 }

</bundles_post_ra>
